<compile_context>
chip_gen: v5e
topology: v5e:2x2
jax: 0.10.0
libtpu: 0.0.40
codegen_flags: <defaults>
</compile_context>

<pallas_src>
import functools

import jax
import jax.numpy as jnp
from jax.experimental import pallas as pl
from jax.experimental.pallas import tpu as pltpu

HIDDEN = 1024
NEG_SLOPE = 0.01  # PyTorch nn.LeakyReLU default


def _discriminator_y_kernel(x_ref, w1_ref, b1_ref, w2_ref, b2_ref, o_ref):
    # x_ref : [nbin, TB]   bf16   (batch on the lane axis)
    # w1_ref: [1024, nbin] bf16   (PyTorch [out, in] layout -> direct MXU matmul)
    # b1_ref: [1024, 1]    f32
    # w2_ref: [1024, 1]    f32    (linear2 weight as a column)
    # b2_ref: [1, 1]       f32    (SMEM scalar)
    # o_ref : [1, TB]      f32    (lane-dense output row)
    h = jnp.dot(w1_ref[...], x_ref[...],
                preferred_element_type=jnp.float32)        # [1024, TB] f32 acc
    h = h + b1_ref[...]                                    # lane-broadcast bias
    h = jnp.where(h > 0, h, NEG_SLOPE * h)                 # LeakyReLU(0.01), f32
    # linear2 ([1024] -> 1): VPU multiply + sublane reduce -> lane-dense [1, TB]
    out = jnp.sum(h * w2_ref[...], axis=0, keepdims=True) + b2_ref[0, 0]
    o_ref[...] = out.astype(o_ref.dtype)


@functools.partial(jax.jit, static_argnames=("tile_b",))
def discriminator_y(x, w1, b1, w2, b2, *, tile_b=256):
    """Forward pass of DiscriminatorY.

    x : [B, nbin] float32
    w1: [1024, nbin], b1: [1024]   (linear1, PyTorch [out, in] layout)
    w2: [1, 1024],    b2: [1]      (linear2, PyTorch layout)
    Returns [B, 1] float32.
    """
    B, nbin = x.shape
    n_tiles = pl.cdiv(B, tile_b)
    b_pad = n_tiles * tile_b

    # Batch-on-lanes layout (lane-dense intermediates + output); zero-pad batch
    # up to the tile size. Weights/activations fed to the MXU as bf16.
    x_t = jnp.zeros((nbin, b_pad), jnp.bfloat16)
    x_t = x_t.at[:, :B].set(x.T.astype(jnp.bfloat16))
    w1_bf = w1.astype(jnp.bfloat16)                      # [1024, nbin]
    b1_c = b1.reshape(HIDDEN, 1).astype(jnp.float32)     # [1024, 1]
    w2_c = w2.reshape(HIDDEN, 1).astype(jnp.float32)     # [1024, 1]
    b2_s = b2.reshape(1, 1).astype(jnp.float32)          # SMEM scalar

    out_row = pl.pallas_call(
        _discriminator_y_kernel,
        out_shape=jax.ShapeDtypeStruct((1, b_pad), jnp.float32),
        grid=(n_tiles,),
        in_specs=[
            pl.BlockSpec((nbin, tile_b), lambda i: (0, i)),   # x tile (pipelined)
            pl.BlockSpec((HIDDEN, nbin), lambda i: (0, 0)),   # w1, VMEM-resident
            pl.BlockSpec((HIDDEN, 1), lambda i: (0, 0)),      # b1, VMEM-resident
            pl.BlockSpec((HIDDEN, 1), lambda i: (0, 0)),      # w2, VMEM-resident
            pl.BlockSpec(memory_space=pltpu.SMEM),            # b2 scalar in SMEM
        ],
        out_specs=pl.BlockSpec((1, tile_b), lambda i: (0, i)),
        compiler_params=pltpu.CompilerParams(
            dimension_semantics=("parallel",)),
    )(x_t, w1_bf, b1_c, w2_c, b2_s)

    return out_row[0, :B].reshape(B, 1)


def init_params(key, nbin, hidden=HIDDEN):
    """PyTorch nn.Linear default init (uniform +-1/sqrt(fan_in)), PyTorch layouts."""
    k1, k2, k3, k4 = jax.random.split(key, 4)
    bound1 = 1.0 / jnp.sqrt(jnp.float32(nbin))
    bound2 = 1.0 / jnp.sqrt(jnp.float32(hidden))
    w1 = jax.random.uniform(k1, (hidden, nbin), jnp.float32, -bound1, bound1)
    b1 = jax.random.uniform(k2, (hidden,), jnp.float32, -bound1, bound1)
    w2 = jax.random.uniform(k3, (1, hidden), jnp.float32, -bound2, bound2)
    b2 = jax.random.uniform(k4, (1,), jnp.float32, -bound2, bound2)
    return w1, b1, w2, b2


def _reference(x, w1, b1, w2, b2, *, cast_bf16):
    """Pure-JAX forward. cast_bf16=True mirrors the kernel's bf16 MXU inputs."""
    hi = jax.lax.Precision.HIGHEST
    if cast_bf16:
        x = x.astype(jnp.bfloat16).astype(jnp.float32)
        w1 = w1.astype(jnp.bfloat16).astype(jnp.float32)
    h = jnp.dot(x, w1.T, precision=hi) + b1
    h = jnp.where(h > 0, h, NEG_SLOPE * h)
    return jnp.dot(h, w2.T, precision=hi) + b2


if __name__ == "__main__":
    nbin = 32
    batch = 2

    key = jax.random.PRNGKey(0)
    kx, kp = jax.random.split(key)
    x = jax.random.normal(kx, (batch, nbin), jnp.float32)
    w1, b1, w2, b2 = init_params(kp, nbin)

    out = jax.block_until_ready(discriminator_y(x, w1, b1, w2, b2))
    assert out.shape == (batch, 1)

    # Tight check against a bf16-input-consistent reference; loose check vs pure f32.
    ref_bf16 = _reference(x, w1, b1, w2, b2, cast_bf16=True)
    ref_f32 = _reference(x, w1, b1, w2, b2, cast_bf16=False)
    assert jnp.allclose(out, ref_bf16, atol=2e-3, rtol=2e-3)
    assert jnp.allclose(out, ref_f32, atol=5e-2, rtol=5e-2)

    # Exercise the multi-tile grid + batch-padding path (2 grid steps).
    x_big = jax.random.normal(kx, (300, nbin), jnp.float32)
    out_big = jax.block_until_ready(discriminator_y(x_big, w1, b1, w2, b2))
    ref_big = _reference(x_big, w1, b1, w2, b2, cast_bf16=True)
    assert out_big.shape == (300, 1)
    assert jnp.allclose(out_big, ref_big, atol=2e-3, rtol=2e-3)

    print("KERNEL_OK")
</pallas_src>

<mosaic_0001>
module attributes {stable_mosaic.version = 11 : i64} {
  func.func @_discriminator_y_kernel(%arg0: i32, %arg1: memref<32x256xbf16, #tpu.memory_space<vmem>>, %arg2: memref<1024x32xbf16, #tpu.memory_space<vmem>>, %arg3: memref<1024x1xf32, #tpu.memory_space<vmem>>, %arg4: memref<1024x1xf32, #tpu.memory_space<vmem>>, %arg5: memref<1x1xf32, #tpu.memory_space<smem>>, %arg6: memref<1x256xf32, #tpu.memory_space<vmem>>) attributes {dimension_semantics = [#tpu.dimension_semantics<parallel>], iteration_bounds = array<i64: 1>, scalar_prefetch = 0 : i64, scratch_operands = 0 : i64, tpu.core_type = #tpu.core_type<tc>, window_params = [{transform_indices = @transform_0, window_bounds = array<i64: 32, 256>}, {pipeline_mode = #tpu.pipeline_mode<synchronous>, transform_indices = @transform_1, window_bounds = array<i64: 1024, 32>}, {pipeline_mode = #tpu.pipeline_mode<synchronous>, transform_indices = @transform_2, window_bounds = array<i64: 1024, 1>}, {pipeline_mode = #tpu.pipeline_mode<synchronous>, transform_indices = @transform_3, window_bounds = array<i64: 1024, 1>}, {transform_indices = @transform_4, window_bounds = array<i64: 1, 1>}, {transform_indices = @transform_5, window_bounds = array<i64: 1, 256>}]} {
    %c0 = arith.constant 0 : index
    %c0_0 = arith.constant 0 : index
    %0 = vector.load %arg2[%c0, %c0_0] : memref<1024x32xbf16, #tpu.memory_space<vmem>>, vector<1024x32xbf16>
    %c0_1 = arith.constant 0 : index
    %c0_2 = arith.constant 0 : index
    %1 = vector.load %arg1[%c0_1, %c0_2] : memref<32x256xbf16, #tpu.memory_space<vmem>>, vector<32x256xbf16>
    %cst = arith.constant dense<0.000000e+00> : vector<1024x256xf32>
    %2 = tpu.matmul %0, %1, %cst {dimension_numbers = #tpu.dot_dimension_numbers<[1], [0], [0], [1], [0, 0, 1, 1], [], []>} : vector<1024x32xbf16>, vector<32x256xbf16>, vector<1024x256xf32> -> vector<1024x256xf32>
    %c0_3 = arith.constant 0 : index
    %c0_4 = arith.constant 0 : index
    %3 = vector.load %arg3[%c0_3, %c0_4] : memref<1024x1xf32, #tpu.memory_space<vmem>>, vector<1024x1xf32>
    %4 = vector.broadcast %3 : vector<1024x1xf32> to vector<1024x256xf32>
    %5 = arith.addf %2, %4 : vector<1024x256xf32>
    %cst_5 = arith.constant 0.000000e+00 : f32
    %6 = vector.broadcast %cst_5 : f32 to vector<1024x256xf32>
    %7 = arith.cmpf ogt, %5, %6 : vector<1024x256xf32>
    %cst_6 = arith.constant 0.00999999977 : f32
    %8 = vector.broadcast %cst_6 : f32 to vector<1024x256xf32>
    %9 = arith.mulf %8, %5 : vector<1024x256xf32>
    %10 = arith.select %7, %5, %9 : vector<1024x256xi1>, vector<1024x256xf32>
    %c0_7 = arith.constant 0 : index
    %c0_8 = arith.constant 0 : index
    %11 = vector.load %arg4[%c0_7, %c0_8] : memref<1024x1xf32, #tpu.memory_space<vmem>>, vector<1024x1xf32>
    %12 = vector.broadcast %11 : vector<1024x1xf32> to vector<1024x256xf32>
    %13 = arith.mulf %10, %12 : vector<1024x256xf32>
    %cst_9 = arith.constant dense<0.000000e+00> : vector<256xf32>
    %14 = vector.multi_reduction <add>, %13, %cst_9 [0] : vector<1024x256xf32> to vector<256xf32>
    %15 = vector.shape_cast %14 : vector<256xf32> to vector<1x256xf32>
    %c0_10 = arith.constant 0 : index
    %c0_11 = arith.constant 0 : index
    %16 = memref.load %arg5[%c0_10, %c0_11] : memref<1x1xf32, #tpu.memory_space<smem>>
    %17 = vector.broadcast %16 : f32 to vector<1x256xf32>
    %18 = arith.addf %15, %17 : vector<1x256xf32>
    %c0_12 = arith.constant 0 : index
    %c0_13 = arith.constant 0 : index
    %19 = vector.load %arg6[%c0_12, %c0_13] : memref<1x256xf32, #tpu.memory_space<vmem>>, vector<1x256xf32>
    tpu.vector_store %arg6[%c0_12, %c0_13], %18 {strides = array<i32>} : memref<1x256xf32, #tpu.memory_space<vmem>>, vector<1x256xf32>,
    return
  }
  func.func @transform_0(%arg0: i32) -> (i32, i32) {
    %c0_i32 = arith.constant 0 : i32
    %c0_i32_0 = arith.constant 0 : i32
    return %c0_i32, %arg0 : i32, i32
  }
  func.func @transform_1(%arg0: i32) -> (i32, i32) {
    %c0_i32 = arith.constant 0 : i32
    %c0_i32_0 = arith.constant 0 : i32
    %c0_i32_1 = arith.constant 0 : i32
    return %c0_i32, %c0_i32_0 : i32, i32
  }
  func.func @transform_2(%arg0: i32) -> (i32, i32) {
    %c0_i32 = arith.constant 0 : i32
    %c0_i32_0 = arith.constant 0 : i32
    %c0_i32_1 = arith.constant 0 : i32
    return %c0_i32, %c0_i32_0 : i32, i32
  }
  func.func @transform_3(%arg0: i32) -> (i32, i32) {
    %c0_i32 = arith.constant 0 : i32
    %c0_i32_0 = arith.constant 0 : i32
    %c0_i32_1 = arith.constant 0 : i32
    return %c0_i32, %c0_i32_0 : i32, i32
  }
  func.func @transform_4(%arg0: i32) -> (i32, i32) {
    %c0_i32 = arith.constant 0 : i32
    %c0_i32_0 = arith.constant 0 : i32
    %c0_i32_1 = arith.constant 0 : i32
    return %c0_i32, %c0_i32_0 : i32, i32
  }
  func.func @transform_5(%arg0: i32) -> (i32, i32) {
    %c0_i32 = arith.constant 0 : i32
    %c0_i32_0 = arith.constant 0 : i32
    return %c0_i32, %arg0 : i32, i32
  }
}

</mosaic_0001>

<bundles_post_ra>
// kernel: discriminator_y.1
= control target key start
LH: loop header
LB: loop body
LE: loop exit
PB: predicated region body
PF: predicated region fallthrough
CT: control target
= control target key end

     0   :  { %v4666_v0 = vmov 0   ;;  %vm1262_vm0 = vcmask 261120   ;;  %s8170_s2 = inlined_call_operand.vmem [shape: f32[1024,1], index: 2, kind: input, shape index: {}]   ;;  %s8171_s0 = inlined_call_operand.vmem [shape: bf16[32,256], index: 0, kind: input, shape index: {}]   ;;  %s8172_s1 = inlined_call_operand.vmem [shape: bf16[1024,32], index: 1, kind: input, shape index: {}]   ;;  %s8173_s3 = inlined_call_operand.vmem [shape: f32[1024,1], index: 3, kind: input, shape index: {}]   ;;  %s8174_s4 = inlined_call_operand.<no memory space> [shape: f32[1,1], index: 4, kind: input, shape index: {}]   ;;  %s8175_s5 = inlined_call_operand.vmem [shape: f32[1,256], index: 5, kind: output, shape index: {}]  }
   0x1   :  { %4665 = vset.pattern.permute.xlu2 %v4666_v0  ;;  %4664 = vset.pattern.permute.xlu1 %v4666_v0  ;;  %v158_v1 = vld [vmem:[%s8170_s2 + $0x20] sm:$0xff]  ;;  %v156_v2 = vld [vmem:[%s8170_s2 + $0x10] sm:$0xff]  ;;  %v4657_v5 = vld [vmem:[%s8171_s0 + $0x14] sm:$0xf0] }
   0x2   :  { %v154_v3 = vld [vmem:[%s8170_s2] sm:$0xff]  ;;  %4663 = vset.pattern.permute.xlu0 %v4666_v0  ;;  %304 = vperm.xlu2 %4665, %v158_v1   ;;  %v4456_v4 = vld [vmem:[%s8171_s0 + $0x10] sm:$0xf]  ;;  %v4656_v6 = vld [vmem:[%s8171_s0 + $0x14] sm:$0xf] }
   0x3   :  { %294 = vperm.xlu1 %4664, %v156_v2   ;;  %284 = vperm.xlu0 %4663, %v154_v3   ;;  %v4457_v7 = vor.u32 %v4657_v5, %v4456_v4  ;;  %v4458_v8 = vld [vmem:[%s8171_s0 + $0x18] sm:$0xf0]  ;;  %v4448_v9 = vld [vmem:[%s8171_s0] sm:$0xf]  ;;  %v4655_v10 = vld [vmem:[%s8171_s0 + $0x4] sm:$0xf0] }
   0x4   :  { %v4461_v11 = vor.u32 %v4656_v6, %v4458_v8  ;;  %v4654_v12 = vld [vmem:[%s8171_s0 + $0x4] sm:$0xf]  ;;  %v4450_v13 = vld [vmem:[%s8171_s0 + $0x8] sm:$0xf0]  ;;  %v4449_v14 = vor.u32 %v4655_v10, %v4448_v9  ;;  %v157_v17 = vld [vmem:[%s8170_s2 + $0x18] sm:$0xff] }
   0x5   :  { %1461 = vmatpush.bf16.msra.mxu0 %v4457_v7  ;;  %4658 = vmatpush.bf16.msra.mxu2 %v4457_v7  ;;  %v4453_v15 = vor.u32 %v4654_v12, %v4450_v13  ;;  %v159_v16 = vld [vmem:[%s8170_s2 + $0x28] sm:$0xff]  ;;  %v4590_v18 = vld [vmem:[%s8172_s1] sm:$0xff]  ;;  %v161_v22 = vld [vmem:[%s8170_s2 + $0x38] sm:$0xff] }
   0x6   :  { %1790 = vmatpush.bf16.msra.mxu1 %v4461_v11  ;;  %4660 = vmatpush.bf16.msra.mxu3 %v4461_v11  ;;  %v155_v19 = vld [vmem:[%s8170_s2 + $0x8] sm:$0xff]  ;;  %v4622_v20 = vld [vmem:[%s8172_s1 + $0x100] sm:$0xff]  ;;  %v160_v23 = vld [vmem:[%s8170_s2 + $0x30] sm:$0xff] }
   0x7   :  { %v162_v21 = vld [vmem:[%s8170_s2 + $0x40] sm:$0xff]  ;;  %v165_v24 = vld [vmem:[%s8170_s2 + $0x58] sm:$0xff]  ;;  %v164_v25 = vld [vmem:[%s8170_s2 + $0x50] sm:$0xff] }
   0x8   :  { %v4591_v26 = vld [vmem:[%s8172_s1 + $0x8] sm:$0xff]  ;;  %v168_v29 = vld [vmem:[%s8170_s2 + $0x70] sm:$0xff]  ;;  %v166_v31 = vld [vmem:[%s8170_s2 + $0x60] sm:$0xff] }
   0x9   :  { %1462 = vmatpush.bf16.msra.mxu0 %v4449_v14  ;;  %4659 = vmatpush.bf16.msra.mxu2 %v4449_v14  ;;  %v163_v27 = vld [vmem:[%s8170_s2 + $0x48] sm:$0xff]  ;;  %v170_v33 = vld [vmem:[%s8170_s2 + $0x80] sm:$0xff]  ;;  %v4592_v34 = vld [vmem:[%s8172_s1 + $0x10] sm:$0xff] }
   0xa   :  { %1791 = vmatpush.bf16.msra.mxu1 %v4453_v15  ;;  %4661 = vmatpush.bf16.msra.mxu3 %v4453_v15  ;;  %v4623_v28 = vld [vmem:[%s8172_s1 + $0x108] sm:$0xff]  ;;  %v169_v35 = vld [vmem:[%s8170_s2 + $0x78] sm:$0xff]  ;;  %v4624_v36 = vld [vmem:[%s8172_s1 + $0x110] sm:$0xff] }
   0xb   :  { %309 = vperm.xlu2 %4665, %v159_v16   ;;  %299 = vperm.xlu1 %4664, %v157_v17   ;;  %v167_v30 = vld [vmem:[%s8170_s2 + $0x68] sm:$0xff]  ;;  %v174_v37 = vld [vmem:[%s8170_s2 + $0xa0] sm:$0xff]  ;;  %v173_v38 = vld [vmem:[%s8170_s2 + $0x98] sm:$0xff] }
   0xc   :  { %289 = vperm.xlu0 %4663, %v155_v19   ;;  %4462 = vmatmul.msk.bf16.vlgmr.msra.gmra.mxu0 %vm1262_vm0, %v4590_v18  ;;  %v171_v32 = vld [vmem:[%s8170_s2 + $0x88] sm:$0xff]  ;;  %v172_v39 = vld [vmem:[%s8170_s2 + $0x90] sm:$0xff]  ;;  %v177_v40 = vld [vmem:[%s8170_s2 + $0xb8] sm:$0xff] }
   0xd   :  { %4494 = vmatmul.msk.bf16.vlgmr.msra.gmra.mxu2 %vm1262_vm0, %v4622_v20  ;;  %4526 = vmatmul.msk.bf16.vlgmr.msra.gmra.mxu1 %vm1262_vm0, %v4590_v18  ;;  %v176_v41 = vld [vmem:[%s8170_s2 + $0xb0] sm:$0xff]  ;;  %v4593_v42 = vld [vmem:[%s8172_s1 + $0x18] sm:$0xff]  ;;  %v175_v43 = vld [vmem:[%s8170_s2 + $0xa8] sm:$0xff] }
   0xe   :  { %4558 = vmatmul.msk.bf16.vlgmr.msra.gmra.mxu3 %vm1262_vm0, %v4622_v20  ;;  %v4625_v44 = vld [vmem:[%s8172_s1 + $0x118] sm:$0xff]  ;;  %v180_v45 = vld [vmem:[%s8170_s2 + $0xd0] sm:$0xff]  ;;  %v179_v46 = vld [vmem:[%s8170_s2 + $0xc8] sm:$0xff] }
   0xf   :  { %v178_v47 = vld [vmem:[%s8170_s2 + $0xc0] sm:$0xff]  ;;  %v183_v48 = vld [vmem:[%s8170_s2 + $0xe8] sm:$0xff]  ;;  %v181_v51 = vld [vmem:[%s8170_s2 + $0xd8] sm:$0xff] }
  0x10   :  { %v182_v49 = vld [vmem:[%s8170_s2 + $0xe0] sm:$0xff]  ;;  %v185_v54 = vld [vmem:[%s8170_s2 + $0xf8] sm:$0xff]  ;;  %v184_v55 = vld [vmem:[%s8170_s2 + $0xf0] sm:$0xff] }
  0x11   :  { %v4594_v50 = vld [vmem:[%s8172_s1 + $0x20] sm:$0xff]  ;;  %v189_v56 = vld [vmem:[%s8170_s2 + $0x118] sm:$0xff]  ;;  %v188_v57 = vld [vmem:[%s8170_s2 + $0x110] sm:$0xff] }
  0x12   :  { %v4626_v52 = vld [vmem:[%s8172_s1 + $0x120] sm:$0xff]  ;;  %v4595_v58 = vld [vmem:[%s8172_s1 + $0x28] sm:$0xff]  ;;  %v192_v62 = vld [vmem:[%s8170_s2 + $0x130] sm:$0xff] }
  0x13   :  { %324 = vperm.xlu2 %4665, %v162_v21   ;;  %319 = vperm.xlu1 %4664, %v161_v22   ;;  %v186_v53 = vld [vmem:[%s8170_s2 + $0x100] sm:$0xff]  ;;  %v187_v59 = vld [vmem:[%s8170_s2 + $0x108] sm:$0xff]  ;;  %v4596_v4 = vld [vmem:[%s8172_s1 + $0x30] sm:$0xff] }
  0x14   :  { %314 = vperm.xlu0 %4663, %v160_v23   ;;  %v4627_v60 = vld [vmem:[%s8172_s1 + $0x128] sm:$0xff]  ;;  %v190_v0 = vld [vmem:[%s8170_s2 + $0x120] sm:$0xff]  ;;  %v193_v5 = vld [vmem:[%s8170_s2 + $0x138] sm:$0xff] }
  0x15   :  { %v191_v63 = vld [vmem:[%s8170_s2 + $0x128] sm:$0xff]  ;;  %v194_v3 = vld [vmem:[%s8170_s2 + $0x140] sm:$0xff]  ;;  %v4628_v6 = vld [vmem:[%s8172_s1 + $0x130] sm:$0xff] }
  0x16   :  { %v195_v2 = vld [vmem:[%s8170_s2 + $0x148] sm:$0xff]  ;;  %v198_v8 = vld [vmem:[%s8170_s2 + $0x160] sm:$0xff]  ;;  %v197_v9 = vld [vmem:[%s8170_s2 + $0x158] sm:$0xff] }
  0x17   :  { %v196_v10 = vld [vmem:[%s8170_s2 + $0x150] sm:$0xff]  ;;  %v201_v14 = vld [vmem:[%s8170_s2 + $0x178] sm:$0xff]  ;;  %v199_v17 = vld [vmem:[%s8170_s2 + $0x168] sm:$0xff] }
  0x18   :  { %v200_v15 = vld [vmem:[%s8170_s2 + $0x170] sm:$0xff]  ;;  %v4597_v16 = vld [vmem:[%s8172_s1 + $0x38] sm:$0xff]  ;;  %v203_v23 = vld [vmem:[%s8170_s2 + $0x188] sm:$0xff] }
  0x19   :  { %v4629_v18 = vld [vmem:[%s8172_s1 + $0x138] sm:$0xff]  ;;  %v204_v22 = vld [vmem:[%s8170_s2 + $0x190] sm:$0xff] }
  0x1b   :  { %339 = vperm.xlu2 %4665, %v165_v24   ;;  %334 = vperm.xlu1 %4664, %v164_v25   ;;  %v202_v24 = vld [vmem:[%s8170_s2 + $0x180] sm:$0xff] }
  0x1c   :  { %329 = vperm.xlu0 %4663, %v163_v27   ;;  %4463 = vmatmul.msk.bf16.gmra.mxu0 %vm1262_vm0, %v4591_v26 }
  0x1d   :  { %4495 = vmatmul.msk.bf16.gmra.mxu2 %vm1262_vm0, %v4623_v28  ;;  %4527 = vmatmul.msk.bf16.gmra.mxu1 %vm1262_vm0, %v4591_v26 }
  0x1e   :  { %4559 = vmatmul.msk.bf16.gmra.mxu3 %vm1262_vm0, %v4623_v28  ;;  %v207_v28 = vld [vmem:[%s8170_s2 + $0x1a8] sm:$0xff] }
  0x23   :  { %354 = vperm.xlu2 %4665, %v168_v29   ;;  %349 = vperm.xlu1 %4664, %v167_v30   ;;  %v206_v29 = vld [vmem:[%s8170_s2 + $0x1a0] sm:$0xff] }
  0x24   :  { %344 = vperm.xlu0 %4663, %v166_v31   ;;  %v4598_v30 = vld [vmem:[%s8172_s1 + $0x40] sm:$0xff] }
  0x2b   :  { %369 = vperm.xlu2 %4665, %v171_v32   ;;  %364 = vperm.xlu1 %4664, %v170_v33   ;;  %v205_v32 = vld [vmem:[%s8170_s2 + $0x198] sm:$0xff]  ;;  %v4630_v33 = vld [vmem:[%s8172_s1 + $0x140] sm:$0xff] }
  0x2c   :  { %359 = vperm.xlu0 %4663, %v169_v35   ;;  %4464 = vmatmul.msk.bf16.gmra.mxu0 %vm1262_vm0, %v4592_v34 }
  0x2d   :  { %4496 = vmatmul.msk.bf16.gmra.mxu2 %vm1262_vm0, %v4624_v36  ;;  %4528 = vmatmul.msk.bf16.gmra.mxu1 %vm1262_vm0, %v4592_v34 }
  0x2e   :  { %4560 = vmatmul.msk.bf16.gmra.mxu3 %vm1262_vm0, %v4624_v36 }
  0x33   :  { %384 = vperm.xlu2 %4665, %v174_v37   ;;  %379 = vperm.xlu1 %4664, %v173_v38  }
  0x34   :  { %374 = vperm.xlu0 %4663, %v172_v39   ;;  %v210_v39 = vld [vmem:[%s8170_s2 + $0x1c0] sm:$0xff] }
  0x3b   :  { %399 = vperm.xlu2 %4665, %v177_v40   ;;  %394 = vperm.xlu1 %4664, %v176_v41   ;;  %v209_v40 = vld [vmem:[%s8170_s2 + $0x1b8] sm:$0xff] }
  0x3c   :  { %389 = vperm.xlu0 %4663, %v175_v43   ;;  %4465 = vmatmul.msk.bf16.gmra.mxu0 %vm1262_vm0, %v4593_v42  ;;  %v208_v43 = vld [vmem:[%s8170_s2 + $0x1b0] sm:$0xff] }
  0x3d   :  { %4497 = vmatmul.msk.bf16.gmra.mxu2 %vm1262_vm0, %v4625_v44  ;;  %4529 = vmatmul.msk.bf16.gmra.mxu1 %vm1262_vm0, %v4593_v42 }
  0x3e   :  { %4561 = vmatmul.msk.bf16.gmra.mxu3 %vm1262_vm0, %v4625_v44 }
  0x43   :  { %414 = vperm.xlu2 %4665, %v180_v45   ;;  %409 = vperm.xlu1 %4664, %v179_v46  }
  0x44   :  { %404 = vperm.xlu0 %4663, %v178_v47  }
  0x4b   :  { %429 = vperm.xlu2 %4665, %v183_v48   ;;  %424 = vperm.xlu1 %4664, %v182_v49   ;;  %v213_v49 = vld [vmem:[%s8170_s2 + $0x1d8] sm:$0xff] }
  0x4c   :  { %419 = vperm.xlu0 %4663, %v181_v51   ;;  %4466 = vmatmul.msk.bf16.gmra.mxu0 %vm1262_vm0, %v4594_v50  ;;  %v4599_v51 = vld [vmem:[%s8172_s1 + $0x48] sm:$0xff] }
  0x4d   :  { %4498 = vmatmul.msk.bf16.gmra.mxu2 %vm1262_vm0, %v4626_v52  ;;  %4530 = vmatmul.msk.bf16.gmra.mxu1 %vm1262_vm0, %v4594_v50  ;;  %v212_v50 = vld [vmem:[%s8170_s2 + $0x1d0] sm:$0xff] }
  0x4e   :  { %4562 = vmatmul.msk.bf16.gmra.mxu3 %vm1262_vm0, %v4626_v52 }
  0x53   :  { %444 = vperm.xlu2 %4665, %v186_v53   ;;  %439 = vperm.xlu1 %4664, %v185_v54   ;;  %v211_v54 = vld [vmem:[%s8170_s2 + $0x1c8] sm:$0xff] }
  0x54   :  { %434 = vperm.xlu0 %4663, %v184_v55   ;;  %v4631_v55 = vld [vmem:[%s8172_s1 + $0x148] sm:$0xff] }
  0x5b   :  { %459 = vperm.xlu2 %4665, %v189_v56   ;;  %454 = vperm.xlu1 %4664, %v188_v57  }
  0x5c   :  { %449 = vperm.xlu0 %4663, %v187_v59   ;;  %4467 = vmatmul.msk.bf16.gmra.mxu0 %vm1262_vm0, %v4595_v58  ;;  %v4886_v61 = vpop.permute.xlu2 %304 }
  0x5d   :  { %4499 = vmatmul.msk.bf16.gmra.mxu2 %vm1262_vm0, %v4627_v60  ;;  %4531 = vmatmul.msk.bf16.gmra.mxu1 %vm1262_vm0, %v4595_v58 }
  0x5e   :  { %4563 = vmatmul.msk.bf16.gmra.mxu3 %vm1262_vm0, %v4627_v60 }
  0x63   :  { %474 = vperm.xlu2 %4665, %v192_v62   ;;  %469 = vperm.xlu1 %4664, %v191_v63   ;;  %v216_v62 = vld [vmem:[%s8170_s2 + $0x1f0] sm:$0xff]  ;;  %v215_v63 = vld [vmem:[%s8170_s2 + $0x1e8] sm:$0xff] }
  0x64   :  { %464 = vperm.xlu0 %4663, %v190_v0  }
  0x65   :  { %v4900_v1 = vpop.permute.xlu2 %309 }
  0x6b   :  { %489 = vperm.xlu2 %4665, %v195_v2   ;;  %484 = vperm.xlu1 %4664, %v194_v3   ;;  %v214_v3 = vld [vmem:[%s8170_s2 + $0x1e0] sm:$0xff] }
  0x6c   :  { %479 = vperm.xlu0 %4663, %v193_v5   ;;  %4468 = vmatmul.msk.bf16.gmra.mxu0 %vm1262_vm0, %v4596_v4 }
  0x6d   :  { %4500 = vmatmul.msk.bf16.gmra.mxu2 %vm1262_vm0, %v4628_v6  ;;  %4532 = vmatmul.msk.bf16.gmra.mxu1 %vm1262_vm0, %v4596_v4  ;;  %v4920_v7 = vpop.permute.xlu2 %324 }
  0x6e   :  { %4564 = vmatmul.msk.bf16.gmra.mxu3 %vm1262_vm0, %v4628_v6 }
  0x73   :  { %504 = vperm.xlu2 %4665, %v198_v8   ;;  %499 = vperm.xlu1 %4664, %v197_v9  }
  0x74   :  { %494 = vperm.xlu0 %4663, %v196_v10   ;;  %v219_v10 = vld [vmem:[%s8170_s2 + $0x208] sm:$0xff] }
  0x75   :  { %v4932_v11 = vpop.permute.xlu2 %339  ;;  %v4934_v12 = vpop.permute.xlu1 %294 }
  0x76   :  { %v4936_v13 = vpop.permute.xlu0 %284 }
  0x7b   :  { %519 = vperm.xlu2 %4665, %v201_v14   ;;  %514 = vperm.xlu1 %4664, %v200_v15   ;;  %v218_v14 = vld [vmem:[%s8170_s2 + $0x200] sm:$0xff]  ;;  %v4600_v15 = vld [vmem:[%s8172_s1 + $0x50] sm:$0xff] }
  0x7c   :  { %509 = vperm.xlu0 %4663, %v199_v17   ;;  %4469 = vmatmul.msk.bf16.gmra.mxu0 %vm1262_vm0, %v4597_v16 }
  0x7d   :  { %4501 = vmatmul.msk.bf16.gmra.mxu2 %vm1262_vm0, %v4629_v18  ;;  %4533 = vmatmul.msk.bf16.gmra.mxu1 %vm1262_vm0, %v4597_v16  ;;  %v4956_v19 = vpop.permute.xlu2 %354  ;;  %v4958_v20 = vpop.permute.xlu1 %299 }
  0x7e   :  { %4565 = vmatmul.msk.bf16.gmra.mxu3 %vm1262_vm0, %v4629_v18  ;;  %v4961_v21 = vpop.permute.xlu0 %289  ;;  %v217_v18 = vld [vmem:[%s8170_s2 + $0x1f8] sm:$0xff] }
  0x83   :  { %534 = vperm.xlu2 %4665, %v204_v22   ;;  %529 = vperm.xlu1 %4664, %v203_v23   ;;  %v4632_v22 = vld [vmem:[%s8172_s1 + $0x150] sm:$0xff] }
  0x84   :  { %524 = vperm.xlu0 %4663, %v202_v24  }
  0x85   :  { %v4972_v25 = vpop.permute.xlu2 %369  ;;  %v4974_v26 = vpop.permute.xlu1 %319 }
  0x86   :  { %8293 = vst [vmem:[#allocation3_spill] sm:$0xff] %v4972_v25  ;;  %v4976_v27 = vpop.permute.xlu0 %314 }
  0x89   :  { %v4987_v31 = vpop.f32.mrf.mxu0 }
  0x8a   :  { %v4995_v34 = vpop.f32.mrf.mxu1 }
  0x8b   :  { %549 = vperm.xlu2 %4665, %v207_v28   ;;  %544 = vperm.xlu1 %4664, %v206_v29  }
  0x8c   :  { %539 = vperm.xlu0 %4663, %v205_v32   ;;  %4470 = vmatmul.msk.bf16.gmra.mxu0 %vm1262_vm0, %v4598_v30  ;;  %v222_v32 = vld [vmem:[%s8170_s2 + $0x220] sm:$0xff] }
  0x8d   :  { %4502 = vmatmul.msk.bf16.gmra.mxu2 %vm1262_vm0, %v4630_v33  ;;  %4534 = vmatmul.msk.bf16.gmra.mxu1 %vm1262_vm0, %v4598_v30  ;;  %v5000_v35 = vpop.permute.xlu2 %384  ;;  %v5002_v36 = vpop.permute.xlu1 %334 }
  0x8e   :  { %8294 = vst [vmem:[#allocation4_spill] sm:$0xff] %v5000_v35  ;;  %4566 = vmatmul.msk.bf16.gmra.mxu3 %vm1262_vm0, %v4630_v33  ;;  %v5005_v37 = vpop.permute.xlu0 %329  ;;  %v221_v33 = vld [vmem:[%s8170_s2 + $0x218] sm:$0xff] }
  0x90   :  { %v5007_v38 = vpop.f32.mrf.mxu2 }
  0x91   :  { %8295 = vst [vmem:[#allocation5_spill] sm:$0xff] %v5007_v38  ;;  %v5015_v41 = vpop.f32.mrf.mxu3  ;;  %v5017_v42 = vpop.f32.mrf.mxu0 }
  0x92   :  { %8296 = vst [vmem:[#allocation6_spill] sm:$0xff] %v5015_v41  ;;  %v5022_v44 = vpop.f32.mrf.mxu1 }
  0x93   :  { %564 = vperm.xlu2 %4665, %v210_v39   ;;  %559 = vperm.xlu1 %4664, %v209_v40  }
  0x94   :  { %554 = vperm.xlu0 %4663, %v208_v43   ;;  %v220_v43 = vld [vmem:[%s8170_s2 + $0x210] sm:$0xff] }
  0x95   :  { %v5024_v45 = vpop.permute.xlu2 %399  ;;  %v5026_v46 = vpop.permute.xlu1 %349 }
  0x96   :  { %8297 = vst [vmem:[#allocation7_spill] sm:$0xff] %v5024_v45  ;;  %v5028_v47 = vpop.permute.xlu0 %344  ;;  %v230_v45 = vld [vmem:[%s8170_s2 + $0x260] sm:$0xff] }
  0x98   :  { %v5030_v48 = vpop.f32.mrf.mxu2 }
  0x99   :  { %v5041_v52 = vpop.f32.mrf.mxu3  ;;  %v5043_v53 = vpop.f32.mrf.mxu0 }
  0x9a   :  { %v5051_v56 = vpop.f32.mrf.mxu1 }
  0x9b   :  { %579 = vperm.xlu2 %4665, %v213_v49   ;;  %574 = vperm.xlu1 %4664, %v212_v50  }
  0x9c   :  { %569 = vperm.xlu0 %4663, %v211_v54   ;;  %4471 = vmatmul.msk.bf16.gmra.mxu0 %vm1262_vm0, %v4599_v51 }
  0x9d   :  { %4503 = vmatmul.msk.bf16.gmra.mxu2 %vm1262_vm0, %v4631_v55  ;;  %4535 = vmatmul.msk.bf16.gmra.mxu1 %vm1262_vm0, %v4599_v51  ;;  %v5056_v57 = vpop.permute.xlu2 %414  ;;  %v5058_v58 = vpop.permute.xlu1 %364 }
  0x9e   :  { %8298 = vst [vmem:[#allocation8_spill] sm:$0xff] %v5056_v57  ;;  %4567 = vmatmul.msk.bf16.gmra.mxu3 %vm1262_vm0, %v4631_v55  ;;  %v5061_v59 = vpop.permute.xlu0 %359 }
  0x9f   :  { %8299 = vst [vmem:[#allocation9_spill] sm:$0xff] %v5058_v58 }
  0xa0   :  { %v5063_v60 = vpop.f32.mrf.mxu2 }
  0xa1   :  { %8300 = vst [vmem:[#allocation10_spill] sm:$0xff] %v5063_v60  ;;  %v5071_v0 = vpop.f32.mrf.mxu3  ;;  %v5073_v2 = vpop.f32.mrf.mxu0  ;;  %v243_v60 = vld [vmem:[%s8170_s2 + $0x2c8] sm:$0xff] }
  0xa2   :  { %8301 = vst [vmem:[#allocation11_spill] sm:$0xff] %v5071_v0  ;;  %v5078_v4 = vpop.f32.mrf.mxu1 }
  0xa3   :  { %594 = vperm.xlu2 %4665, %v216_v62   ;;  %589 = vperm.xlu1 %4664, %v215_v63   ;;  %v225_v62 = vld [vmem:[%s8170_s2 + $0x238] sm:$0xff]  ;;  %v224_v63 = vld [vmem:[%s8170_s2 + $0x230] sm:$0xff] }
  0xa4   :  { %584 = vperm.xlu0 %4663, %v214_v3   ;;  %v4601_v3 = vld [vmem:[%s8172_s1 + $0x58] sm:$0xff] }
  0xa5   :  { %v5080_v5 = vpop.permute.xlu2 %429  ;;  %v5082_v6 = vpop.permute.xlu1 %379 }
  0xa6   :  { %8302 = vst [vmem:[#allocation12_spill] sm:$0xff] %v5080_v5  ;;  %v5084_v8 = vpop.permute.xlu0 %374 }
  0xa7   :  { %8303 = vst [vmem:[#allocation13_spill] sm:$0xff] %v5082_v6 }
  0xa8   :  { %8304 = vst [vmem:[#allocation14_spill] sm:$0xff] %v5084_v8  ;;  %v5086_v9 = vpop.f32.mrf.mxu2 }
  0xa9   :  { %8305 = vst [vmem:[#allocation15_spill] sm:$0xff] %v5086_v9  ;;  %v5097_v16 = vpop.f32.mrf.mxu3  ;;  %v5099_v17 = vpop.f32.mrf.mxu0 }
  0xaa   :  { %8306 = vst [vmem:[#allocation16_spill] sm:$0xff] %v5097_v16  ;;  %v5107_v23 = vpop.f32.mrf.mxu1  ;;  %v242_v16 = vld [vmem:[%s8170_s2 + $0x2c0] sm:$0xff] }
  0xab   :  { %609 = vperm.xlu2 %4665, %v219_v10   ;;  %604 = vperm.xlu1 %4664, %v218_v14  }
  0xac   :  { %599 = vperm.xlu0 %4663, %v217_v18   ;;  %4472 = vmatmul.msk.bf16.gmra.mxu0 %vm1262_vm0, %v4600_v15  ;;  %v4633_v18 = vld [vmem:[%s8172_s1 + $0x158] sm:$0xff] }
  0xad   :  { %4504 = vmatmul.msk.bf16.gmra.mxu2 %vm1262_vm0, %v4632_v22  ;;  %4536 = vmatmul.msk.bf16.gmra.mxu1 %vm1262_vm0, %v4600_v15  ;;  %v5112_v24 = vpop.permute.xlu2 %444  ;;  %v5114_v28 = vpop.permute.xlu1 %394  ;;  %v223_v15 = vld [vmem:[%s8170_s2 + $0x228] sm:$0xff] }
  0xae   :  { %8307 = vst [vmem:[#allocation17_spill] sm:$0xff] %v5112_v24  ;;  %4568 = vmatmul.msk.bf16.gmra.mxu3 %vm1262_vm0, %v4632_v22  ;;  %v5117_v29 = vpop.permute.xlu0 %389 }
  0xaf   :  { %8308 = vst [vmem:[#allocation18_spill] sm:$0xff] %v5114_v28 }
  0xb0   :  { %8309 = vst [vmem:[#allocation19_spill] sm:$0xff] %v5117_v29  ;;  %v5119_v30 = vpop.f32.mrf.mxu2 }
  0xb1   :  { %8310 = vst [vmem:[#allocation20_spill] sm:$0xff] %v5119_v30  ;;  %v5127_v39 = vpop.f32.mrf.mxu3  ;;  %v5129_v40 = vpop.f32.mrf.mxu0 }
  0xb2   :  { %8311 = vst [vmem:[#allocation21_spill] sm:$0xff] %v5127_v39  ;;  %v5134_v49 = vpop.f32.mrf.mxu1 }
  0xb3   :  { %624 = vperm.xlu2 %4665, %v222_v32   ;;  %619 = vperm.xlu1 %4664, %v221_v33  }
  0xb4   :  { %614 = vperm.xlu0 %4663, %v220_v43  }
  0xb5   :  { %v5136_v50 = vpop.permute.xlu2 %459  ;;  %v5138_v51 = vpop.permute.xlu1 %409 }
  0xb6   :  { %8312 = vst [vmem:[#allocation22_spill] sm:$0xff] %v5136_v50  ;;  %v5140_v54 = vpop.permute.xlu0 %404 }
  0xb7   :  { %8313 = vst [vmem:[#allocation23_spill] sm:$0xff] %v5138_v51  ;;  %v231_v51 = vld [vmem:[%s8170_s2 + $0x268] sm:$0xff] }
  0xb8   :  { %8314 = vst [vmem:[#allocation24_spill] sm:$0xff] %v5140_v54  ;;  %v5142_v55 = vpop.f32.mrf.mxu2 }
  0xb9   :  { %8315 = vst [vmem:[#allocation25_spill] sm:$0xff] %v5142_v55  ;;  %v5153_v10 = vpop.f32.mrf.mxu3  ;;  %v5155_v14 = vpop.f32.mrf.mxu0 }
  0xba   :  { %8316 = vst [vmem:[#allocation26_spill] sm:$0xff] %v5153_v10  ;;  %v5163_v22 = vpop.f32.mrf.mxu1 }
  0xbb   :  { %639 = vperm.xlu2 %4665, %v225_v62   ;;  %634 = vperm.xlu1 %4664, %v224_v63   ;;  %v228_v62 = vld [vmem:[%s8170_s2 + $0x250] sm:$0xff]  ;;  %v227_v63 = vld [vmem:[%s8170_s2 + $0x248] sm:$0xff] }
  0xbc   :  { %629 = vperm.xlu0 %4663, %v223_v15   ;;  %4473 = vmatmul.msk.bf16.gmra.mxu0 %vm1262_vm0, %v4601_v3 }
  0xbd   :  { %4505 = vmatmul.msk.bf16.gmra.mxu2 %vm1262_vm0, %v4633_v18  ;;  %4537 = vmatmul.msk.bf16.gmra.mxu1 %vm1262_vm0, %v4601_v3  ;;  %v5168_v32 = vpop.permute.xlu2 %474  ;;  %v5170_v33 = vpop.permute.xlu1 %424 }
  0xbe   :  { %8317 = vst [vmem:[#allocation27_spill] sm:$0xff] %v5168_v32  ;;  %4569 = vmatmul.msk.bf16.gmra.mxu3 %vm1262_vm0, %v4633_v18  ;;  %v5173_v43 = vpop.permute.xlu0 %419  ;;  %v226_v18 = vld [vmem:[%s8170_s2 + $0x240] sm:$0xff] }
  0xbf   :  { %8318 = vst [vmem:[#allocation28_spill] sm:$0xff] %v5170_v33 }
  0xc0   :  { %8319 = vst [vmem:[#allocation29_spill] sm:$0xff] %v5173_v43  ;;  %v5175_v50 = vpop.f32.mrf.mxu2 }
  0xc1   :  { %8320 = vst [vmem:[#allocation30_spill] sm:$0xff] %v5175_v50  ;;  %v5183_v15 = vpop.f32.mrf.mxu3  ;;  %v5185_v3 = vpop.f32.mrf.mxu0  ;;  %v236_v50 = vld [vmem:[%s8170_s2 + $0x290] sm:$0xff] }
  0xc2   :  { %8321 = vst [vmem:[#allocation31_spill] sm:$0xff] %v5183_v15  ;;  %v5190_v32 = vpop.f32.mrf.mxu1 }
  0xc3   :  { %654 = vperm.xlu2 %4665, %v228_v62   ;;  %649 = vperm.xlu1 %4664, %v227_v63   ;;  %v4602_v62 = vld [vmem:[%s8172_s1 + $0x60] sm:$0xff] }
  0xc4   :  { %644 = vperm.xlu0 %4663, %v226_v18  }
  0xc5   :  { %v5192_v24 = vpop.permute.xlu2 %489  ;;  %v5194_v5 = vpop.permute.xlu1 %439 }
  0xc6   :  { %8322 = vst [vmem:[#allocation32_spill] sm:$0xff] %v5192_v24  ;;  %v5196_v33 = vpop.permute.xlu0 %434  ;;  %v229_v24 = vld [vmem:[%s8170_s2 + $0x258] sm:$0xff] }
  0xc7   :  { %8323 = vst [vmem:[#allocation33_spill] sm:$0xff] %v5194_v5  ;;  %v4634_v5 = vld [vmem:[%s8172_s1 + $0x160] sm:$0xff] }
  0xc8   :  { %8324 = vst [vmem:[#allocation34_spill] sm:$0xff] %v5196_v33  ;;  %v5198_v57 = vpop.f32.mrf.mxu2 }
  0xc9   :  { %8325 = vst [vmem:[#allocation35_spill] sm:$0xff] %v5198_v57  ;;  %v5209_v63 = vpop.f32.mrf.mxu3  ;;  %v5211_v18 = vpop.f32.mrf.mxu0 }
  0xca   :  { %8326 = vst [vmem:[#allocation36_spill] sm:$0xff] %v5209_v63  ;;  %v5219_v28 = vpop.f32.mrf.mxu1  ;;  %v255_v63 = vld [vmem:[%s8170_s2 + $0x328] sm:$0xff] }
  0xcb   :  { %669 = vperm.xlu2 %4665, %v231_v51   ;;  %664 = vperm.xlu1 %4664, %v230_v45   ;;  %v234_v45 = vld [vmem:[%s8170_s2 + $0x280] sm:$0xff] }
  0xcc   :  { %659 = vperm.xlu0 %4663, %v229_v24   ;;  %4474 = vmatmul.msk.bf16.gmra.mxu0 %vm1262_vm0, %v4602_v62  ;;  %v233_v24 = vld [vmem:[%s8170_s2 + $0x278] sm:$0xff] }
  0xcd   :  { %4506 = vmatmul.msk.bf16.gmra.mxu2 %vm1262_vm0, %v4634_v5  ;;  %4538 = vmatmul.msk.bf16.gmra.mxu1 %vm1262_vm0, %v4602_v62  ;;  %v5224_v33 = vpop.permute.xlu2 %504  ;;  %v5226_v43 = vpop.permute.xlu1 %454 }
  0xce   :  { %8327 = vst [vmem:[#allocation37_spill] sm:$0xff] %v5224_v33  ;;  %4570 = vmatmul.msk.bf16.gmra.mxu3 %vm1262_vm0, %v4634_v5  ;;  %v5229_v10 = vpop.permute.xlu0 %449  ;;  %v232_v5 = vld [vmem:[%s8170_s2 + $0x270] sm:$0xff] }
  0xcf   :  { %8328 = vst [vmem:[#allocation38_spill] sm:$0xff] %v5226_v43 }
  0xd0   :  { %8329 = vst [vmem:[#allocation39_spill] sm:$0xff] %v5229_v10  ;;  %v5231_v55 = vpop.f32.mrf.mxu2 }
  0xd1   :  { %8330 = vst [vmem:[#allocation40_spill] sm:$0xff] %v5231_v55  ;;  %v5239_v51 = vpop.f32.mrf.mxu3  ;;  %v5241_v62 = vpop.f32.mrf.mxu0 }
  0xd2   :  { %8331 = vst [vmem:[#allocation41_spill] sm:$0xff] %v5239_v51  ;;  %v5246_v33 = vpop.f32.mrf.mxu1  ;;  %v237_v51 = vld [vmem:[%s8170_s2 + $0x298] sm:$0xff] }
  0xd3   :  { %684 = vperm.xlu2 %4665, %v234_v45   ;;  %679 = vperm.xlu1 %4664, %v233_v24   ;;  %v4603_v45 = vld [vmem:[%s8172_s1 + $0x68] sm:$0xff] }
  0xd4   :  { %674 = vperm.xlu0 %4663, %v232_v5  }
  0xd5   :  { %v5248_v43 = vpop.permute.xlu2 %519  ;;  %v5250_v55 = vpop.permute.xlu1 %469 }
  0xd6   :  { %8332 = vst [vmem:[#allocation42_spill] sm:$0xff] %v5248_v43  ;;  %v5252_v10 = vpop.permute.xlu0 %464  ;;  %v235_v43 = vld [vmem:[%s8170_s2 + $0x288] sm:$0xff] }
  0xd7   :  { %8333 = vst [vmem:[#allocation43_spill] sm:$0xff] %v5250_v55  ;;  %v4635_v55 = vld [vmem:[%s8172_s1 + $0x168] sm:$0xff] }
  0xd8   :  { %8334 = vst [vmem:[#allocation44_spill] sm:$0xff] %v5252_v10  ;;  %v5254_v15 = vpop.f32.mrf.mxu2 }
  0xd9   :  { %8335 = vst [vmem:[#allocation45_spill] sm:$0xff] %v5254_v15  ;;  %v5265_v24 = vpop.f32.mrf.mxu3  ;;  %v5267_v5 = vpop.f32.mrf.mxu0 }
  0xda   :  { %8336 = vst [vmem:[#allocation46_spill] sm:$0xff] %v5265_v24  ;;  %v5275_v10 = vpop.f32.mrf.mxu1 }
  0xdb   :  { %699 = vperm.xlu2 %4665, %v237_v51   ;;  %694 = vperm.xlu1 %4664, %v236_v50   ;;  %v240_v50 = vld [vmem:[%s8170_s2 + $0x2b0] sm:$0xff] }
  0xdc   :  { %689 = vperm.xlu0 %4663, %v235_v43   ;;  %4475 = vmatmul.msk.bf16.gmra.mxu0 %vm1262_vm0, %v4603_v45  ;;  %v239_v43 = vld [vmem:[%s8170_s2 + $0x2a8] sm:$0xff] }
  0xdd   :  { %4507 = vmatmul.msk.bf16.gmra.mxu2 %vm1262_vm0, %v4635_v55  ;;  %4539 = vmatmul.msk.bf16.gmra.mxu1 %vm1262_vm0, %v4603_v45  ;;  %v5280_v24 = vpop.permute.xlu2 %534  ;;  %v5282_v15 = vpop.permute.xlu1 %484 }
  0xde   :  { %8337 = vst [vmem:[#allocation47_spill] sm:$0xff] %v5280_v24  ;;  %4571 = vmatmul.msk.bf16.gmra.mxu3 %vm1262_vm0, %v4635_v55  ;;  %v5285_v54 = vpop.permute.xlu0 %479  ;;  %v238_v55 = vld [vmem:[%s8170_s2 + $0x2a0] sm:$0xff] }
  0xdf   :  { %8338 = vst [vmem:[#allocation48_spill] sm:$0xff] %v5282_v15 }
  0xe0   :  { %8339 = vst [vmem:[#allocation49_spill] sm:$0xff] %v5285_v54  ;;  %v5287_v35 = vpop.f32.mrf.mxu2 }
  0xe1   :  { %8340 = vst [vmem:[#allocation50_spill] sm:$0xff] %v5287_v35  ;;  %v5295_v51 = vpop.f32.mrf.mxu3  ;;  %v5297_v45 = vpop.f32.mrf.mxu0  ;;  %v248_v35 = vld [vmem:[%s8170_s2 + $0x2f0] sm:$0xff] }
  0xe2   :  { %8341 = vst [vmem:[#allocation51_spill] sm:$0xff] %v5295_v51  ;;  %v5302_v24 = vpop.f32.mrf.mxu1 }
  0xe3   :  { %714 = vperm.xlu2 %4665, %v240_v50   ;;  %709 = vperm.xlu1 %4664, %v239_v43   ;;  %v4604_v50 = vld [vmem:[%s8172_s1 + $0x70] sm:$0xff] }
  0xe4   :  { %704 = vperm.xlu0 %4663, %v238_v55  }
  0xe5   :  { %v5304_v15 = vpop.permute.xlu2 %549  ;;  %v5306_v54 = vpop.permute.xlu1 %499 }
  0xe6   :  { %8342 = vst [vmem:[#allocation52_spill] sm:$0xff] %v5304_v15  ;;  %v5308_v29 = vpop.permute.xlu0 %494  ;;  %v241_v15 = vld [vmem:[%s8170_s2 + $0x2b8] sm:$0xff] }
  0xe7   :  { %8343 = vst [vmem:[#allocation53_spill] sm:$0xff] %v5306_v54 }
  0xe8   :  { %8344 = vst [vmem:[#allocation54_spill] sm:$0xff] %v5308_v29  ;;  %v5310_v0 = vpop.f32.mrf.mxu2 }
  0xe9   :  { %8345 = vst [vmem:[#allocation55_spill] sm:$0xff] %v5310_v0  ;;  %v5321_v43 = vpop.f32.mrf.mxu3  ;;  %v5323_v55 = vpop.f32.mrf.mxu0  ;;  %v4636_v0 = vld [vmem:[%s8172_s1 + $0x170] sm:$0xff] }
  0xea   :  { %8346 = vst [vmem:[#allocation56_spill] sm:$0xff] %v5321_v43  ;;  %v5331_v54 = vpop.f32.mrf.mxu1 }
  0xeb   :  { %729 = vperm.xlu2 %4665, %v243_v60   ;;  %724 = vperm.xlu1 %4664, %v242_v16   ;;  %v246_v60 = vld [vmem:[%s8170_s2 + $0x2e0] sm:$0xff]  ;;  %v245_v16 = vld [vmem:[%s8170_s2 + $0x2d8] sm:$0xff] }
  0xec   :  { %719 = vperm.xlu0 %4663, %v241_v15   ;;  %4476 = vmatmul.msk.bf16.gmra.mxu0 %vm1262_vm0, %v4604_v50 }
  0xed   :  { %4508 = vmatmul.msk.bf16.gmra.mxu2 %vm1262_vm0, %v4636_v0  ;;  %4540 = vmatmul.msk.bf16.gmra.mxu1 %vm1262_vm0, %v4604_v50  ;;  %v5336_v43 = vpop.permute.xlu2 %564  ;;  %v5338_v29 = vpop.permute.xlu1 %514 }
  0xee   :  { %8347 = vst [vmem:[#allocation57_spill] sm:$0xff] %v5336_v43  ;;  %4572 = vmatmul.msk.bf16.gmra.mxu3 %vm1262_vm0, %v4636_v0  ;;  %v5341_v9 = vpop.permute.xlu0 %509  ;;  %v244_v0 = vld [vmem:[%s8170_s2 + $0x2d0] sm:$0xff] }
  0xef   :  { %8348 = vst [vmem:[#allocation58_spill] sm:$0xff] %v5338_v29 }
  0xf0   :  { %8349 = vst [vmem:[#allocation59_spill] sm:$0xff] %v5341_v9  ;;  %v5343_v6 = vpop.f32.mrf.mxu2 }
  0xf1   :  { %8350 = vst [vmem:[#allocation60_spill] sm:$0xff] %v5343_v6  ;;  %v5351_v15 = vpop.f32.mrf.mxu3  ;;  %v5353_v50 = vpop.f32.mrf.mxu0 }
  0xf2   :  { %8351 = vst [vmem:[#allocation61_spill] sm:$0xff] %v5351_v15  ;;  %v5358_v43 = vpop.f32.mrf.mxu1  ;;  %v249_v15 = vld [vmem:[%s8170_s2 + $0x2f8] sm:$0xff] }
  0xf3   :  { %744 = vperm.xlu2 %4665, %v246_v60   ;;  %739 = vperm.xlu1 %4664, %v245_v16   ;;  %v4605_v60 = vld [vmem:[%s8172_s1 + $0x78] sm:$0xff] }
  0xf4   :  { %734 = vperm.xlu0 %4663, %v244_v0   ;;  %v247_v0 = vld [vmem:[%s8170_s2 + $0x2e8] sm:$0xff] }
  0xf5   :  { %v5360_v6 = vpop.permute.xlu2 %579  ;;  %v5362_v29 = vpop.permute.xlu1 %529 }
  0xf6   :  { %8352 = vst [vmem:[#allocation62_spill] sm:$0xff] %v5360_v6  ;;  %v5364_v9 = vpop.permute.xlu0 %524  ;;  %v4637_v6 = vld [vmem:[%s8172_s1 + $0x178] sm:$0xff] }
  0xf7   :  { %8353 = vst [vmem:[#allocation63_spill] sm:$0xff] %v5362_v29 }
  0xf8   :  { %8354 = vst [vmem:[#allocation64_spill] sm:$0xff] %v5364_v9  ;;  %v5366_v51 = vpop.f32.mrf.mxu2 }
  0xf9   :  { %8355 = vst [vmem:[#allocation65_spill] sm:$0xff] %v5366_v51  ;;  %v5377_v16 = vpop.f32.mrf.mxu0  ;;  %v5385_v29 = vpop.f32.mrf.mxu3 }
  0xfa   :  { %8356 = vst [vmem:[#allocation66_spill] sm:$0xff] %v5385_v29  ;;  %v5387_v9 = vpop.f32.mrf.mxu1 }
  0xfb   :  { %759 = vperm.xlu2 %4665, %v249_v15   ;;  %754 = vperm.xlu1 %4664, %v248_v35   ;;  %v252_v15 = vld [vmem:[%s8170_s2 + $0x310] sm:$0xff]  ;;  %v251_v35 = vld [vmem:[%s8170_s2 + $0x308] sm:$0xff] }
  0xfc   :  { %749 = vperm.xlu0 %4663, %v247_v0   ;;  %4477 = vmatmul.msk.bf16.gmra.mxu0 %vm1262_vm0, %v4605_v60 }
  0xfd   :  { %4509 = vmatmul.msk.bf16.gmra.mxu2 %vm1262_vm0, %v4637_v6  ;;  %4541 = vmatmul.msk.bf16.gmra.mxu1 %vm1262_vm0, %v4605_v60  ;;  %v5392_v51 = vpop.permute.xlu2 %594  ;;  %v5394_v41 = vpop.permute.xlu1 %544  ;;  %v250_v60 = vld [vmem:[%s8170_s2 + $0x300] sm:$0xff] }
  0xfe   :  { %8357 = vst [vmem:[#allocation67_spill] sm:$0xff] %v5392_v51  ;;  %4573 = vmatmul.msk.bf16.gmra.mxu3 %vm1262_vm0, %v4637_v6  ;;  %v5397_v38 = vpop.permute.xlu0 %539 }
  0xff   :  { %8358 = vst [vmem:[#allocation68_spill] sm:$0xff] %v5394_v41 }
 0x100   :  { %8359 = vst [vmem:[#allocation69_spill] sm:$0xff] %v5397_v38  ;;  %v5410_v51 = vpop.f32.mrf.mxu2 }
 0x101   :  { %v5405_v0 = vpop.f32.mrf.mxu0  ;;  %8360 = vst [vmem:[#allocation70_spill] sm:$0xff] %v5410_v51  ;;  %v5414_v6 = vpop.f32.mrf.mxu3  ;;  %v254_v51 = vld [vmem:[%s8170_s2 + $0x320] sm:$0xff] }
 0x102   :  { %v5412_v41 = vpop.f32.mrf.mxu1  ;;  %8361 = vst [vmem:[#allocation71_spill] sm:$0xff] %v5414_v6 }
 0x103   :  { %774 = vperm.xlu2 %4665, %v252_v15   ;;  %769 = vperm.xlu1 %4664, %v251_v35   ;;  %v4606_v15 = vld [vmem:[%s8172_s1 + $0x80] sm:$0xff] }
 0x104   :  { %764 = vperm.xlu0 %4663, %v250_v60   ;;  %v253_v60 = vld [vmem:[%s8170_s2 + $0x318] sm:$0xff] }
 0x105   :  { %v5416_v38 = vpop.permute.xlu2 %609  ;;  %v5418_v29 = vpop.permute.xlu1 %559 }
 0x106   :  { %8362 = vst [vmem:[#allocation72_spill] sm:$0xff] %v5418_v29  ;;  %v5420_v8 = vpop.permute.xlu0 %554  ;;  %v4638_v29 = vld [vmem:[%s8172_s1 + $0x180] sm:$0xff] }
 0x107   :  { %8363 = vst [vmem:[#allocation73_spill] sm:$0xff] %v5420_v8 }
 0x108   :  { %v5441_v6 = vpop.f32.mrf.mxu2 }
 0x109   :  { %v5431_v35 = vpop.f32.mrf.mxu0  ;;  %8366 = vst [vmem:[#allocation76_spill] sm:$0xff] %v5441_v6  ;;  %v5450_v39 = vpop.f32.mrf.mxu3 }
 0x10a   :  { %8364 = vst [vmem:[#allocation74_spill] sm:$0xff] %v5431_v35  ;;  %v5439_v8 = vpop.f32.mrf.mxu1 }
 0x10b   :  { %8365 = vst [vmem:[#allocation75_spill] sm:$0xff] %v5439_v8  ;;  %789 = vperm.xlu2 %4665, %v255_v63   ;;  %784 = vperm.xlu1 %4664, %v254_v51   ;;  %v258_v63 = vld [vmem:[%s8170_s2 + $0x340] sm:$0xff]  ;;  %v257_v51 = vld [vmem:[%s8170_s2 + $0x338] sm:$0xff] }
 0x10c   :  { %779 = vperm.xlu0 %4663, %v253_v60   ;;  %4478 = vmatmul.msk.bf16.gmra.mxu0 %vm1262_vm0, %v4606_v15  ;;  %8369 = vst [vmem:[#allocation79_spill] sm:$0xff] %v5450_v39 }
 0x10d   :  { %4510 = vmatmul.msk.bf16.gmra.mxu2 %vm1262_vm0, %v4638_v29  ;;  %4542 = vmatmul.msk.bf16.gmra.mxu1 %vm1262_vm0, %v4606_v15  ;;  %v5446_v57 = vpop.permute.xlu2 %624  ;;  %v5448_v25 = vpop.permute.xlu1 %574  ;;  %v256_v15 = vld [vmem:[%s8170_s2 + $0x330] sm:$0xff] }
 0x10e   :  { %8367 = vst [vmem:[#allocation77_spill] sm:$0xff] %v5446_v57  ;;  %4574 = vmatmul.msk.bf16.gmra.mxu3 %vm1262_vm0, %v4638_v29  ;;  %v5453_v30 = vpop.permute.xlu0 %569 }
 0x10f   :  { %8368 = vst [vmem:[#allocation78_spill] sm:$0xff] %v5448_v25 }
 0x110   :  { %8370 = vst [vmem:[#allocation80_spill] sm:$0xff] %v5453_v30  ;;  %v5472_v39 = vpop.f32.mrf.mxu2 }
 0x111   :  { %v5461_v60 = vpop.f32.mrf.mxu0  ;;  %8375 = vst [vmem:[#allocation85_spill] sm:$0xff] %v5472_v39  ;;  %v5476_v57 = vpop.f32.mrf.mxu3 }
 0x112   :  { %8371 = vst [vmem:[#allocation81_spill] sm:$0xff] %v5461_v60  ;;  %v5466_v25 = vpop.f32.mrf.mxu1  ;;  %v261_v60 = vld [vmem:[%s8170_s2 + $0x358] sm:$0xff] }
 0x113   :  { %8372 = vst [vmem:[#allocation82_spill] sm:$0xff] %v5466_v25  ;;  %804 = vperm.xlu2 %4665, %v258_v63   ;;  %799 = vperm.xlu1 %4664, %v257_v51   ;;  %v260_v63 = vld [vmem:[%s8170_s2 + $0x350] sm:$0xff]  ;;  %v4607_v51 = vld [vmem:[%s8172_s1 + $0x88] sm:$0xff] }
 0x114   :  { %794 = vperm.xlu0 %4663, %v256_v15   ;;  %8377 = vst [vmem:[#allocation87_spill] sm:$0xff] %v5476_v57 }
 0x115   :  { %v5468_v29 = vpop.permute.xlu2 %639  ;;  %v5470_v30 = vpop.permute.xlu1 %589 }
 0x116   :  { %8373 = vst [vmem:[#allocation83_spill] sm:$0xff] %v5468_v29  ;;  %v5474_v6 = vpop.permute.xlu0 %584 }
 0x117   :  { %8374 = vst [vmem:[#allocation84_spill] sm:$0xff] %v5470_v30  ;;  %v259_v30 = vld [vmem:[%s8170_s2 + $0x348] sm:$0xff] }
 0x118   :  { %8376 = vst [vmem:[#allocation86_spill] sm:$0xff] %v5474_v6  ;;  %v4639_v6 = vld [vmem:[%s8172_s1 + $0x188] sm:$0xff]  ;;  %v5507_v25 = vpop.f32.mrf.mxu2 }
 0x119   :  { %v5487_v15 = vpop.f32.mrf.mxu0  ;;  %8383 = vst [vmem:[#allocation93_spill] sm:$0xff] %v5507_v25 }
 0x11a   :  { %8378 = vst [vmem:[#allocation88_spill] sm:$0xff] %v5487_v15  ;;  %v5495_v57 = vpop.f32.mrf.mxu1 }
 0x11b   :  { %8379 = vst [vmem:[#allocation89_spill] sm:$0xff] %v5495_v57  ;;  %819 = vperm.xlu2 %4665, %v261_v60   ;;  %814 = vperm.xlu1 %4664, %v260_v63   ;;  %v263_v60 = vld [vmem:[%s8170_s2 + $0x368] sm:$0xff]  ;;  %v266_v57 = vld [vmem:[%s8170_s2 + $0x380] sm:$0xff] }
 0x11c   :  { %809 = vperm.xlu0 %4663, %v259_v30   ;;  %4479 = vmatmul.msk.bf16.gmra.mxu0 %vm1262_vm0, %v4607_v51  ;;  %v264_v30 = vld [vmem:[%s8170_s2 + $0x370] sm:$0xff] }
 0x11d   :  { %4511 = vmatmul.msk.bf16.gmra.mxu2 %vm1262_vm0, %v4639_v6  ;;  %4543 = vmatmul.msk.bf16.gmra.mxu1 %vm1262_vm0, %v4607_v51  ;;  %v5500_v39 = vpop.permute.xlu2 %654  ;;  %v5502_v15 = vpop.permute.xlu1 %604  ;;  %v262_v51 = vld [vmem:[%s8170_s2 + $0x360] sm:$0xff] }
 0x11e   :  { %8380 = vst [vmem:[#allocation90_spill] sm:$0xff] %v5500_v39  ;;  %4575 = vmatmul.msk.bf16.gmra.mxu3 %vm1262_vm0, %v4639_v6  ;;  %v5505_v29 = vpop.permute.xlu0 %599  ;;  %v5520_v39 = vpop.f32.mrf.mxu3 }
 0x11f   :  { %8381 = vst [vmem:[#allocation91_spill] sm:$0xff] %v5502_v15 }
 0x120   :  { %8382 = vst [vmem:[#allocation92_spill] sm:$0xff] %v5505_v29 }
 0x121   :  { %v5515_v63 = vpop.f32.mrf.mxu0  ;;  %8385 = vst [vmem:[#allocation95_spill] sm:$0xff] %v5520_v39  ;;  %v4640_v39 = vld [vmem:[%s8172_s1 + $0x190] sm:$0xff] }
 0x122   :  { %8384 = vst [vmem:[#allocation94_spill] sm:$0xff] %v5515_v63  ;;  %v5522_v6 = vpop.f32.mrf.mxu1  ;;  %v267_v63 = vld [vmem:[%s8170_s2 + $0x388] sm:$0xff] }
 0x123   :  { %8386 = vst [vmem:[#allocation96_spill] sm:$0xff] %v5522_v6  ;;  %834 = vperm.xlu2 %4665, %v264_v30   ;;  %829 = vperm.xlu1 %4664, %v263_v60   ;;  %v4608_v30 = vld [vmem:[%s8172_s1 + $0x90] sm:$0xff] }
 0x124   :  { %824 = vperm.xlu0 %4663, %v262_v51   ;;  %v265_v51 = vld [vmem:[%s8170_s2 + $0x378] sm:$0xff] }
 0x125   :  { %v5524_v29 = vpop.permute.xlu2 %669  ;;  %v5526_v25 = vpop.permute.xlu1 %619 }
 0x126   :  { %8387 = vst [vmem:[#allocation97_spill] sm:$0xff] %v5524_v29  ;;  %v5528_v15 = vpop.permute.xlu0 %614  ;;  %v5547_v29 = vpop.f32.mrf.mxu2 }
 0x127   :  { %8388 = vst [vmem:[#allocation98_spill] sm:$0xff] %v5526_v25  ;;  %v5551_v25 = vpop.f32.mrf.mxu3 }
 0x128   :  { %8389 = vst [vmem:[#allocation99_spill] sm:$0xff] %v5528_v15 }
 0x129   :  { %v5539_v60 = vpop.f32.mrf.mxu0  ;;  %8391 = vst [vmem:[#allocation101_spill] sm:$0xff] %v5547_v29 }
 0x12a   :  { %8390 = vst [vmem:[#allocation100_spill] sm:$0xff] %v5539_v60  ;;  %v5549_v15 = vpop.f32.mrf.mxu1 }
 0x12b   :  { %8392 = vst [vmem:[#allocation102_spill] sm:$0xff] %v5549_v15  ;;  %849 = vperm.xlu2 %4665, %v267_v63   ;;  %844 = vperm.xlu1 %4664, %v266_v57   ;;  %v270_v57 = vld [vmem:[%s8170_s2 + $0x3a0] sm:$0xff]  ;;  %v269_v63 = vld [vmem:[%s8170_s2 + $0x398] sm:$0xff] }
 0x12c   :  { %8393 = vst [vmem:[#allocation103_spill] sm:$0xff] %v5551_v25  ;;  %839 = vperm.xlu0 %4663, %v265_v51   ;;  %4480 = vmatmul.msk.bf16.gmra.mxu0 %vm1262_vm0, %v4608_v30 }
 0x12d   :  { %4512 = vmatmul.msk.bf16.gmra.mxu2 %vm1262_vm0, %v4640_v39  ;;  %4544 = vmatmul.msk.bf16.gmra.mxu1 %vm1262_vm0, %v4608_v30  ;;  %v5556_v60 = vpop.permute.xlu2 %684  ;;  %v5558_v6 = vpop.permute.xlu1 %634  ;;  %v268_v30 = vld [vmem:[%s8170_s2 + $0x390] sm:$0xff] }
 0x12e   :  { %8394 = vst [vmem:[#allocation104_spill] sm:$0xff] %v5556_v60  ;;  %4576 = vmatmul.msk.bf16.gmra.mxu3 %vm1262_vm0, %v4640_v39  ;;  %v5561_v29 = vpop.permute.xlu0 %629  ;;  %v5576_v39 = vpop.f32.mrf.mxu2 }
 0x12f   :  { %8395 = vst [vmem:[#allocation105_spill] sm:$0xff] %v5558_v6  ;;  %v5582_v6 = vpop.f32.mrf.mxu3 }
 0x130   :  { %8396 = vst [vmem:[#allocation106_spill] sm:$0xff] %v5561_v29 }
 0x131   :  { %v5569_v51 = vpop.f32.mrf.mxu0  ;;  %8399 = vst [vmem:[#allocation109_spill] sm:$0xff] %v5576_v39 }
 0x132   :  { %8397 = vst [vmem:[#allocation107_spill] sm:$0xff] %v5569_v51  ;;  %v5574_v25 = vpop.f32.mrf.mxu1  ;;  %v273_v51 = vld [vmem:[%s8170_s2 + $0x3b8] sm:$0xff] }
 0x133   :  { %8398 = vst [vmem:[#allocation108_spill] sm:$0xff] %v5574_v25  ;;  %864 = vperm.xlu2 %4665, %v270_v57   ;;  %859 = vperm.xlu1 %4664, %v269_v63   ;;  %v272_v57 = vld [vmem:[%s8170_s2 + $0x3b0] sm:$0xff]  ;;  %v4609_v63 = vld [vmem:[%s8172_s1 + $0x98] sm:$0xff] }
 0x134   :  { %854 = vperm.xlu0 %4663, %v268_v30   ;;  %8402 = vst [vmem:[#allocation112_spill] sm:$0xff] %v5582_v6 }
 0x135   :  { %v5578_v29 = vpop.permute.xlu2 %699  ;;  %v5580_v60 = vpop.permute.xlu1 %649 }
 0x136   :  { %8400 = vst [vmem:[#allocation110_spill] sm:$0xff] %v5578_v29  ;;  %v5584_v15 = vpop.permute.xlu0 %644 }
 0x137   :  { %8401 = vst [vmem:[#allocation111_spill] sm:$0xff] %v5580_v60  ;;  %v271_v60 = vld [vmem:[%s8170_s2 + $0x3a8] sm:$0xff] }
 0x138   :  { %8403 = vst [vmem:[#allocation113_spill] sm:$0xff] %v5584_v15  ;;  %v4641_v15 = vld [vmem:[%s8172_s1 + $0x198] sm:$0xff] }
 0x139   :  { %v5595_v30 = vpop.f32.mrf.mxu0 }
 0x13a   :  { %8404 = vst [vmem:[#allocation114_spill] sm:$0xff] %v5595_v30  ;;  %v5603_v6 = vpop.f32.mrf.mxu1  ;;  %v5612_v30 = vpop.f32.mrf.mxu2 }
 0x13b   :  { %8405 = vst [vmem:[#allocation115_spill] sm:$0xff] %v5603_v6  ;;  %879 = vperm.xlu2 %4665, %v273_v51   ;;  %874 = vperm.xlu1 %4664, %v272_v57   ;;  %v5617_v6 = vpop.f32.mrf.mxu3  ;;  %v275_v51 = vld [vmem:[%s8170_s2 + $0x3c8] sm:$0xff] }
 0x13c   :  { %869 = vperm.xlu0 %4663, %v271_v60   ;;  %4481 = vmatmul.msk.bf16.gmra.mxu0 %vm1262_vm0, %v4609_v63  ;;  %8408 = vst [vmem:[#allocation118_spill] sm:$0xff] %v5612_v30  ;;  %v276_v60 = vld [vmem:[%s8170_s2 + $0x3d0] sm:$0xff] }
 0x13d   :  { %4513 = vmatmul.msk.bf16.gmra.mxu2 %vm1262_vm0, %v4641_v15  ;;  %4545 = vmatmul.msk.bf16.gmra.mxu1 %vm1262_vm0, %v4609_v63  ;;  %v5608_v39 = vpop.permute.xlu2 %714  ;;  %v5610_v29 = vpop.permute.xlu1 %664  ;;  %8410 = vst [vmem:[#allocation120_spill] sm:$0xff] %v5617_v6  ;;  %v274_v63 = vld [vmem:[%s8170_s2 + $0x3c0] sm:$0xff] }
 0x13e   :  { %8406 = vst [vmem:[#allocation116_spill] sm:$0xff] %v5608_v39  ;;  %4577 = vmatmul.msk.bf16.gmra.mxu3 %vm1262_vm0, %v4641_v15  ;;  %v5615_v25 = vpop.permute.xlu0 %659 }
 0x13f   :  { %8407 = vst [vmem:[#allocation117_spill] sm:$0xff] %v5610_v29  ;;  %v279_v29 = vld [vmem:[%s8170_s2 + $0x3e8] sm:$0xff] }
 0x140   :  { %8409 = vst [vmem:[#allocation119_spill] sm:$0xff] %v5615_v25 }
 0x141   :  { %v5625_v57 = vpop.f32.mrf.mxu0 }
 0x142   :  { %8411 = vst [vmem:[#allocation121_spill] sm:$0xff] %v5625_v57  ;;  %v5630_v30 = vpop.f32.mrf.mxu1  ;;  %v5638_v25 = vpop.f32.mrf.mxu2  ;;  %v278_v57 = vld [vmem:[%s8170_s2 + $0x3e0] sm:$0xff] }
 0x143   :  { %8412 = vst [vmem:[#allocation122_spill] sm:$0xff] %v5630_v30  ;;  %894 = vperm.xlu2 %4665, %v276_v60   ;;  %889 = vperm.xlu1 %4664, %v275_v51   ;;  %v4610_v60 = vld [vmem:[%s8172_s1 + $0xa0] sm:$0xff] }
 0x144   :  { %884 = vperm.xlu0 %4663, %v274_v63   ;;  %8416 = vst [vmem:[#allocation126_spill] sm:$0xff] %v5638_v25  ;;  %v277_v63 = vld [vmem:[%s8170_s2 + $0x3d8] sm:$0xff]  ;;  %v5657_v25 = vpop.f32.mrf.mxu3 }
 0x145   :  { %v5632_v15 = vpop.permute.xlu2 %729  ;;  %v5634_v6 = vpop.permute.xlu1 %679  ;;  %8418 = vst [vmem:[#allocation128_spill] sm:$0xff] %v5657_v25 }
 0x146   :  { %8413 = vst [vmem:[#allocation123_spill] sm:$0xff] %v5632_v15  ;;  %v5636_v39 = vpop.permute.xlu0 %674  ;;  %v4642_v15 = vld [vmem:[%s8172_s1 + $0x1a0] sm:$0xff] }
 0x147   :  { %8414 = vst [vmem:[#allocation124_spill] sm:$0xff] %v5634_v6 }
 0x148   :  { %8415 = vst [vmem:[#allocation125_spill] sm:$0xff] %v5636_v39 }
 0x149   :  { %v5649_v51 = vpop.f32.mrf.mxu0 }
 0x14a   :  { %8417 = vst [vmem:[#allocation127_spill] sm:$0xff] %v5649_v51  ;;  %v5659_v39 = vpop.f32.mrf.mxu1 }
 0x14b   :  { %8419 = vst [vmem:[#allocation129_spill] sm:$0xff] %v5659_v39  ;;  %909 = vperm.xlu2 %4665, %v279_v29   ;;  %904 = vperm.xlu1 %4664, %v278_v57   ;;  %v2881_v29 = vld [vmem:[%s8173_s3] sm:$0xff]  ;;  %v281_v57 = vld [vmem:[%s8170_s2 + $0x3f8] sm:$0xff] }
 0x14c   :  { %899 = vperm.xlu0 %4663, %v277_v63   ;;  %4482 = vmatmul.msk.bf16.gmra.mxu0 %vm1262_vm0, %v4610_v60 }
 0x14d   :  { %4514 = vmatmul.msk.bf16.gmra.mxu2 %vm1262_vm0, %v4642_v15  ;;  %4546 = vmatmul.msk.bf16.gmra.mxu1 %vm1262_vm0, %v4610_v60  ;;  %v5664_v6 = vpop.permute.xlu2 %744  ;;  %v5666_v30 = vpop.permute.xlu1 %694  ;;  %v280_v60 = vld [vmem:[%s8170_s2 + $0x3f0] sm:$0xff] }
 0x14e   :  { %8420 = vst [vmem:[#allocation130_spill] sm:$0xff] %v5664_v6  ;;  %4578 = vmatmul.msk.bf16.gmra.mxu3 %vm1262_vm0, %v4642_v15  ;;  %v5669_v51 = vpop.permute.xlu0 %689  ;;  %v5682_v6 = vpop.f32.mrf.mxu2 }
 0x14f   :  { %8421 = vst [vmem:[#allocation131_spill] sm:$0xff] %v5666_v30  ;;  %v5686_v15 = vpop.f32.mrf.mxu3 }
 0x150   :  { %8422 = vst [vmem:[#allocation132_spill] sm:$0xff] %v5669_v51 }
 0x151   :  { %v5677_v63 = vpop.f32.mrf.mxu0  ;;  %8424 = vst [vmem:[#allocation134_spill] sm:$0xff] %v5682_v6  ;;  %v2883_v6 = vld [vmem:[%s8173_s3 + $0x10] sm:$0xff] }
 0x152   :  { %8423 = vst [vmem:[#allocation133_spill] sm:$0xff] %v5677_v63  ;;  %v5684_v25 = vpop.f32.mrf.mxu1  ;;  %v2884_v63 = vld [vmem:[%s8173_s3 + $0x18] sm:$0xff] }
 0x153   :  { %8425 = vst [vmem:[#allocation135_spill] sm:$0xff] %v5684_v25  ;;  %3011 = vperm.xlu2 %4665, %v2881_v29   ;;  %919 = vperm.xlu1 %4664, %v281_v57   ;;  %v4611_v29 = vld [vmem:[%s8172_s1 + $0xa8] sm:$0xff] }
 0x154   :  { %8426 = vst [vmem:[#allocation136_spill] sm:$0xff] %v5686_v15  ;;  %914 = vperm.xlu0 %4663, %v280_v60   ;;  %v2882_v60 = vld [vmem:[%s8173_s3 + $0x8] sm:$0xff] }
 0x155   :  { %v5688_v51 = vpop.permute.xlu2 %759  ;;  %v5690_v30 = vpop.permute.xlu1 %709 }
 0x156   :  { %8427 = vst [vmem:[#allocation137_spill] sm:$0xff] %v5688_v51  ;;  %v5692_v39 = vpop.permute.xlu0 %704  ;;  %v4643_v51 = vld [vmem:[%s8172_s1 + $0x1a8] sm:$0xff] }
 0x157   :  { %8428 = vst [vmem:[#allocation138_spill] sm:$0xff] %v5690_v30  ;;  %v5713_v30 = vpop.f32.mrf.mxu2  ;;  %v5722_v25 = vpop.f32.mrf.mxu3 }
 0x158   :  { %8429 = vst [vmem:[#allocation139_spill] sm:$0xff] %v5692_v39 }
 0x159   :  { %v5703_v57 = vpop.f32.mrf.mxu0  ;;  %8432 = vst [vmem:[#allocation142_spill] sm:$0xff] %v5713_v30 }
 0x15a   :  { %8430 = vst [vmem:[#allocation140_spill] sm:$0xff] %v5703_v57  ;;  %v5711_v39 = vpop.f32.mrf.mxu1 }
 0x15b   :  { %8431 = vst [vmem:[#allocation141_spill] sm:$0xff] %v5711_v39  ;;  %3026 = vperm.xlu2 %4665, %v2884_v63   ;;  %3021 = vperm.xlu1 %4664, %v2883_v6   ;;  %v2887_v6 = vld [vmem:[%s8173_s3 + $0x30] sm:$0xff]  ;;  %v2886_v63 = vld [vmem:[%s8173_s3 + $0x28] sm:$0xff] }
 0x15c   :  { %3016 = vperm.xlu0 %4663, %v2882_v60   ;;  %4483 = vmatmul.msk.bf16.gmra.mxu0 %vm1262_vm0, %v4611_v29  ;;  %8435 = vst [vmem:[#allocation145_spill] sm:$0xff] %v5722_v25 }
 0x15d   :  { %4515 = vmatmul.msk.bf16.gmra.mxu2 %vm1262_vm0, %v4643_v51  ;;  %4547 = vmatmul.msk.bf16.gmra.mxu1 %vm1262_vm0, %v4611_v29  ;;  %v5718_v15 = vpop.permute.xlu2 %774  ;;  %v5720_v57 = vpop.permute.xlu1 %724  ;;  %v2885_v29 = vld [vmem:[%s8173_s3 + $0x20] sm:$0xff] }
 0x15e   :  { %8433 = vst [vmem:[#allocation143_spill] sm:$0xff] %v5718_v15  ;;  %4579 = vmatmul.msk.bf16.gmra.mxu3 %vm1262_vm0, %v4643_v51  ;;  %v5725_v39 = vpop.permute.xlu0 %719 }
 0x15f   :  { %8434 = vst [vmem:[#allocation144_spill] sm:$0xff] %v5720_v57  ;;  %v5744_v30 = vpop.f32.mrf.mxu2  ;;  %v5748_v57 = vpop.f32.mrf.mxu3 }
 0x160   :  { %8436 = vst [vmem:[#allocation146_spill] sm:$0xff] %v5725_v39 }
 0x161   :  { %v5733_v60 = vpop.f32.mrf.mxu0  ;;  %8441 = vst [vmem:[#allocation151_spill] sm:$0xff] %v5744_v30 }
 0x162   :  { %8437 = vst [vmem:[#allocation147_spill] sm:$0xff] %v5733_v60  ;;  %v5738_v15 = vpop.f32.mrf.mxu1  ;;  %v2890_v60 = vld [vmem:[%s8173_s3 + $0x48] sm:$0xff] }
 0x163   :  { %8438 = vst [vmem:[#allocation148_spill] sm:$0xff] %v5738_v15  ;;  %3041 = vperm.xlu2 %4665, %v2887_v6   ;;  %3036 = vperm.xlu1 %4664, %v2886_v63   ;;  %v2889_v6 = vld [vmem:[%s8173_s3 + $0x40] sm:$0xff]  ;;  %v4612_v63 = vld [vmem:[%s8172_s1 + $0xb0] sm:$0xff] }
 0x164   :  { %3031 = vperm.xlu0 %4663, %v2885_v29   ;;  %8443 = vst [vmem:[#allocation153_spill] sm:$0xff] %v5748_v57 }
 0x165   :  { %v5740_v51 = vpop.permute.xlu2 %789  ;;  %v5742_v25 = vpop.permute.xlu1 %739 }
 0x166   :  { %8439 = vst [vmem:[#allocation149_spill] sm:$0xff] %v5740_v51  ;;  %v5746_v39 = vpop.permute.xlu0 %734  ;;  %v2888_v51 = vld [vmem:[%s8173_s3 + $0x38] sm:$0xff] }
 0x167   :  { %8440 = vst [vmem:[#allocation150_spill] sm:$0xff] %v5742_v25  ;;  %v4644_v25 = vld [vmem:[%s8172_s1 + $0x1b0] sm:$0xff]  ;;  %v5779_v15 = vpop.f32.mrf.mxu2 }
 0x168   :  { %8442 = vst [vmem:[#allocation152_spill] sm:$0xff] %v5746_v39 }
 0x169   :  { %v5759_v29 = vpop.f32.mrf.mxu0  ;;  %8449 = vst [vmem:[#allocation159_spill] sm:$0xff] %v5779_v15 }
 0x16a   :  { %8444 = vst [vmem:[#allocation154_spill] sm:$0xff] %v5759_v29  ;;  %v5767_v39 = vpop.f32.mrf.mxu1 }
 0x16b   :  { %8445 = vst [vmem:[#allocation155_spill] sm:$0xff] %v5767_v39  ;;  %3056 = vperm.xlu2 %4665, %v2890_v60   ;;  %3051 = vperm.xlu1 %4664, %v2889_v6   ;;  %v2893_v60 = vld [vmem:[%s8173_s3 + $0x60] sm:$0xff]  ;;  %v2895_v39 = vld [vmem:[%s8173_s3 + $0x70] sm:$0xff] }
 0x16c   :  { %3046 = vperm.xlu0 %4663, %v2888_v51   ;;  %4484 = vmatmul.msk.bf16.gmra.mxu0 %vm1262_vm0, %v4612_v63  ;;  %v2892_v51 = vld [vmem:[%s8173_s3 + $0x58] sm:$0xff] }
 0x16d   :  { %4516 = vmatmul.msk.bf16.gmra.mxu2 %vm1262_vm0, %v4644_v25  ;;  %4548 = vmatmul.msk.bf16.gmra.mxu1 %vm1262_vm0, %v4612_v63  ;;  %v5772_v57 = vpop.permute.xlu2 %804  ;;  %v5774_v30 = vpop.permute.xlu1 %754  ;;  %v2891_v63 = vld [vmem:[%s8173_s3 + $0x50] sm:$0xff] }
 0x16e   :  { %8446 = vst [vmem:[#allocation156_spill] sm:$0xff] %v5772_v57  ;;  %4580 = vmatmul.msk.bf16.gmra.mxu3 %vm1262_vm0, %v4644_v25  ;;  %v5777_v29 = vpop.permute.xlu0 %749  ;;  %v5792_v57 = vpop.f32.mrf.mxu3 }
 0x16f   :  { %8447 = vst [vmem:[#allocation157_spill] sm:$0xff] %v5774_v30 }
 0x170   :  { %8448 = vst [vmem:[#allocation158_spill] sm:$0xff] %v5777_v29 }
 0x171   :  { %v5787_v6 = vpop.f32.mrf.mxu0  ;;  %8451 = vst [vmem:[#allocation161_spill] sm:$0xff] %v5792_v57 }
 0x172   :  { %8450 = vst [vmem:[#allocation160_spill] sm:$0xff] %v5787_v6  ;;  %v5794_v25 = vpop.f32.mrf.mxu1  ;;  %v2896_v6 = vld [vmem:[%s8173_s3 + $0x78] sm:$0xff] }
 0x173   :  { %8452 = vst [vmem:[#allocation162_spill] sm:$0xff] %v5794_v25  ;;  %3071 = vperm.xlu2 %4665, %v2893_v60   ;;  %3066 = vperm.xlu1 %4664, %v2892_v51   ;;  %v4613_v60 = vld [vmem:[%s8172_s1 + $0xb8] sm:$0xff] }
 0x174   :  { %3061 = vperm.xlu0 %4663, %v2891_v63   ;;  %v2894_v63 = vld [vmem:[%s8173_s3 + $0x68] sm:$0xff] }
 0x175   :  { %v5796_v30 = vpop.permute.xlu2 %819  ;;  %v5798_v29 = vpop.permute.xlu1 %769 }
 0x176   :  { %8453 = vst [vmem:[#allocation163_spill] sm:$0xff] %v5796_v30  ;;  %v5800_v15 = vpop.permute.xlu0 %764  ;;  %v4645_v30 = vld [vmem:[%s8172_s1 + $0x1b8] sm:$0xff]  ;;  %v5823_v57 = vpop.f32.mrf.mxu3 }
 0x177   :  { %8454 = vst [vmem:[#allocation164_spill] sm:$0xff] %v5798_v29  ;;  %v5819_v29 = vpop.f32.mrf.mxu2 }
 0x178   :  { %8455 = vst [vmem:[#allocation165_spill] sm:$0xff] %v5800_v15 }
 0x179   :  { %v5811_v51 = vpop.f32.mrf.mxu0  ;;  %8457 = vst [vmem:[#allocation167_spill] sm:$0xff] %v5819_v29 }
 0x17a   :  { %8456 = vst [vmem:[#allocation166_spill] sm:$0xff] %v5811_v51  ;;  %v5821_v15 = vpop.f32.mrf.mxu1 }
 0x17b   :  { %8458 = vst [vmem:[#allocation168_spill] sm:$0xff] %v5821_v15  ;;  %3086 = vperm.xlu2 %4665, %v2896_v6   ;;  %3081 = vperm.xlu1 %4664, %v2895_v39   ;;  %v2899_v39 = vld [vmem:[%s8173_s3 + $0x90] sm:$0xff]  ;;  %v2898_v6 = vld [vmem:[%s8173_s3 + $0x88] sm:$0xff] }
 0x17c   :  { %8459 = vst [vmem:[#allocation169_spill] sm:$0xff] %v5823_v57  ;;  %3076 = vperm.xlu0 %4663, %v2894_v63   ;;  %4485 = vmatmul.msk.bf16.gmra.mxu0 %vm1262_vm0, %v4613_v60 }
 0x17d   :  { %4517 = vmatmul.msk.bf16.gmra.mxu2 %vm1262_vm0, %v4645_v30  ;;  %4549 = vmatmul.msk.bf16.gmra.mxu1 %vm1262_vm0, %v4613_v60  ;;  %v5828_v25 = vpop.permute.xlu2 %834  ;;  %v5830_v51 = vpop.permute.xlu1 %784  ;;  %v2897_v60 = vld [vmem:[%s8173_s3 + $0x80] sm:$0xff] }
 0x17e   :  { %8460 = vst [vmem:[#allocation170_spill] sm:$0xff] %v5828_v25  ;;  %4581 = vmatmul.msk.bf16.gmra.mxu3 %vm1262_vm0, %v4645_v30  ;;  %v5833_v29 = vpop.permute.xlu0 %779  ;;  %v5854_v57 = vpop.f32.mrf.mxu3 }
 0x17f   :  { %8461 = vst [vmem:[#allocation171_spill] sm:$0xff] %v5830_v51  ;;  %v5848_v30 = vpop.f32.mrf.mxu2 }
 0x180   :  { %8462 = vst [vmem:[#allocation172_spill] sm:$0xff] %v5833_v29 }
 0x181   :  { %v5841_v63 = vpop.f32.mrf.mxu0  ;;  %8465 = vst [vmem:[#allocation175_spill] sm:$0xff] %v5848_v30 }
 0x182   :  { %8463 = vst [vmem:[#allocation173_spill] sm:$0xff] %v5841_v63  ;;  %v5846_v25 = vpop.f32.mrf.mxu1  ;;  %v2902_v63 = vld [vmem:[%s8173_s3 + $0xa8] sm:$0xff] }
 0x183   :  { %8464 = vst [vmem:[#allocation174_spill] sm:$0xff] %v5846_v25  ;;  %3101 = vperm.xlu2 %4665, %v2899_v39   ;;  %3096 = vperm.xlu1 %4664, %v2898_v6   ;;  %v2901_v39 = vld [vmem:[%s8173_s3 + $0xa0] sm:$0xff] }
 0x184   :  { %3091 = vperm.xlu0 %4663, %v2897_v60   ;;  %8468 = vst [vmem:[#allocation178_spill] sm:$0xff] %v5854_v57  ;;  %v4614_v6 = vld [vmem:[%s8172_s1 + $0xc0] sm:$0xff] }
 0x185   :  { %v5850_v51 = vpop.permute.xlu2 %849  ;;  %v5852_v29 = vpop.permute.xlu1 %799 }
 0x186   :  { %8466 = vst [vmem:[#allocation176_spill] sm:$0xff] %v5850_v51  ;;  %v5856_v15 = vpop.permute.xlu0 %794  ;;  %v2900_v51 = vld [vmem:[%s8173_s3 + $0x98] sm:$0xff] }
 0x187   :  { %8467 = vst [vmem:[#allocation177_spill] sm:$0xff] %v5852_v29  ;;  %v4646_v29 = vld [vmem:[%s8172_s1 + $0x1c0] sm:$0xff] }
 0x188   :  { %8469 = vst [vmem:[#allocation179_spill] sm:$0xff] %v5856_v15 }
 0x189   :  { %v5867_v60 = vpop.f32.mrf.mxu0 }
 0x18a   :  { %8470 = vst [vmem:[#allocation180_spill] sm:$0xff] %v5867_v60  ;;  %v5875_v15 = vpop.f32.mrf.mxu1  ;;  %v5884_v60 = vpop.f32.mrf.mxu2 }
 0x18b   :  { %8471 = vst [vmem:[#allocation181_spill] sm:$0xff] %v5875_v15  ;;  %3116 = vperm.xlu2 %4665, %v2902_v63   ;;  %3111 = vperm.xlu1 %4664, %v2901_v39   ;;  %v5889_v15 = vpop.f32.mrf.mxu3  ;;  %v2904_v63 = vld [vmem:[%s8173_s3 + $0xb8] sm:$0xff] }
 0x18c   :  { %3106 = vperm.xlu0 %4663, %v2900_v51   ;;  %4486 = vmatmul.msk.bf16.gmra.mxu0 %vm1262_vm0, %v4614_v6  ;;  %8474 = vst [vmem:[#allocation184_spill] sm:$0xff] %v5884_v60  ;;  %v2905_v51 = vld [vmem:[%s8173_s3 + $0xc0] sm:$0xff]  ;;  %v2908_v60 = vld [vmem:[%s8173_s3 + $0xd8] sm:$0xff] }
 0x18d   :  { %4518 = vmatmul.msk.bf16.gmra.mxu2 %vm1262_vm0, %v4646_v29  ;;  %4550 = vmatmul.msk.bf16.gmra.mxu1 %vm1262_vm0, %v4614_v6  ;;  %v5880_v57 = vpop.permute.xlu2 %864  ;;  %v5882_v30 = vpop.permute.xlu1 %814  ;;  %8476 = vst [vmem:[#allocation186_spill] sm:$0xff] %v5889_v15  ;;  %v2903_v6 = vld [vmem:[%s8173_s3 + $0xb0] sm:$0xff] }
 0x18e   :  { %8472 = vst [vmem:[#allocation182_spill] sm:$0xff] %v5880_v57  ;;  %4582 = vmatmul.msk.bf16.gmra.mxu3 %vm1262_vm0, %v4646_v29  ;;  %v5887_v25 = vpop.permute.xlu0 %809 }
 0x18f   :  { %8473 = vst [vmem:[#allocation183_spill] sm:$0xff] %v5882_v30 }
 0x190   :  { %8475 = vst [vmem:[#allocation185_spill] sm:$0xff] %v5887_v25 }
 0x191   :  { %v5897_v39 = vpop.f32.mrf.mxu0 }
 0x192   :  { %8477 = vst [vmem:[#allocation187_spill] sm:$0xff] %v5897_v39  ;;  %v5902_v57 = vpop.f32.mrf.mxu1  ;;  %v5910_v15 = vpop.f32.mrf.mxu2  ;;  %v2907_v39 = vld [vmem:[%s8173_s3 + $0xd0] sm:$0xff] }
 0x193   :  { %8478 = vst [vmem:[#allocation188_spill] sm:$0xff] %v5902_v57  ;;  %3131 = vperm.xlu2 %4665, %v2905_v51   ;;  %3126 = vperm.xlu1 %4664, %v2904_v63   ;;  %v4615_v51 = vld [vmem:[%s8172_s1 + $0xc8] sm:$0xff]  ;;  %v1467_v57 = vadd.f32 %v5017_v42, %v4961_v21  ;;  %v2911_v42 = vld [vmem:[%s8173_s3 + $0xf0] sm:$0xff] }
 0x194   :  { %3121 = vperm.xlu0 %4663, %v2903_v6   ;;  %8482 = vst [vmem:[#allocation192_spill] sm:$0xff] %v5910_v15  ;;  %v2906_v6 = vld [vmem:[%s8173_s3 + $0xc8] sm:$0xff]  ;;  %v1465_v15 = vadd.f32 %v4987_v31, %v4936_v13 }
 0x195   :  { %v5904_v29 = vpop.permute.xlu2 %879  ;;  %v5906_v30 = vpop.permute.xlu1 %829  ;;  %vm2115_vm3 = vcmp.gt.f32.partialorder %v1467_v57, 0.0 }
 0x196   :  { %8479 = vst [vmem:[#allocation189_spill] sm:$0xff] %v5904_v29  ;;  %v5908_v25 = vpop.permute.xlu0 %824  ;;  %v4647_v29 = vld [vmem:[%s8172_s1 + $0x1c8] sm:$0xff]  ;;  %vm2113_vm1 = vcmp.gt.f32.partialorder %v1465_v15, 0.0 }
 0x197   :  { %8480 = vst [vmem:[#allocation190_spill] sm:$0xff] %v5906_v30  ;;  %v5929_v30 = vpop.f32.mrf.mxu3 }
 0x198   :  { %8481 = vst [vmem:[#allocation191_spill] sm:$0xff] %v5908_v25 }
 0x199   :  { %v5921_v63 = vpop.f32.mrf.mxu0  ;;  %8484 = vst [vmem:[#allocation194_spill] sm:$0xff] %v5929_v30 }
 0x19a   :  { %8483 = vst [vmem:[#allocation193_spill] sm:$0xff] %v5921_v63  ;;  %v5931_v25 = vpop.f32.mrf.mxu1  ;;  %v1794_v63 = vadd.f32 %v4995_v34, %v4936_v13  ;;  %v1796_v34 = vadd.f32 %v5022_v44, %v4961_v21  ;;  %v2909_v21 = vld [vmem:[%s8173_s3 + $0xe0] sm:$0xff]  ;;  %v1472_v44 = vadd.f32 %v5073_v2, %v4958_v20 }
 0x19b   :  { %8485 = vst [vmem:[#allocation195_spill] sm:$0xff] %v5931_v25  ;;  %3146 = vperm.xlu2 %4665, %v2908_v60   ;;  %3141 = vperm.xlu1 %4664, %v2907_v39   ;;  %v2369_v60 = vmul.f32 0.01, %v1465_v15  ;;  %v2910_v39 = vld [vmem:[%s8173_s3 + $0xe8] sm:$0xff] }
 0x19c   :  { %3136 = vperm.xlu0 %4663, %v2906_v6   ;;  %4487 = vmatmul.msk.bf16.gmra.mxu0 %vm1262_vm0, %v4615_v51  ;;  %v2370_v13 = vmul.f32 0.01, %v1794_v63  ;;  %v1799_v6 = vadd.f32 %v5051_v56, %v4934_v12  ;;  %vm2114_vm2 = vcmp.gt.f32.partialorder %v1794_v63, 0.0  ;;  %v2372_v56 = vmul.f32 0.01, %v1796_v34 }
 0x19d   :  { %4519 = vmatmul.msk.bf16.gmra.mxu2 %vm1262_vm0, %v4647_v29  ;;  %4551 = vmatmul.msk.bf16.gmra.mxu1 %vm1262_vm0, %v4615_v51  ;;  %v5942_v30 = vpop.permute.xlu2 %894  ;;  %v5944_v25 = vpop.permute.xlu1 %844  ;;  %v2371_v51 = vmul.f32 0.01, %v1467_v57  ;;  %v2625_v2 = vsel %vm2113_vm1, %v1465_v15, %v2369_v60  ;;  %vm2116_vm4 = vcmp.gt.f32.partialorder %v1796_v34, 0.0  ;;  %v2375_v58 = vmul.f32 0.01, %v1472_v44  ;;  %v2913_v60 = vld [vmem:[%s8173_s3 + $0x100] sm:$0xff] }
 0x19e   :  { %8486 = vst [vmem:[#allocation196_spill] sm:$0xff] %v5942_v30  ;;  %4583 = vmatmul.msk.bf16.gmra.mxu3 %vm1262_vm0, %v4647_v29  ;;  %v5947_v31 = vpop.permute.xlu0 %839  ;;  %v1470_v29 = vadd.f32 %v5043_v53, %v4934_v12  ;;  %v1475_v12 = vadd.f32 %v5099_v17, %v4886_v61  ;;  %v1804_v53 = vadd.f32 %v5107_v23, %v4886_v61  ;;  %vm2118_vm6 = vcmp.gt.f32.partialorder %v1799_v6, 0.0 }
 0x19f   :  { %8487 = vst [vmem:[#allocation197_spill] sm:$0xff] %v5944_v25  ;;  %v1801_v25 = vadd.f32 %v5078_v4, %v4958_v20  ;;  %v2626_v20 = vsel %vm2114_vm2, %v1794_v63, %v2370_v13  ;;  %v5985_v17 = vsel %vm2115_vm3, %v1467_v57, %v2371_v51  ;;  %vm2119_vm7 = vcmp.gt.f32.partialorder %v1472_v44, 0.0  ;;  %v2914_v57 = vld [vmem:[%s8173_s3 + $0x108] sm:$0xff]  ;;  %v4616_v13 = vld [vmem:[%s8172_s1 + $0xd0] sm:$0xff]  ;;  %v2912_v51 = vld [vmem:[%s8173_s3 + $0xf8] sm:$0xff] }
 0x1a0   :  { %8488 = vst [vmem:[#allocation198_spill] sm:$0xff] %v5947_v31  ;;  %v5970_v31 = vpop.f32.mrf.mxu2  ;;  %v2373_v4 = vmul.f32 0.01, %v1470_v29  ;;  %vm2117_vm5 = vcmp.gt.f32.partialorder %v1470_v29, 0.0  ;;  %v1477_v15 = vadd.f32 %v5129_v40, %v4900_v1  ;;  %v1806_v63 = vadd.f32 %v5134_v49, %v4900_v1 }
 0x1a1   :  { %v5961_v30 = vpop.f32.mrf.mxu0  ;;  %8490 = vst [vmem:[#allocation200_spill] sm:$0xff] %v5970_v31  ;;  %v2374_v31 = vmul.f32 0.01, %v1799_v6  ;;  %v2376_v61 = vmul.f32 0.01, %v1801_v25  ;;  %vm2120_vm8 = vcmp.gt.f32.partialorder %v1801_v25, 0.0  ;;  %v1480_v40 = vadd.f32 %v5155_v14, %v4976_v27 }
 0x1a2   :  { %8489 = vst [vmem:[#allocation199_spill] sm:$0xff] %v5961_v30  ;;  %v5972_v8 = vpop.f32.mrf.mxu1  ;;  %v5978_v30 = vpop.f32.mrf.mxu3  ;;  %vm2121_vm9 = vcmp.gt.f32.partialorder %v1475_v12, 0.0  ;;  %vm2122_vm10 = vcmp.gt.f32.partialorder %v1804_v53, 0.0  ;;  %v1809_v1 = vadd.f32 %v5163_v22, %v4976_v27  ;;  %v1482_v14 = vadd.f32 %v5185_v3, %v4974_v26 }
 0x1a3   :  { %8491 = vst [vmem:[#allocation201_spill] sm:$0xff] %v5972_v8  ;;  %3161 = vperm.xlu2 %4665, %v2911_v42   ;;  %3156 = vperm.xlu1 %4664, %v2910_v39   ;;  %v2377_v42 = vmul.f32 0.01, %v1475_v12  ;;  %v2378_v39 = vmul.f32 0.01, %v1804_v53  ;;  %v1811_v27 = vadd.f32 %v5190_v32, %v4974_v26  ;;  %vm2123_vm11 = vcmp.gt.f32.partialorder %v1477_v15, 0.0 }
 0x1a4   :  { %8492 = vst [vmem:[#allocation202_spill] sm:$0xff] %v5978_v30  ;;  %3151 = vperm.xlu0 %4663, %v2909_v21   ;;  %v4648_v21 = vld [vmem:[%s8172_s1 + $0x1d0] sm:$0xff]  ;;  %v6030_v30 = vsel %vm2118_vm6, %v1799_v6, %v2374_v31  ;;  %v2379_v26 = vmul.f32 0.01, %v1477_v15  ;;  %v2380_v32 = vmul.f32 0.01, %v1806_v63 }
 0x1a5   :  { %v5981_v35 = vpop.permute.xlu2 %909  ;;  %v5983_v8 = vpop.permute.xlu1 %859  ;;  %v6039_v3 = vsel %vm2122_vm10, %v1804_v53, %v2378_v39  ;;  %v2381_v31 = vmul.f32 0.01, %v1480_v40  ;;  %vm2125_vm12 = vcmp.gt.f32.partialorder %v1480_v40, 0.0  ;;  %vm2124_vm13 = vcmp.gt.f32.partialorder %v1806_v63, 0.0 }
 0x1a6   :  { %8493 = vst [vmem:[#allocation203_spill] sm:$0xff] %v5981_v35  ;;  %v5987_v23 = vpop.permute.xlu0 %854  ;;  %v6015_v35 = vsel %vm2117_vm5, %v1470_v29, %v2373_v4  ;;  %v6033_v29 = vsel %vm2120_vm8, %v1801_v25, %v2376_v61  ;;  %v2382_v25 = vmul.f32 0.01, %v1809_v1  ;;  %v2383_v53 = vmul.f32 0.01, %v1482_v14 }
 0x1a7   :  { %8494 = vst [vmem:[#allocation204_spill] sm:$0xff] %v5983_v8  ;;  %v6018_v8 = vsel %vm2116_vm4, %v1796_v34, %v2372_v56  ;;  %v6036_v34 = vsel %vm2121_vm9, %v1475_v12, %v2377_v42  ;;  %v2384_v56 = vmul.f32 0.01, %v1811_v27  ;;  %v1814_v39 = vadd.f32 %v5219_v28, %v4920_v7 }
 0x1a8   :  { %8495 = vst [vmem:[#allocation205_spill] sm:$0xff] %v5987_v23  ;;  %v6027_v23 = vsel %vm2119_vm7, %v1472_v44, %v2375_v58  ;;  %v1485_v58 = vadd.f32 %v5211_v18, %v4920_v7  ;;  %v6043_v44 = vpop.f32.mrf.mxu2  ;;  %vm2126_vm14 = vcmp.gt.f32.partialorder %v1809_v1, 0.0  ;;  %vm2127_vm15 = vcmp.gt.f32.partialorder %v1482_v14, 0.0 }
 0x1a9   :  { %v6006_v49 = vpop.f32.mrf.mxu0  ;;  %8496 = vst [vmem:[#allocation206_spill] sm:$0xff] %v6043_v44  ;;  %vm2128_vm1 = vcmp.gt.f32.partialorder %v1811_v27, 0.0  ;;  %v6073_v7 = vsel %vm2124_vm13, %v1806_v63, %v2380_v32  ;;  %v1816_v28 = vadd.f32 %v5246_v33, %v5005_v37  ;;  %v6095_v33 = vsel %vm2127_vm15, %v1482_v14, %v2383_v53  ;;  %v8525_v44 = vld [vmem:[#allocation83_spill] sm:$0xff] }
 0x1aa   :  { %v6024_v22 = vpop.f32.mrf.mxu1  ;;  %v6050_v18 = vpop.f32.mrf.mxu3  ;;  %vm2129_vm2 = vcmp.gt.f32.partialorder %v1485_v58, 0.0  ;;  %v1821_v32 = vadd.f32 %v5302_v24, %v4932_v11  ;;  %vm2130_vm3 = vcmp.gt.f32.partialorder %v1814_v39, 0.0 }
 0x1ab   :  { %3176 = vperm.xlu2 %4665, %v2914_v57   ;;  %3171 = vperm.xlu1 %4664, %v2913_v60   ;;  %8498 = vst [vmem:[#allocation208_spill] sm:$0xff] %v6050_v18  ;;  %v2385_v57 = vmul.f32 0.01, %v1485_v58  ;;  %v1487_v60 = vadd.f32 %v5241_v62, %v5005_v37  ;;  %v1490_v62 = vadd.f32 %v5267_v5, %v5002_v36  ;;  %v2388_v14 = vmul.f32 0.01, %v1816_v28 }
 0x1ac   :  { %3166 = vperm.xlu0 %4663, %v2912_v51   ;;  %4488 = vmatmul.msk.bf16.gmra.mxu0 %vm1262_vm0, %v4616_v13  ;;  %v6092_v37 = vsel %vm2126_vm14, %v1809_v1, %v2382_v25  ;;  %v6098_v5 = vsel %vm2128_vm1, %v1811_v27, %v2384_v56  ;;  %vm2132_vm5 = vcmp.gt.f32.partialorder %v1816_v28, 0.0  ;;  %v2392_v56 = vmul.f32 0.01, %v1821_v32 }
 0x1ad   :  { %4520 = vmatmul.msk.bf16.gmra.mxu2 %vm1262_vm0, %v4648_v21  ;;  %4552 = vmatmul.msk.bf16.gmra.mxu1 %vm1262_vm0, %v4616_v13  ;;  %v3012_v6 = vpop.permute.xlu2 %3011  ;;  %v6048_v12 = vpop.permute.xlu1 %874  ;;  %v2917_v13 = vld [vmem:[%s8173_s3 + $0x120] sm:$0xff]  ;;  %vm2131_vm4 = vcmp.gt.f32.partialorder %v1487_v60, 0.0  ;;  %v6107_v1 = vsel %vm2129_vm2, %v1485_v58, %v2385_v57  ;;  %v2389_v27 = vmul.f32 0.01, %v1490_v62  ;;  %vm2133_vm6 = vcmp.gt.f32.partialorder %v1490_v62, 0.0 }
 0x1ae   :  { %8497 = vst [vmem:[#allocation207_spill] sm:$0xff] %v6048_v12  ;;  %4584 = vmatmul.msk.bf16.gmra.mxu3 %vm1262_vm0, %v4648_v21  ;;  %v6053_v4 = vmul.f32 %v3012_v6, %v2625_v2  ;;  %v6055_v61 = vmul.f32 %v3012_v6, %v2626_v20  ;;  %v6057_v42 = vpop.permute.xlu0 %869  ;;  %v2916_v2 = vld [vmem:[%s8173_s3 + $0x118] sm:$0xff]  ;;  %v6070_v20 = vsel %vm2123_vm11, %v1477_v15, %v2379_v26  ;;  %v2915_v21 = vld [vmem:[%s8173_s3 + $0x110] sm:$0xff]  ;;  %v2386_v26 = vmul.f32 0.01, %v1814_v39 }
 0x1af   :  { %8499 = vst [vmem:[#allocation209_spill] sm:$0xff] %v6057_v42  ;;  %v6085_v6 = vsel %vm2125_vm12, %v1480_v40, %v2381_v31  ;;  %v1819_v15 = vadd.f32 %v5275_v10, %v5002_v36  ;;  %v1492_v40 = vadd.f32 %v5297_v45, %v4932_v11  ;;  %v2387_v36 = vmul.f32 0.01, %v1487_v60  ;;  %v4649_v12 = vld [vmem:[%s8172_s1 + $0x1d8] sm:$0xff] }
 0x1b0   :  { %v1495_v10 = vadd.f32 %v5323_v55, %v5028_v47  ;;  %v6111_v24 = vpop.f32.mrf.mxu2  ;;  %v1824_v57 = vadd.f32 %v5331_v54, %v5028_v47  ;;  %v6137_v47 = vsel %vm2130_vm3, %v1814_v39, %v2386_v26  ;;  %vm2136_vm9 = vcmp.gt.f32.partialorder %v1821_v32, 0.0 }
 0x1b1   :  { %v6079_v51 = vpop.f32.mrf.mxu0  ;;  %v2390_v11 = vmul.f32 0.01, %v1819_v15  ;;  %8503 = vst [vmem:[#allocation213_spill] sm:$0xff] %v6111_v24  ;;  %vm2134_vm7 = vcmp.gt.f32.partialorder %v1819_v15, 0.0  ;;  %v2391_v58 = vmul.f32 0.01, %v1492_v40  ;;  %v1826_v54 = vadd.f32 %v5358_v43, %v5026_v46 }
 0x1b2   :  { %8500 = vst [vmem:[#allocation210_spill] sm:$0xff] %v6079_v51  ;;  %v6089_v63 = vpop.f32.mrf.mxu1  ;;  %vm2135_vm8 = vcmp.gt.f32.partialorder %v1492_v40, 0.0  ;;  %v6152_v39 = vsel %vm2131_vm4, %v1487_v60, %v2387_v36  ;;  %vm2137_vm10 = vcmp.gt.f32.partialorder %v1495_v10, 0.0  ;;  %v6162_v26 = vsel %vm2133_vm6, %v1490_v62, %v2389_v27  ;;  %v8521_v24 = vld [vmem:[#allocation81_spill] sm:$0xff]  ;;  %v4650_v51 = vld [vmem:[%s8172_s1 + $0x1e0] sm:$0xff] }
 0x1b3   :  { %8501 = vst [vmem:[#allocation211_spill] sm:$0xff] %v6089_v63  ;;  %3191 = vperm.xlu2 %4665, %v2917_v13   ;;  %3186 = vperm.xlu1 %4664, %v2916_v2   ;;  %v2393_v13 = vmul.f32 0.01, %v1495_v10  ;;  %v1497_v2 = vadd.f32 %v5353_v50, %v5026_v46  ;;  %v1500_v50 = vadd.f32 %v5377_v16, %v4956_v19  ;;  %vm2138_vm11 = vcmp.gt.f32.partialorder %v1824_v57, 0.0  ;;  %v2924_v63 = vld [vmem:[%s8173_s3 + $0x158] sm:$0xff] }
 0x1b4   :  { %3181 = vperm.xlu0 %4663, %v2915_v21   ;;  %v6125_v21 = vpop.f32.mrf.mxu3  ;;  %v1829_v46 = vadd.f32 %v5387_v9, %v4956_v19  ;;  %v6159_v16 = vsel %vm2132_vm5, %v1816_v28, %v2388_v14  ;;  %v6165_v42 = vsel %vm2134_vm7, %v1819_v15, %v2390_v11  ;;  %v1502_v60 = vadd.f32 %v5405_v0, %v5061_v59 }
 0x1b5   :  { %v3027_v31 = vpop.permute.xlu2 %3026  ;;  %v6109_v25 = vpop.permute.xlu1 %889  ;;  %8505 = vst [vmem:[#allocation215_spill] sm:$0xff] %v6125_v21  ;;  %v2394_v21 = vmul.f32 0.01, %v1824_v57  ;;  %v6170_v36 = vsel %vm2135_vm8, %v1492_v40, %v2391_v58  ;;  %v6173_v19 = vsel %vm2136_vm9, %v1821_v32, %v2392_v56  ;;  %v2395_v9 = vmul.f32 0.01, %v1497_v2 }
 0x1b6   :  { %8502 = vst [vmem:[#allocation212_spill] sm:$0xff] %v6109_v25  ;;  %v6114_v45 = vmul.f32 %v3027_v31, %v6027_v23  ;;  %v6117_v55 = vmul.f32 %v3027_v31, %v6033_v29  ;;  %v6119_v53 = vpop.permute.xlu0 %884  ;;  %v2920_v23 = vld [vmem:[%s8173_s3 + $0x138] sm:$0xff]  ;;  %v2919_v29 = vld [vmem:[%s8173_s3 + $0x130] sm:$0xff]  ;;  %v6177_v28 = vsel %vm2137_vm10, %v1495_v10, %v2393_v13  ;;  %vm2139_vm12 = vcmp.gt.f32.partialorder %v1497_v2, 0.0 }
 0x1b7   :  { %8504 = vst [vmem:[#allocation214_spill] sm:$0xff] %v6119_v53  ;;  %v4617_v31 = vld [vmem:[%s8172_s1 + $0xd8] sm:$0xff]  ;;  %v2918_v53 = vld [vmem:[%s8173_s3 + $0x128] sm:$0xff]  ;;  %v2396_v62 = vmul.f32 0.01, %v1826_v54  ;;  %vm2141_vm13 = vcmp.gt.f32.partialorder %v1500_v50, 0.0  ;;  %v1831_v14 = vadd.f32 %v5412_v41, %v5061_v59  ;;  %v1627_v58 = vadd.f32 %v5030_v48, %v5416_v38 }
 0x1b8   :  { %v2397_v15 = vmul.f32 0.01, %v1500_v50  ;;  %vm2140_vm14 = vcmp.gt.f32.partialorder %v1826_v54, 0.0  ;;  %v2398_v32 = vmul.f32 0.01, %v1829_v46  ;;  %v6197_v56 = vsel %vm2138_vm11, %v1824_v57, %v2394_v21  ;;  %v8510_v59 = vld [vmem:[#allocation9_spill] sm:$0xff]  ;;  %v6203_v13 = vpop.f32.mrf.mxu2 }
 0x1b9   :  { %v6143_v25 = vpop.f32.mrf.mxu0  ;;  %vm2142_vm15 = vcmp.gt.f32.partialorder %v1829_v46, 0.0  ;;  %v1956_v41 = vadd.f32 %v5041_v52, %v5416_v38  ;;  %8512 = vst [vmem:[#allocation9_spill] sm:$0xff] %v6203_v13  ;;  %v2922_v48 = vld [vmem:[%s8173_s3 + $0x148] sm:$0xff]  ;;  %vm2143_vm1 = vcmp.gt.f32.partialorder %v1502_v60, 0.0  ;;  %v6212_v57 = vsel %vm2139_vm12, %v1497_v2, %v2395_v9  ;;  %v8513_v21 = vld [vmem:[#allocation75_spill] sm:$0xff]  ;;  %v8514_v52 = vld [vmem:[#allocation77_spill] sm:$0xff] }
 0x1ba   :  { %8506 = vst [vmem:[#allocation216_spill] sm:$0xff] %v6143_v25  ;;  %v6156_v43 = vpop.f32.mrf.mxu1  ;;  %v1834_v38 = vadd.f32 %v8513_v21, %v8510_v59  ;;  %v2400_v2 = vmul.f32 0.01, %v1831_v14  ;;  %v8517_v9 = vld [vmem:[#allocation21_spill] sm:$0xff]  ;;  %vm2144_vm2 = vcmp.gt.f32.partialorder %v1831_v14, 0.0  ;;  %v8520_v13 = vld [vmem:[#allocation3_spill] sm:$0xff] }
 0x1bb   :  { %8507 = vst [vmem:[#allocation217_spill] sm:$0xff] %v6156_v43  ;;  %3206 = vperm.xlu2 %4665, %v2920_v23   ;;  %3201 = vperm.xlu1 %4664, %v2919_v29   ;;  %v8515_v23 = vld [vmem:[#allocation20_spill] sm:$0xff]  ;;  %v1507_v18 = vadd.f32 %v8521_v24, %v8520_v13  ;;  %vm2243_vm3 = vcmp.gt.f32.partialorder %v1627_v58, 0.0  ;;  %vm2244_vm5 = vcmp.gt.f32.partialorder %v1956_v41, 0.0  ;;  %v8523_v24 = vld [vmem:[#allocation82_spill] sm:$0xff] }
 0x1bc   :  { %3196 = vperm.xlu0 %4663, %v2918_v53   ;;  %4489 = vmatmul.msk.bf16.gmra.mxu0 %vm1262_vm0, %v4617_v31  ;;  %v2399_v53 = vmul.f32 0.01, %v1502_v60  ;;  %v1635_v29 = vadd.f32 %v8515_v23, %v8514_v52  ;;  %v6236_v23 = vsel %vm2142_vm15, %v1829_v46, %v2398_v32  ;;  %vm2146_vm6 = vcmp.gt.f32.partialorder %v1834_v38, 0.0 }
 0x1bd   :  { %4521 = vmatmul.msk.bf16.gmra.mxu2 %vm1262_vm0, %v4649_v12  ;;  %4553 = vmatmul.msk.bf16.gmra.mxu1 %vm1262_vm0, %v4617_v31  ;;  %v3042_v0 = vpop.permute.xlu2 %3041  ;;  %v6181_v40 = vpop.permute.xlu1 %904  ;;  %v6247_v32 = vadd.f32 %v8523_v24, %v8520_v13  ;;  %v8528_v13 = vld [vmem:[#allocation14_spill] sm:$0xff]  ;;  %v8529_v24 = vld [vmem:[#allocation88_spill] sm:$0xff]  ;;  %vm2147_vm9 = vcmp.gt.f32.partialorder %v1507_v18, 0.0 }
 0x1be   :  { %8508 = vst [vmem:[#allocation218_spill] sm:$0xff] %v6181_v40  ;;  %4585 = vmatmul.msk.bf16.gmra.mxu3 %vm1262_vm0, %v4649_v12  ;;  %v6187_v10 = vmul.f32 %v3042_v0, %v6085_v6  ;;  %v6190_v27 = vmul.f32 %v3042_v0, %v6092_v37  ;;  %v6192_v11 = vpop.permute.xlu0 %899  ;;  %v8511_v12 = vld [vmem:[#allocation74_spill] sm:$0xff]  ;;  %v2923_v37 = vld [vmem:[%s8173_s3 + $0x150] sm:$0xff]  ;;  %v2921_v0 = vld [vmem:[%s8173_s3 + $0x140] sm:$0xff]  ;;  %v6227_v40 = vsel %vm2140_vm14, %v1826_v54, %v2396_v62  ;;  %vm2249_vm7 = vcmp.gt.f32.partialorder %v1635_v29, 0.0 }
 0x1bf   :  { %8509 = vst [vmem:[#allocation219_spill] sm:$0xff] %v6192_v11  ;;  %v1505_v6 = vadd.f32 %v8511_v12, %v8510_v59  ;;  %v6224_v12 = vsel %vm2141_vm13, %v1500_v50, %v2397_v15  ;;  %v1964_v11 = vadd.f32 %v8517_v9, %v8514_v52  ;;  %v6231_v59 = vpop.f32.mrf.mxu3  ;;  %v6241_v54 = vsel %vm2143_vm1, %v1502_v60, %v2399_v53 }
 0x1c0   :  { %8518 = vst [vmem:[#allocation75_spill] sm:$0xff] %v6231_v59  ;;  %v2499_v50 = vmul.f32 0.01, %v1627_v58  ;;  %v2500_v15 = vmul.f32 0.01, %v1956_v41  ;;  %v6265_v25 = vadd.f32 %v8529_v24, %v8528_v13  ;;  %vm2148_vm10 = vcmp.gt.f32.partialorder %v6247_v32, 0.0 }
 0x1c1   :  { %v6218_v31 = vpop.f32.mrf.mxu0  ;;  %v2401_v62 = vmul.f32 0.01, %v1505_v6  ;;  %vm2145_vm4 = vcmp.gt.f32.partialorder %v1505_v6, 0.0  ;;  %v2402_v52 = vmul.f32 0.01, %v1834_v38  ;;  %vm2250_vm8 = vcmp.gt.f32.partialorder %v1964_v11, 0.0 }
 0x1c2   :  { %8516 = vst [vmem:[#allocation74_spill] sm:$0xff] %v6218_v31  ;;  %v6233_v21 = vpop.f32.mrf.mxu1  ;;  %v2505_v46 = vmul.f32 0.01, %v1635_v29  ;;  %v8527_v31 = vld [vmem:[#allocation36_spill] sm:$0xff]  ;;  %vm2149_vm13 = vcmp.gt.f32.partialorder %v6265_v25, 0.0 }
 0x1c3   :  { %8519 = vst [vmem:[#allocation77_spill] sm:$0xff] %v6233_v21  ;;  %3221 = vperm.xlu2 %4665, %v2923_v37   ;;  %3216 = vperm.xlu1 %4664, %v2922_v48   ;;  %v2506_v48 = vmul.f32 0.01, %v1964_v11  ;;  %v8526_v21 = vld [vmem:[#allocation35_spill] sm:$0xff]  ;;  %v6261_v43 = vadd.f32 %v8527_v31, %v8525_v44  ;;  %v6280_v31 = vsel %vm2243_vm3, %v1627_v58, %v2499_v50  ;;  %v2404_v50 = vmul.f32 0.01, %v6247_v32 }
 0x1c4   :  { %3211 = vperm.xlu0 %4663, %v2921_v0   ;;  %v2403_v0 = vmul.f32 0.01, %v1507_v18  ;;  %8530 = vst [vmem:[#allocation3_spill] sm:$0xff] %v6280_v31  ;;  %v6299_v58 = vsel %vm2244_vm5, %v1956_v41, %v2500_v15  ;;  %v6308_v31 = vsel %vm2249_vm7, %v1635_v29, %v2505_v46  ;;  %v2405_v15 = vmul.f32 0.01, %v6265_v25 }
 0x1c5   :  { %v3057_v9 = vpop.permute.xlu2 %3056  ;;  %v6243_v59 = vpop.permute.xlu1 %919  ;;  %8533 = vst [vmem:[#allocation82_spill] sm:$0xff] %v6299_v58  ;;  %vm2256_vm12 = vcmp.gt.f32.partialorder %v6261_v43, 0.0 }
 0x1c6   :  { %8522 = vst [vmem:[#allocation20_spill] sm:$0xff] %v6243_v59  ;;  %v6250_v60 = vmul.f32 %v3057_v9, %v6152_v39  ;;  %v6253_v53 = vmul.f32 %v3057_v9, %v6159_v16  ;;  %v6255_v37 = vpop.permute.xlu0 %914  ;;  %v1642_v59 = vadd.f32 %v8526_v21, %v8525_v44  ;;  %v2926_v39 = vld [vmem:[%s8173_s3 + $0x168] sm:$0xff]  ;;  %v2925_v16 = vld [vmem:[%s8173_s3 + $0x160] sm:$0xff]  ;;  %v6277_v44 = vsel %vm2144_vm2, %v1831_v14, %v2400_v2  ;;  %v8531_v9 = vld [vmem:[#allocation89_spill] sm:$0xff] }
 0x1c7   :  { %8524 = vst [vmem:[#allocation21_spill] sm:$0xff] %v6255_v37  ;;  %v4618_v21 = vld [vmem:[%s8172_s1 + $0xe0] sm:$0xff]  ;;  %v1839_v24 = vadd.f32 %v8531_v9, %v8528_v13  ;;  %v6293_v14 = vsel %vm2145_vm4, %v1505_v6, %v2401_v62  ;;  %v6296_v2 = vsel %vm2146_vm6, %v1834_v38, %v2402_v52  ;;  %v6302_v13 = vpop.f32.mrf.mxu2  ;;  %v6311_v6 = vsel %vm2250_vm8, %v1964_v11, %v2506_v48  ;;  %v8539_v38 = vld [vmem:[#allocation5_spill] sm:$0xff]  ;;  %v6322_v46 = vpop.f32.mrf.mxu3 }
 0x1c8   :  { %8534 = vst [vmem:[#allocation83_spill] sm:$0xff] %v6302_v13  ;;  %v8538_v62 = vld [vmem:[#allocation91_spill] sm:$0xff]  ;;  %v6316_v41 = vsel %vm2147_vm9, %v1507_v18, %v2403_v0  ;;  %vm2255_vm11 = vcmp.gt.f32.partialorder %v1642_v59, 0.0  ;;  %v8540_v13 = vld [vmem:[#allocation6_spill] sm:$0xff]  ;;  %v2511_v11 = vmul.f32 0.01, %v1642_v59 }
 0x1c9   :  { %v6284_v37 = vpop.f32.mrf.mxu0  ;;  %8536 = vst [vmem:[#allocation36_spill] sm:$0xff] %v6308_v31  ;;  %v1625_v52 = vadd.f32 %v8539_v38, %v8538_v62  ;;  %v1954_v29 = vadd.f32 %v8540_v13, %v8538_v62  ;;  %v2512_v48 = vmul.f32 0.01, %v6261_v43  ;;  %v8543_v18 = vld [vmem:[#allocation50_spill] sm:$0xff]  ;;  %vm2150_vm14 = vcmp.gt.f32.partialorder %v1839_v24, 0.0 }
 0x1ca   :  { %8532 = vst [vmem:[#allocation81_spill] sm:$0xff] %v6284_v37  ;;  %v6304_v9 = vpop.f32.mrf.mxu1  ;;  %v2927_v37 = vld [vmem:[%s8173_s3 + $0x170] sm:$0xff] }
 0x1cb   :  { %8535 = vst [vmem:[#allocation35_spill] sm:$0xff] %v6304_v9  ;;  %3236 = vperm.xlu2 %4665, %v2926_v39   ;;  %3231 = vperm.xlu1 %4664, %v2925_v16   ;;  %v2406_v39 = vmul.f32 0.01, %v1839_v24  ;;  %v8542_v16 = vld [vmem:[#allocation90_spill] sm:$0xff]  ;;  %vm2241_vm15 = vcmp.gt.f32.partialorder %v1625_v52, 0.0  ;;  %vm2242_vm1 = vcmp.gt.f32.partialorder %v1954_v29, 0.0 }
 0x1cc   :  { %8537 = vst [vmem:[#allocation14_spill] sm:$0xff] %v6311_v6  ;;  %3226 = vperm.xlu0 %4663, %v2924_v63   ;;  %4490 = vmatmul.msk.bf16.gmra.mxu0 %vm1262_vm0, %v4618_v21  ;;  %v6328_v0 = vadd.f32 %v8543_v18, %v8542_v16 }
 0x1cd   :  { %8541 = vst [vmem:[#allocation88_spill] sm:$0xff] %v6322_v46  ;;  %4522 = vmatmul.msk.bf16.gmra.mxu2 %vm1262_vm0, %v4650_v51  ;;  %4554 = vmatmul.msk.bf16.gmra.mxu1 %vm1262_vm0, %v4618_v21  ;;  %v3072_v38 = vpop.permute.xlu2 %3071  ;;  %v3022_v6 = vpop.permute.xlu1 %3021  ;;  %v8544_v21 = vld [vmem:[#allocation51_spill] sm:$0xff] }
 0x1ce   :  { %4586 = vmatmul.msk.bf16.gmra.mxu3 %vm1262_vm0, %v4650_v51  ;;  %v6335_v63 = vmul.f32 %v3072_v38, %v6177_v28  ;;  %v6338_v13 = vmul.f32 %v3072_v38, %v6197_v56  ;;  %v3653_v62 = vmul.f32 %v3022_v6, %v6015_v35  ;;  %v3654_v18 = vmul.f32 %v3022_v6, %v6030_v30  ;;  %v3017_v46 = vpop.permute.xlu0 %3016  ;;  %v2929_v51 = vld [vmem:[%s8173_s3 + $0x180] sm:$0xff]  ;;  %v2928_v28 = vld [vmem:[%s8173_s3 + $0x178] sm:$0xff] }
 0x1cf   :  { %v1979_v31 = vadd.f32 %v8544_v21, %v8542_v16  ;;  %v3651_v58 = vmul.f32 %v3017_v46, %v5985_v17  ;;  %v3652_v9 = vmul.f32 %v3017_v46, %v6018_v8  ;;  %v6355_v35 = vsel %vm2148_vm10, %v6247_v32, %v2404_v50  ;;  %v8546_v8 = vld [vmem:[#allocation13_spill] sm:$0xff]  ;;  %v8547_v6 = vld [vmem:[#allocation94_spill] sm:$0xff] }
 0x1d0   :  { %v2497_v30 = vmul.f32 0.01, %v1625_v52  ;;  %v2498_v56 = vmul.f32 0.01, %v1954_v29  ;;  %v6358_v17 = vsel %vm2255_vm11, %v1642_v59, %v2511_v11  ;;  %v1512_v46 = vadd.f32 %v8547_v6, %v8546_v8 }
 0x1d1   :  { %8545 = vst [vmem:[#allocation89_spill] sm:$0xff] %v6358_v17  ;;  %v3905_v16 = vadd.f32 %v3651_v58, %v6053_v4  ;;  %v4038_v38 = vadd.f32 %v3652_v9, %v6055_v61  ;;  %v6364_v21 = vpop.f32.mrf.mxu0  ;;  %v6374_v59 = vsel %vm2149_vm13, %v6265_v25, %v2405_v15  ;;  %v6377_v50 = vsel %vm2150_vm14, %v1839_v24, %v2406_v39  ;;  %v8549_v25 = vld [vmem:[#allocation96_spill] sm:$0xff]  ;;  %v6390_v24 = vpop.f32.mrf.mxu2  ;;  %v8580_v17 = vld [vmem:[#allocation30_spill] sm:$0xff] }
 0x1d2   :  { %v6369_v32 = vpop.f32.mrf.mxu1  ;;  %v6382_v4 = vsel %vm2256_vm12, %v6261_v43, %v2512_v48  ;;  %vm2261_vm2 = vcmp.gt.f32.partialorder %v6328_v0, 0.0  ;;  %vm2262_vm3 = vcmp.gt.f32.partialorder %v1979_v31, 0.0  ;;  %v2517_v9 = vmul.f32 0.01, %v6328_v0  ;;  %8550 = vst [vmem:[#allocation5_spill] sm:$0xff] %v6390_v24  ;;  %v4651_v24 = vld [vmem:[%s8172_s1 + $0x1e8] sm:$0xff] }
 0x1d3   :  { %8548 = vst [vmem:[#allocation91_spill] sm:$0xff] %v6382_v4  ;;  %v3906_v61 = vadd.f32 %v3905_v16, %v3653_v62  ;;  %v4039_v58 = vadd.f32 %v4038_v38, %v3654_v18  ;;  %3251 = vperm.xlu2 %4665, %v2929_v51   ;;  %3246 = vperm.xlu1 %4664, %v2928_v28   ;;  %v2518_v48 = vmul.f32 0.01, %v1979_v31  ;;  %v2407_v39 = vmul.f32 0.01, %v1512_v46  ;;  %v8553_v62 = vld [vmem:[#allocation98_spill] sm:$0xff]  ;;  %v6404_v38 = vpop.f32.mrf.mxu3 }
 0x1d4   :  { %v6388_v15 = vadd.f32 %v8549_v25, %v8546_v8  ;;  %3241 = vperm.xlu0 %4663, %v2927_v37   ;;  %v6393_v11 = vsel %vm2241_vm15, %v1625_v52, %v2497_v30  ;;  %v6396_v43 = vsel %vm2242_vm1, %v1954_v29, %v2498_v56  ;;  %v8554_v18 = vld [vmem:[#allocation15_spill] sm:$0xff]  ;;  %8555 = vst [vmem:[#allocation50_spill] sm:$0xff] %v6404_v38  ;;  %v8556_v25 = vld [vmem:[#allocation16_spill] sm:$0xff]  ;;  %vm2151_vm4 = vcmp.gt.f32.partialorder %v1512_v46, 0.0  ;;  %v8579_v4 = vld [vmem:[#allocation105_spill] sm:$0xff] }
 0x1d5   :  { %8551 = vst [vmem:[#allocation6_spill] sm:$0xff] %v6393_v11  ;;  %v6400_v51 = vadd.f32 %v8554_v18, %v8553_v62  ;;  %v3907_v28 = vadd.f32 %v3906_v61, %v6114_v45  ;;  %v4040_v8 = vadd.f32 %v4039_v58, %v6117_v55  ;;  %v3087_v6 = vpop.permute.xlu2 %3086  ;;  %v3037_v16 = vpop.permute.xlu1 %3036  ;;  %v1961_v45 = vadd.f32 %v8556_v25, %v8553_v62  ;;  %v8558_v18 = vld [vmem:[#allocation10_spill] sm:$0xff]  ;;  %v8561_v62 = vld [vmem:[#allocation11_spill] sm:$0xff] }
 0x1d6   :  { %8552 = vst [vmem:[#allocation90_spill] sm:$0xff] %v6396_v43  ;;  %v6407_v37 = vmul.f32 %v3087_v6, %v6241_v54  ;;  %v6410_v52 = vmul.f32 %v3087_v6, %v6277_v44  ;;  %v3659_v29 = vmul.f32 %v3037_v16, %v6070_v20  ;;  %v3660_v30 = vmul.f32 %v3037_v16, %v6073_v7  ;;  %v3032_v56 = vpop.permute.xlu0 %3031  ;;  %v8557_v54 = vld [vmem:[#allocation99_spill] sm:$0xff]  ;;  %v2932_v20 = vld [vmem:[%s8173_s3 + $0x198] sm:$0xff]  ;;  %v2931_v7 = vld [vmem:[%s8173_s3 + $0x190] sm:$0xff] }
 0x1d7   :  { %v3657_v55 = vmul.f32 %v3032_v56, %v6036_v34  ;;  %v3658_v61 = vmul.f32 %v3032_v56, %v6039_v3  ;;  %v2408_v58 = vmul.f32 0.01, %v6388_v15  ;;  %v6421_v38 = vadd.f32 %v8558_v18, %v8557_v54  ;;  %v4619_v34 = vld [vmem:[%s8172_s1 + $0xe8] sm:$0xff] }
 0x1d8   :  { %v6435_v3 = vsel %vm2261_vm2, %v6328_v0, %v2517_v9  ;;  %v6438_v44 = vsel %vm2262_vm3, %v1979_v31, %v2518_v48  ;;  %v1959_v6 = vadd.f32 %v8561_v62, %v8557_v54  ;;  %v2930_v18 = vld [vmem:[%s8173_s3 + $0x188] sm:$0xff]  ;;  %vm2152_vm5 = vcmp.gt.f32.partialorder %v6388_v15, 0.0  ;;  %v8562_v0 = vld [vmem:[#allocation97_spill] sm:$0xff]  ;;  %v8564_v48 = vld [vmem:[#allocation66_spill] sm:$0xff] }
 0x1d9   :  { %8559 = vst [vmem:[#allocation51_spill] sm:$0xff] %v6435_v3  ;;  %v3908_v16 = vadd.f32 %v3907_v28, %v3657_v55  ;;  %v4041_v56 = vadd.f32 %v4040_v8, %v3658_v61  ;;  %v6442_v25 = vpop.f32.mrf.mxu0  ;;  %v8563_v31 = vld [vmem:[#allocation65_spill] sm:$0xff]  ;;  %v6457_v28 = vadd.f32 %v8564_v48, %v8562_v0  ;;  %v6462_v55 = vsel %vm2151_vm4, %v1512_v46, %v2407_v39 }
 0x1da   :  { %8560 = vst [vmem:[#allocation13_spill] sm:$0xff] %v6438_v44  ;;  %v6453_v9 = vadd.f32 %v8563_v31, %v8562_v0  ;;  %v6459_v8 = vpop.f32.mrf.mxu1  ;;  %vm2247_vm6 = vcmp.gt.f32.partialorder %v6400_v51, 0.0  ;;  %vm2248_vm7 = vcmp.gt.f32.partialorder %v1961_v45, 0.0  ;;  %v2503_v62 = vmul.f32 0.01, %v6400_v51  ;;  %v8565_v31 = vld [vmem:[#allocation19_spill] sm:$0xff] }
 0x1db   :  { %v3909_v61 = vadd.f32 %v3908_v16, %v3659_v29  ;;  %v4042_v54 = vadd.f32 %v4041_v56, %v3660_v30  ;;  %3266 = vperm.xlu2 %4665, %v2932_v20   ;;  %3261 = vperm.xlu1 %4664, %v2931_v7   ;;  %v8566_v44 = vld [vmem:[#allocation107_spill] sm:$0xff]  ;;  %vm2245_vm8 = vcmp.gt.f32.partialorder %v6421_v38, 0.0  ;;  %v2501_v46 = vmul.f32 0.01, %v6421_v38  ;;  %v8567_v0 = vld [vmem:[#allocation108_spill] sm:$0xff]  ;;  %v6477_v56 = vpop.f32.mrf.mxu2 }
 0x1dc   :  { %v1517_v3 = vadd.f32 %v8566_v44, %v8565_v31  ;;  %3256 = vperm.xlu0 %4663, %v2930_v18   ;;  %4491 = vmatmul.msk.bf16.gmra.mxu0 %vm1262_vm0, %v4619_v34  ;;  %v2504_v39 = vmul.f32 0.01, %v1961_v45  ;;  %v1846_v29 = vadd.f32 %v8567_v0, %v8565_v31  ;;  %v2502_v16 = vmul.f32 0.01, %v1959_v6  ;;  %8568 = vst [vmem:[#allocation94_spill] sm:$0xff] %v6477_v56 }
 0x1dd   :  { %v3910_v30 = vadd.f32 %v3909_v61, %v6187_v10  ;;  %v4043_v20 = vadd.f32 %v4042_v54, %v6190_v27  ;;  %4523 = vmatmul.msk.bf16.gmra.mxu2 %vm1262_vm0, %v4651_v24  ;;  %4555 = vmatmul.msk.bf16.gmra.mxu1 %vm1262_vm0, %v4619_v34  ;;  %v3102_v7 = vpop.permute.xlu2 %3101  ;;  %v3052_v44 = vpop.permute.xlu1 %3051  ;;  %v8569_v54 = vld [vmem:[#allocation4_spill] sm:$0xff]  ;;  %vm2246_vm9 = vcmp.gt.f32.partialorder %v1959_v6, 0.0  ;;  %vm2267_vm1 = vcmp.gt.f32.partialorder %v6453_v9, 0.0 }
 0x1de   :  { %4587 = vmatmul.msk.bf16.gmra.mxu3 %vm1262_vm0, %v4651_v24  ;;  %v6481_v18 = vmul.f32 %v3102_v7, %v6374_v59  ;;  %v6484_v48 = vmul.f32 %v3102_v7, %v6377_v50  ;;  %v3665_v10 = vmul.f32 %v3052_v44, %v6107_v1  ;;  %v3666_v27 = vmul.f32 %v3052_v44, %v6137_v47  ;;  %v3047_v61 = vpop.permute.xlu0 %3046  ;;  %v8570_v34 = vld [vmem:[#allocation100_spill] sm:$0xff]  ;;  %v8571_v59 = vld [vmem:[#allocation102_spill] sm:$0xff]  ;;  %v6498_v50 = vpop.f32.mrf.mxu3  ;;  %v2935_v1 = vld [vmem:[%s8173_s3 + $0x1b0] sm:$0xff] }
 0x1df   :  { %v6490_v31 = vadd.f32 %v8570_v34, %v8569_v54  ;;  %v3663_v0 = vmul.f32 %v3047_v61, %v6095_v33  ;;  %v3664_v56 = vmul.f32 %v3047_v61, %v6098_v5  ;;  %v6496_v24 = vadd.f32 %v8571_v59, %v8569_v54  ;;  %8572 = vst [vmem:[#allocation96_spill] sm:$0xff] %v6498_v50  ;;  %v2934_v47 = vld [vmem:[%s8173_s3 + $0x1a8] sm:$0xff]  ;;  %v2933_v50 = vld [vmem:[%s8173_s3 + $0x1a0] sm:$0xff] }
 0x1e0   :  { %v6509_v33 = vsel %vm2152_vm5, %v6388_v15, %v2408_v58  ;;  %v6514_v5 = vsel %vm2247_vm6, %v6400_v51, %v2503_v62  ;;  %v6517_v7 = vsel %vm2248_vm7, %v1961_v45, %v2504_v39  ;;  %v2411_v44 = vmul.f32 0.01, %v1517_v3  ;;  %v8577_v62 = vld [vmem:[#allocation24_spill] sm:$0xff]  ;;  %v8578_v39 = vld [vmem:[#allocation127_spill] sm:$0xff] }
 0x1e1   :  { %8573 = vst [vmem:[#allocation98_spill] sm:$0xff] %v6514_v5  ;;  %v2412_v61 = vmul.f32 0.01, %v1846_v29  ;;  %v3911_v54 = vadd.f32 %v3910_v30, %v3663_v0  ;;  %v4044_v34 = vadd.f32 %v4043_v20, %v3664_v56  ;;  %v6519_v59 = vpop.f32.mrf.mxu0  ;;  %vm2155_vm10 = vcmp.gt.f32.partialorder %v1517_v3, 0.0 }
 0x1e2   :  { %8574 = vst [vmem:[#allocation15_spill] sm:$0xff] %v6517_v7  ;;  %v6524_v15 = vpop.f32.mrf.mxu1  ;;  %vm2156_vm11 = vcmp.gt.f32.partialorder %v1846_v29, 0.0  ;;  %v6529_v51 = vsel %vm2245_vm8, %v6421_v38, %v2501_v46  ;;  %v6532_v45 = vsel %vm2246_vm9, %v1959_v6, %v2502_v16  ;;  %v2409_v58 = vmul.f32 0.01, %v6490_v31  ;;  %v8581_v38 = vld [vmem:[#allocation129_spill] sm:$0xff] }
 0x1e3   :  { %8575 = vst [vmem:[#allocation16_spill] sm:$0xff] %v6529_v51  ;;  %v1525_v30 = vadd.f32 %v8578_v39, %v8577_v62  ;;  %v3912_v20 = vadd.f32 %v3911_v54, %v3665_v10  ;;  %v4045_v56 = vadd.f32 %v4044_v34, %v3666_v27  ;;  %3281 = vperm.xlu2 %4665, %v2935_v1   ;;  %v6538_v0 = vmul.f32 0.01, %v6496_v24  ;;  %v8582_v39 = vld [vmem:[#allocation31_spill] sm:$0xff] }
 0x1e4   :  { %8576 = vst [vmem:[#allocation99_spill] sm:$0xff] %v6532_v45  ;;  %3276 = vperm.xlu1 %4664, %v2934_v47   ;;  %v6542_v7 = vadd.f32 %v8580_v17, %v8579_v4  ;;  %v1854_v6 = vadd.f32 %v8581_v38, %v8577_v62  ;;  %3271 = vperm.xlu0 %4663, %v2933_v50   ;;  %vm2153_vm12 = vcmp.gt.f32.partialorder %v6490_v31, 0.0  ;;  %v8587_v38 = vld [vmem:[#allocation25_spill] sm:$0xff]  ;;  %vm2154_vm13 = vcmp.gt.f32.partialorder %v6496_v24, 0.0 }
 0x1e5   :  { %v3913_v46 = vadd.f32 %v3912_v20, %v6250_v60  ;;  %v4046_v16 = vadd.f32 %v4045_v56, %v6253_v53  ;;  %v3117_v10 = vpop.permute.xlu2 %3116  ;;  %v2667_v27 = vsel %vm2155_vm10, %v1517_v3, %v2411_v44  ;;  %v2668_v1 = vsel %vm2156_vm11, %v1846_v29, %v2412_v61  ;;  %v3067_v47 = vpop.permute.xlu1 %3066  ;;  %v8583_v29 = vld [vmem:[#allocation104_spill] sm:$0xff]  ;;  %v8584_v44 = vld [vmem:[#allocation85_spill] sm:$0xff]  ;;  %v8586_v56 = vld [vmem:[#allocation106_spill] sm:$0xff] }
 0x1e6   :  { %v6551_v54 = vmul.f32 %v3117_v10, %v2667_v27  ;;  %v6553_v17 = vmul.f32 %v3117_v10, %v2668_v1  ;;  %v3671_v34 = vmul.f32 %v3067_v47, %v6170_v36  ;;  %v3672_v50 = vmul.f32 %v3067_v47, %v6173_v19  ;;  %v3062_v62 = vpop.permute.xlu0 %3061  ;;  %v6571_v19 = vpop.f32.mrf.mxu2 }
 0x1e7   :  { %v6559_v60 = vadd.f32 %v8582_v39, %v8579_v4  ;;  %v2417_v53 = vmul.f32 0.01, %v1525_v30  ;;  %v3669_v20 = vmul.f32 %v3062_v62, %v6162_v26  ;;  %v3670_v3 = vmul.f32 %v3062_v62, %v6165_v42  ;;  %8588 = vst [vmem:[#allocation11_spill] sm:$0xff] %v6571_v19  ;;  %v2938_v4 = vld [vmem:[%s8173_s3 + $0x1c8] sm:$0xff]  ;;  %v2937_v26 = vld [vmem:[%s8173_s3 + $0x1c0] sm:$0xff]  ;;  %v4620_v42 = vld [vmem:[%s8172_s1 + $0xf0] sm:$0xff] }
 0x1e8   :  { %v6565_v61 = vadd.f32 %v8584_v44, %v8583_v29  ;;  %v6569_v10 = vadd.f32 %v8587_v38, %v8586_v56  ;;  %v2418_v36 = vmul.f32 0.01, %v1854_v6  ;;  %v2936_v62 = vld [vmem:[%s8173_s3 + $0x1b8] sm:$0xff]  ;;  %v4652_v39 = vld [vmem:[%s8172_s1 + $0x1f0] sm:$0xff]  ;;  %vm2161_vm14 = vcmp.gt.f32.partialorder %v1525_v30, 0.0  ;;  %v8589_v44 = vld [vmem:[#allocation87_spill] sm:$0xff] }
 0x1e9   :  { %v3914_v27 = vadd.f32 %v3913_v46, %v3669_v20  ;;  %v4047_v1 = vadd.f32 %v4046_v16, %v3670_v3  ;;  %v6583_v47 = vpop.f32.mrf.mxu0  ;;  %vm2162_vm15 = vcmp.gt.f32.partialorder %v1854_v6, 0.0  ;;  %v6594_v38 = vadd.f32 %v8589_v44, %v8583_v29  ;;  %v8591_v46 = vld [vmem:[#allocation26_spill] sm:$0xff]  ;;  %v6600_v20 = vpop.f32.mrf.mxu3  ;;  %v8594_v44 = vld [vmem:[#allocation147_spill] sm:$0xff] }
 0x1ea   :  { %8585 = vst [vmem:[#allocation10_spill] sm:$0xff] %v6565_v61  ;;  %v6598_v16 = vadd.f32 %v8591_v46, %v8586_v56  ;;  %v6602_v3 = vpop.f32.mrf.mxu1  ;;  %v6607_v19 = vsel %vm2153_vm12, %v6490_v31, %v2409_v58  ;;  %vm2253_vm2 = vcmp.gt.f32.partialorder %v6542_v7, 0.0  ;;  %vm2254_vm3 = vcmp.gt.f32.partialorder %v6559_v60, 0.0  ;;  %v8593_v56 = vld [vmem:[#allocation29_spill] sm:$0xff] }
 0x1eb   :  { %8590 = vst [vmem:[#allocation97_spill] sm:$0xff] %v6594_v38  ;;  %v3915_v5 = vadd.f32 %v3914_v27, %v3671_v34  ;;  %v4048_v45 = vadd.f32 %v4047_v1, %v3672_v50  ;;  %3296 = vperm.xlu2 %4665, %v2938_v4   ;;  %v2509_v29 = vmul.f32 0.01, %v6542_v7  ;;  %v1532_v46 = vadd.f32 %v8594_v44, %v8593_v56  ;;  %v8595_v34 = vld [vmem:[#allocation148_spill] sm:$0xff] }
 0x1ec   :  { %8592 = vst [vmem:[#allocation65_spill] sm:$0xff] %v6600_v20  ;;  %3291 = vperm.xlu1 %4664, %v2937_v26   ;;  %3286 = vperm.xlu0 %4663, %v2936_v62   ;;  %v2673_v20 = vsel %vm2161_vm14, %v1525_v30, %v2417_v53  ;;  %v2674_v31 = vsel %vm2162_vm15, %v1854_v6, %v2418_v36  ;;  %v2510_v58 = vmul.f32 0.01, %v6559_v60  ;;  %vm2268_vm4 = vcmp.gt.f32.partialorder %v6457_v28, 0.0  ;;  %v2940_v62 = vld [vmem:[%s8173_s3 + $0x1d8] sm:$0xff] }
 0x1ed   :  { %4492 = vmatmul.msk.bf16.gmra.mxu0 %vm1262_vm0, %v4620_v42  ;;  %v1861_v50 = vadd.f32 %v8595_v34, %v8593_v56  ;;  %v3916_v4 = vadd.f32 %v3915_v5, %v6335_v63  ;;  %v4049_v26 = vadd.f32 %v4048_v45, %v6338_v13  ;;  %4524 = vmatmul.msk.bf16.gmra.mxu2 %vm1262_vm0, %v4652_v39  ;;  %v3132_v27 = vpop.permute.xlu2 %3131  ;;  %v3082_v1 = vpop.permute.xlu1 %3081  ;;  %v2507_v30 = vmul.f32 0.01, %v6569_v10 }
 0x1ee   :  { %4556 = vmatmul.msk.bf16.gmra.mxu1 %vm1262_vm0, %v4620_v42  ;;  %4588 = vmatmul.msk.bf16.gmra.mxu3 %vm1262_vm0, %v4652_v39  ;;  %v6627_v6 = vmul.f32 %v3132_v27, %v2673_v20  ;;  %v6629_v53 = vmul.f32 %v3132_v27, %v2674_v31  ;;  %v3677_v36 = vmul.f32 %v3082_v1, %v6224_v12  ;;  %v3077_v5 = vpop.permute.xlu0 %3076  ;;  %vm2251_vm5 = vcmp.gt.f32.partialorder %v6569_v10, 0.0  ;;  %v2941_v42 = vld [vmem:[%s8173_s3 + $0x1e0] sm:$0xff] }
 0x1ef   :  { %v3678_v63 = vmul.f32 %v3082_v1, %v6236_v23  ;;  %v3675_v13 = vmul.f32 %v3077_v5, %v6212_v57  ;;  %v3676_v45 = vmul.f32 %v3077_v5, %v6227_v40  ;;  %vm2252_vm6 = vcmp.gt.f32.partialorder %v6598_v16, 0.0 }
 0x1f0   :  { %v6647_v12 = vsel %vm2154_vm13, %v6496_v24, %v6538_v0  ;;  %v2508_v40 = vmul.f32 0.01, %v6598_v16  ;;  %v6653_v57 = vsel %vm2253_vm2, %v6542_v7, %v2509_v29  ;;  %v2523_v23 = vmul.f32 0.01, %v6453_v9  ;;  %v2939_v24 = vld [vmem:[%s8173_s3 + $0x1d0] sm:$0xff]  ;;  %v6661_v0 = vpop.f32.mrf.mxu2 }
 0x1f1   :  { %8596 = vst [vmem:[#allocation66_spill] sm:$0xff] %v6653_v57  ;;  %v2423_v39 = vmul.f32 0.01, %v1532_v46  ;;  %v2424_v20 = vmul.f32 0.01, %v1861_v50  ;;  %v3917_v56 = vadd.f32 %v3916_v4, %v3675_v13  ;;  %v4050_v44 = vadd.f32 %v4049_v26, %v3676_v45  ;;  %v6656_v31 = vpop.f32.mrf.mxu0  ;;  %v8600_v4 = vld [vmem:[#allocation34_spill] sm:$0xff] }
 0x1f2   :  { %8597 = vst [vmem:[#allocation19_spill] sm:$0xff] %v6661_v0  ;;  %v6663_v34 = vpop.f32.mrf.mxu1  ;;  %vm2167_vm7 = vcmp.gt.f32.partialorder %v1532_v46, 0.0  ;;  %vm2168_vm8 = vcmp.gt.f32.partialorder %v1861_v50, 0.0  ;;  %v6668_v7 = vsel %vm2251_vm5, %v6569_v10, %v2507_v30  ;;  %v6673_v29 = vsel %vm2254_vm3, %v6559_v60, %v2510_v58  ;;  %v8601_v26 = vld [vmem:[#allocation166_spill] sm:$0xff]  ;;  %v8604_v10 = vld [vmem:[#allocation168_spill] sm:$0xff] }
 0x1f3   :  { %8598 = vst [vmem:[#allocation107_spill] sm:$0xff] %v6668_v7  ;;  %v1540_v27 = vadd.f32 %v8601_v26, %v8600_v4  ;;  %v3918_v1 = vadd.f32 %v3917_v56, %v3677_v36  ;;  %v4051_v5 = vadd.f32 %v4050_v44, %v3678_v63  ;;  %3311 = vperm.xlu2 %4665, %v2941_v42   ;;  %v2524_v13 = vmul.f32 0.01, %v6457_v28  ;;  %v8602_v45 = vld [vmem:[#allocation18_spill] sm:$0xff]  ;;  %v6684_v7 = vpop.f32.mrf.mxu3  ;;  %v8614_v26 = vld [vmem:[#allocation121_spill] sm:$0xff] }
 0x1f4   :  { %8599 = vst [vmem:[#allocation108_spill] sm:$0xff] %v6673_v29  ;;  %3306 = vperm.xlu1 %4664, %v2940_v62   ;;  %v8603_v0 = vld [vmem:[#allocation114_spill] sm:$0xff]  ;;  %v1869_v30 = vadd.f32 %v8604_v10, %v8600_v4  ;;  %3301 = vperm.xlu0 %4663, %v2939_v24   ;;  %v6689_v60 = vsel %vm2252_vm6, %v6598_v16, %v2508_v40  ;;  %v8612_v4 = vld [vmem:[#allocation115_spill] sm:$0xff] }
 0x1f5   :  { %v6680_v57 = vadd.f32 %v8603_v0, %v8602_v45  ;;  %8605 = vst [vmem:[#allocation4_spill] sm:$0xff] %v6684_v7  ;;  %v6694_v58 = vsel %vm2267_vm1, %v6453_v9, %v2523_v23  ;;  %v3919_v36 = vadd.f32 %v3918_v1, %v6407_v37  ;;  %v4052_v63 = vadd.f32 %v4051_v5, %v6410_v52  ;;  %v3147_v42 = vpop.permute.xlu2 %3146  ;;  %v3097_v44 = vpop.permute.xlu1 %3096  ;;  %v4621_v5 = vld [vmem:[%s8172_s1 + $0xf8] sm:$0xff] }
 0x1f6   :  { %8606 = vst [vmem:[#allocation100_spill] sm:$0xff] %v6689_v60  ;;  %v2679_v62 = vsel %vm2167_vm7, %v1532_v46, %v2423_v39  ;;  %v2680_v56 = vsel %vm2168_vm8, %v1861_v50, %v2424_v20  ;;  %v3683_v16 = vmul.f32 %v3097_v44, %v6316_v41  ;;  %v3684_v40 = vmul.f32 %v3097_v44, %v6355_v35  ;;  %v3092_v9 = vpop.permute.xlu0 %3091  ;;  %v8609_v50 = vld [vmem:[#allocation110_spill] sm:$0xff]  ;;  %v8610_v39 = vld [vmem:[#allocation109_spill] sm:$0xff]  ;;  %v8613_v35 = vld [vmem:[#allocation7_spill] sm:$0xff] }
 0x1f7   :  { %8607 = vst [vmem:[#allocation102_spill] sm:$0xff] %v6694_v58  ;;  %v6700_v24 = vmul.f32 %v3147_v42, %v2679_v62  ;;  %v6702_v0 = vmul.f32 %v3147_v42, %v2680_v56  ;;  %v2429_v23 = vmul.f32 0.01, %v1540_v27  ;;  %v3681_v37 = vmul.f32 %v3092_v9, %v6293_v14  ;;  %v2942_v42 = vld [vmem:[%s8173_s3 + $0x1e8] sm:$0xff]  ;;  %v4653_v62 = vld [vmem:[%s8172_s1 + $0x1f8] sm:$0xff] }
 0x1f8   :  { %v3682_v52 = vmul.f32 %v3092_v9, %v6296_v2  ;;  %v6711_v46 = vsel %vm2268_vm4, %v6457_v28, %v2524_v13  ;;  %v6715_v20 = vadd.f32 %v8610_v39, %v8609_v50  ;;  %v6719_v41 = vadd.f32 %v8612_v4, %v8602_v45  ;;  %v2944_v2 = vld [vmem:[%s8173_s3 + $0x1f8] sm:$0xff]  ;;  %v2943_v28 = vld [vmem:[%s8173_s3 + $0x1f0] sm:$0xff]  ;;  %v8615_v56 = vld [vmem:[#allocation112_spill] sm:$0xff] }
 0x1f9   :  { %8608 = vst [vmem:[#allocation24_spill] sm:$0xff] %v6711_v46  ;;  %v6723_v1 = vadd.f32 %v8614_v26, %v8613_v35  ;;  %v2430_v14 = vmul.f32 0.01, %v1869_v30  ;;  %v3920_v13 = vadd.f32 %v3919_v36, %v3681_v37  ;;  %v6734_v10 = vpop.f32.mrf.mxu0  ;;  %vm2173_vm9 = vcmp.gt.f32.partialorder %v1540_v27, 0.0  ;;  %v8617_v9 = vld [vmem:[#allocation111_spill] sm:$0xff]  ;;  %v8618_v39 = vld [vmem:[#allocation45_spill] sm:$0xff] }
 0x1fa   :  { %8611 = vst [vmem:[#allocation127_spill] sm:$0xff] %v6715_v20  ;;  %v4053_v45 = vadd.f32 %v4052_v63, %v3682_v52  ;;  %vm2174_vm10 = vcmp.gt.f32.partialorder %v1869_v30, 0.0  ;;  %v6744_v44 = vadd.f32 %v8615_v56, %v8609_v50  ;;  %v6748_v36 = vadd.f32 %v8618_v39, %v8617_v9  ;;  %v8619_v63 = vld [vmem:[#allocation46_spill] sm:$0xff]  ;;  %v6755_v4 = vpop.f32.mrf.mxu1  ;;  %v6761_v56 = vpop.f32.mrf.mxu2  ;;  %v8643_v20 = vld [vmem:[#allocation173_spill] sm:$0xff] }
 0x1fb   :  { %v6752_v37 = vadd.f32 %v8619_v63, %v8617_v9  ;;  %v2413_v52 = vmul.f32 0.01, %v6680_v57  ;;  %v8620_v26 = vld [vmem:[#allocation122_spill] sm:$0xff]  ;;  %v3921_v46 = vadd.f32 %v3920_v13, %v3683_v16  ;;  %3326 = vperm.xlu2 %4665, %v2944_v2   ;;  %vm2157_vm11 = vcmp.gt.f32.partialorder %v6680_v57, 0.0  ;;  %8621 = vst [vmem:[#allocation30_spill] sm:$0xff] %v6761_v56  ;;  %v8625_v63 = vld [vmem:[#allocation23_spill] sm:$0xff] }
 0x1fc   :  { %8616 = vst [vmem:[#allocation105_spill] sm:$0xff] %v6744_v44  ;;  %v1851_v7 = vadd.f32 %v8620_v26, %v8613_v35  ;;  %v4054_v58 = vadd.f32 %v4053_v45, %v3684_v40  ;;  %3321 = vperm.xlu1 %4664, %v2943_v28   ;;  %v2414_v50 = vmul.f32 0.01, %v6719_v41  ;;  %3316 = vperm.xlu0 %4663, %v2942_v42   ;;  %vm2158_vm12 = vcmp.gt.f32.partialorder %v6719_v41, 0.0  ;;  %v8622_v40 = vld [vmem:[#allocation39_spill] sm:$0xff]  ;;  %v8626_v26 = vld [vmem:[#allocation133_spill] sm:$0xff] }
 0x1fd   :  { %4493 = vmatmul.msk.bf16.gmra.mxu0 %vm1262_vm0, %v4621_v5  ;;  %v2685_v9 = vsel %vm2173_vm9, %v1540_v27, %v2429_v23  ;;  %v2686_v39 = vsel %vm2174_vm10, %v1869_v30, %v2430_v14  ;;  %v2415_v16 = vmul.f32 0.01, %v6723_v1  ;;  %v8623_v35 = vld [vmem:[#allocation187_spill] sm:$0xff]  ;;  %v3922_v28 = vadd.f32 %v3921_v46, %v6481_v18  ;;  %4525 = vmatmul.msk.bf16.gmra.mxu2 %vm1262_vm0, %v4653_v62  ;;  %v3162_v45 = vpop.permute.xlu2 %3161  ;;  %v3112_v42 = vpop.permute.xlu1 %3111 }
 0x1fe   :  { %v1547_v2 = vadd.f32 %v8623_v35, %v8622_v40  ;;  %v4055_v13 = vadd.f32 %v4054_v58, %v6484_v48  ;;  %4557 = vmatmul.msk.bf16.gmra.mxu1 %vm1262_vm0, %v4621_v5  ;;  %v6774_v27 = vpop.f32.mrf.mxu3  ;;  %4589 = vmatmul.msk.bf16.gmra.mxu3 %vm1262_vm0, %v4653_v62  ;;  %v6777_v30 = vmul.f32 %v3162_v45, %v2685_v9  ;;  %v3107_v46 = vpop.permute.xlu0 %3106  ;;  %v2416_v48 = vmul.f32 0.01, %v1851_v7  ;;  %v8627_v62 = vld [vmem:[#allocation135_spill] sm:$0xff] }
 0x1ff   :  { %8624 = vst [vmem:[#allocation129_spill] sm:$0xff] %v6774_v27  ;;  %v6779_v23 = vmul.f32 %v3162_v45, %v2686_v39  ;;  %v3689_v14 = vmul.f32 %v3112_v42, %v6607_v19  ;;  %v3690_v18 = vmul.f32 %v3112_v42, %v6647_v12  ;;  %v3687_v58 = vmul.f32 %v3107_v46, %v6462_v55  ;;  %v2947_v19 = vld [vmem:[%s8173_s3 + $0x210] sm:$0xff]  ;;  %v2946_v12 = vld [vmem:[%s8173_s3 + $0x208] sm:$0xff] }
 0x200   :  { %v3688_v5 = vmul.f32 %v3107_v46, %v6509_v33  ;;  %vm2159_vm13 = vcmp.gt.f32.partialorder %v6723_v1, 0.0  ;;  %v1527_v35 = vadd.f32 %v8626_v26, %v8625_v63  ;;  %v1856_v9 = vadd.f32 %v8627_v62, %v8625_v63  ;;  %v8628_v33 = vld [vmem:[#allocation8_spill] sm:$0xff]  ;;  %v2945_v62 = vld [vmem:[%s8173_s3 + $0x200] sm:$0xff]  ;;  %v8630_v27 = vld [vmem:[#allocation141_spill] sm:$0xff] }
 0x201   :  { %vm2160_vm0 = vcmp.gt.f32.partialorder %v1851_v7, 0.0  ;;  %v2669_v55 = vsel %vm2157_vm11, %v6680_v57, %v2413_v52  ;;  %v8629_v39 = vld [vmem:[#allocation140_spill] sm:$0xff]  ;;  %v2435_v42 = vmul.f32 0.01, %v1547_v2  ;;  %v3923_v46 = vadd.f32 %v3922_v28, %v3687_v58  ;;  %v6801_v63 = vpop.f32.mrf.mxu0 }
 0x202   :  { %v1530_v45 = vadd.f32 %v8629_v39, %v8628_v33  ;;  %v4056_v26 = vadd.f32 %v4055_v13, %v3688_v5  ;;  %v1859_v56 = vadd.f32 %v8630_v27, %v8628_v33  ;;  %v6808_v29 = vpop.f32.mrf.mxu1  ;;  %vm2179_vm14 = vcmp.gt.f32.partialorder %v1547_v2, 0.0 }
 0x203   :  { %v2671_v57 = vsel %vm2159_vm13, %v6723_v1, %v2415_v16  ;;  %v2670_v52 = vsel %vm2158_vm12, %v6719_v41, %v2414_v50  ;;  %v3924_v28 = vadd.f32 %v3923_v46, %v3689_v14  ;;  %3341 = vperm.xlu2 %4665, %v2947_v19   ;;  %v2672_v58 = vsel %vm2160_vm0, %v1851_v7, %v2416_v48 }
 0x204   :  { %v4057_v13 = vadd.f32 %v4056_v26, %v3690_v18  ;;  %3336 = vperm.xlu1 %4664, %v2946_v12   ;;  %v2419_v5 = vmul.f32 0.01, %v1527_v35  ;;  %v2420_v39 = vmul.f32 0.01, %v1856_v9  ;;  %3331 = vperm.xlu0 %4663, %v2945_v62   ;;  %vm2163_vm15 = vcmp.gt.f32.partialorder %v1527_v35, 0.0  ;;  %v8631_v26 = vld [vmem:[#allocation113_spill] sm:$0xff] }
 0x205   :  { %vm2164_vm1 = vcmp.gt.f32.partialorder %v1856_v9, 0.0  ;;  %v2421_v27 = vmul.f32 0.01, %v1530_v45  ;;  %v3925_v33 = vadd.f32 %v3924_v28, %v6551_v54  ;;  %v6819_v16 = vpop.permute.xlu2 %3176  ;;  %v2691_v41 = vsel %vm2179_vm14, %v1547_v2, %v2435_v42  ;;  %v3127_v50 = vpop.permute.xlu1 %3126  ;;  %v8632_v54 = vld [vmem:[#allocation40_spill] sm:$0xff]  ;;  %v8637_v42 = vld [vmem:[#allocation154_spill] sm:$0xff] }
 0x206   :  { %v4058_v1 = vadd.f32 %v4057_v13, %v6553_v17  ;;  %v2422_v14 = vmul.f32 0.01, %v1859_v56  ;;  %v6823_v18 = vmul.f32 %v6819_v16, %v2691_v41  ;;  %v3695_v7 = vmul.f32 %v3127_v50, %v2671_v57  ;;  %v3122_v19 = vpop.permute.xlu0 %3121  ;;  %v8634_v17 = vld [vmem:[#allocation41_spill] sm:$0xff]  ;;  %v8636_v2 = vld [vmem:[#allocation28_spill] sm:$0xff]  ;;  %v8638_v41 = vld [vmem:[#allocation155_spill] sm:$0xff] }
 0x207   :  { %v3696_v48 = vmul.f32 %v3127_v50, %v2672_v58  ;;  %v3693_v12 = vmul.f32 %v3122_v19, %v2669_v55  ;;  %v3694_v46 = vmul.f32 %v3122_v19, %v2670_v52  ;;  %vm2165_vm2 = vcmp.gt.f32.partialorder %v1530_v45, 0.0  ;;  %v2950_v55 = vld [vmem:[%s8173_s3 + $0x228] sm:$0xff]  ;;  %v2949_v52 = vld [vmem:[%s8173_s3 + $0x220] sm:$0xff] }
 0x208   :  { %vm2166_vm3 = vcmp.gt.f32.partialorder %v1859_v56, 0.0  ;;  %v6827_v62 = vadd.f32 %v8632_v54, %v8631_v26  ;;  %v6831_v28 = vadd.f32 %v8634_v17, %v8631_v26  ;;  %v1535_v13 = vadd.f32 %v8637_v42, %v8636_v2  ;;  %v8639_v58 = vld [vmem:[#allocation12_spill] sm:$0xff]  ;;  %v8641_v26 = vld [vmem:[#allocation162_spill] sm:$0xff] }
 0x209   :  { %v1864_v57 = vadd.f32 %v8638_v41, %v8636_v2  ;;  %v8640_v50 = vld [vmem:[#allocation160_spill] sm:$0xff]  ;;  %v1866_v54 = vadd.f32 %v8641_v26, %v8639_v58  ;;  %v3926_v17 = vadd.f32 %v3925_v33, %v3693_v12  ;;  %v4059_v60 = vadd.f32 %v4058_v1, %v3694_v46  ;;  %v6847_v42 = vpop.f32.mrf.mxu0  ;;  %v2948_v2 = vld [vmem:[%s8173_s3 + $0x218] sm:$0xff] }
 0x20a   :  { %8633 = vst [vmem:[#allocation31_spill] sm:$0xff] %v6827_v62  ;;  %v1537_v19 = vadd.f32 %v8640_v50, %v8639_v58  ;;  %v6852_v41 = vpop.f32.mrf.mxu1  ;;  %v2677_v51 = vsel %vm2165_vm2, %v1530_v45, %v2421_v27  ;;  %v2678_v43 = vsel %vm2166_vm3, %v1859_v56, %v2422_v14  ;;  %v2675_v11 = vsel %vm2163_vm15, %v1527_v35, %v2419_v5  ;;  %v8642_v50 = vld [vmem:[#allocation33_spill] sm:$0xff]  ;;  %v8665_v62 = vld [vmem:[#allocation74_spill] sm:$0xff] }
 0x20b   :  { %8635 = vst [vmem:[#allocation104_spill] sm:$0xff] %v6831_v28  ;;  %v2676_v44 = vsel %vm2164_vm1, %v1856_v9, %v2420_v39  ;;  %v1542_v38 = vadd.f32 %v8643_v20, %v8642_v50  ;;  %v3927_v58 = vadd.f32 %v3926_v17, %v3695_v7  ;;  %v4060_v33 = vadd.f32 %v4059_v60, %v3696_v48  ;;  %v8644_v20 = vld [vmem:[#allocation174_spill] sm:$0xff] }
 0x20c   :  { %3356 = vperm.xlu2 %4665, %v2950_v55   ;;  %3351 = vperm.xlu1 %4664, %v2949_v52   ;;  %v2425_v1 = vmul.f32 0.01, %v1535_v13  ;;  %v2426_v12 = vmul.f32 0.01, %v1864_v57  ;;  %vm2169_vm4 = vcmp.gt.f32.partialorder %v1535_v13, 0.0  ;;  %vm2170_vm5 = vcmp.gt.f32.partialorder %v1864_v57, 0.0 }
 0x20d   :  { %3346 = vperm.xlu0 %4663, %v2948_v2   ;;  %v2427_v46 = vmul.f32 0.01, %v1537_v19  ;;  %v2428_v26 = vmul.f32 0.01, %v1866_v54  ;;  %v3928_v56 = vadd.f32 %v3927_v58, %v6627_v6  ;;  %v4061_v35 = vadd.f32 %v4060_v33, %v6629_v53  ;;  %v6860_v45 = vpop.permute.xlu2 %3191  ;;  %v3142_v9 = vpop.permute.xlu1 %3141  ;;  %v8645_v55 = vld [vmem:[#allocation17_spill] sm:$0xff]  ;;  %v8646_v52 = vld [vmem:[#allocation180_spill] sm:$0xff] }
 0x20e   :  { %v1871_v5 = vadd.f32 %v8644_v20, %v8642_v50  ;;  %v3701_v60 = vmul.f32 %v3142_v9, %v2677_v51  ;;  %v3702_v39 = vmul.f32 %v3142_v9, %v2678_v43  ;;  %v3137_v27 = vpop.permute.xlu0 %3136  ;;  %vm2171_vm6 = vcmp.gt.f32.partialorder %v1537_v19, 0.0  ;;  %v8647_v6 = vld [vmem:[#allocation181_spill] sm:$0xff]  ;;  %v2953_v2 = vld [vmem:[%s8173_s3 + $0x240] sm:$0xff]  ;;  %v2952_v43 = vld [vmem:[%s8173_s3 + $0x238] sm:$0xff] }
 0x20f   :  { %v2431_v14 = vmul.f32 0.01, %v1542_v38  ;;  %v3699_v7 = vmul.f32 %v3137_v27, %v2675_v11  ;;  %v3700_v48 = vmul.f32 %v3137_v27, %v2676_v44  ;;  %vm2172_vm7 = vcmp.gt.f32.partialorder %v1866_v54, 0.0  ;;  %v8648_v11 = vld [vmem:[#allocation188_spill] sm:$0xff]  ;;  %v2951_v9 = vld [vmem:[%s8173_s3 + $0x230] sm:$0xff] }
 0x210   :  { %v1545_v17 = vadd.f32 %v8646_v52, %v8645_v55  ;;  %v1874_v53 = vadd.f32 %v8647_v6, %v8645_v55  ;;  %v2681_v51 = vsel %vm2169_vm4, %v1535_v13, %v2425_v1  ;;  %vm2175_vm8 = vcmp.gt.f32.partialorder %v1542_v38, 0.0  ;;  %v8649_v55 = vld [vmem:[#allocation38_spill] sm:$0xff]  ;;  %v8650_v52 = vld [vmem:[#allocation193_spill] sm:$0xff] }
 0x211   :  { %v1876_v44 = vadd.f32 %v8648_v11, %v8622_v40  ;;  %v3929_v50 = vadd.f32 %v3928_v56, %v3699_v7  ;;  %v4062_v58 = vadd.f32 %v4061_v35, %v3700_v48  ;;  %v6877_v33 = vpop.f32.mrf.mxu0  ;;  %v2682_v20 = vsel %vm2170_vm5, %v1864_v57, %v2426_v12  ;;  %v8653_v11 = vld [vmem:[#allocation199_spill] sm:$0xff] }
 0x212   :  { %v2432_v27 = vmul.f32 0.01, %v1871_v5  ;;  %v1550_v6 = vadd.f32 %v8650_v52, %v8649_v55  ;;  %v6885_v61 = vpop.f32.mrf.mxu1  ;;  %v2683_v13 = vsel %vm2171_vm6, %v1537_v19, %v2427_v46  ;;  %v2684_v40 = vsel %vm2172_vm7, %v1866_v54, %v2428_v26  ;;  %v2956_v52 = vld [vmem:[%s8173_s3 + $0x258] sm:$0xff] }
 0x213   :  { %v3930_v1 = vadd.f32 %v3929_v50, %v3701_v60  ;;  %v4063_v56 = vadd.f32 %v4062_v58, %v3702_v39  ;;  %vm2176_vm9 = vcmp.gt.f32.partialorder %v1871_v5, 0.0  ;;  %v2687_v35 = vsel %vm2175_vm8, %v1542_v38, %v2431_v14  ;;  %v8651_v60 = vld [vmem:[#allocation195_spill] sm:$0xff] }
 0x214   :  { %3371 = vperm.xlu2 %4665, %v2953_v2   ;;  %3366 = vperm.xlu1 %4664, %v2952_v43   ;;  %v2433_v7 = vmul.f32 0.01, %v1545_v17  ;;  %v2434_v48 = vmul.f32 0.01, %v1874_v53  ;;  %vm2177_vm10 = vcmp.gt.f32.partialorder %v1545_v17, 0.0  ;;  %vm2178_vm11 = vcmp.gt.f32.partialorder %v1874_v53, 0.0 }
 0x215   :  { %3361 = vperm.xlu0 %4663, %v2951_v9   ;;  %v2436_v57 = vmul.f32 0.01, %v1876_v44  ;;  %vm2180_vm12 = vcmp.gt.f32.partialorder %v1876_v44, 0.0  ;;  %v3931_v12 = vadd.f32 %v3930_v1, %v6700_v24  ;;  %v4064_v19 = vadd.f32 %v4063_v56, %v6702_v0  ;;  %v6892_v46 = vpop.permute.xlu2 %3206  ;;  %v3157_v54 = vpop.permute.xlu1 %3156  ;;  %v8652_v43 = vld [vmem:[#allocation22_spill] sm:$0xff]  ;;  %v8654_v24 = vld [vmem:[#allocation201_spill] sm:$0xff] }
 0x216   :  { %v2437_v26 = vmul.f32 0.01, %v1550_v6  ;;  %v1879_v39 = vadd.f32 %v8651_v60, %v8649_v55  ;;  %v3707_v2 = vmul.f32 %v3157_v54, %v2683_v13  ;;  %v3708_v38 = vmul.f32 %v3157_v54, %v2684_v40  ;;  %v3152_v14 = vpop.permute.xlu0 %3151  ;;  %v2955_v55 = vld [vmem:[%s8173_s3 + $0x250] sm:$0xff] }
 0x217   :  { %v6898_v50 = vadd.f32 %v8653_v11, %v8652_v43  ;;  %v3705_v58 = vmul.f32 %v3152_v14, %v2681_v51  ;;  %v3706_v9 = vmul.f32 %v3152_v14, %v2682_v20  ;;  %vm2181_vm13 = vcmp.gt.f32.partialorder %v1550_v6, 0.0  ;;  %v8655_v20 = vld [vmem:[#allocation44_spill] sm:$0xff] }
 0x218   :  { %v6902_v0 = vadd.f32 %v8654_v24, %v8652_v43  ;;  %v2689_v13 = vsel %vm2177_vm10, %v1545_v17, %v2433_v7  ;;  %v2690_v40 = vsel %vm2178_vm11, %v1874_v53, %v2434_v48  ;;  %v2688_v51 = vsel %vm2176_vm9, %v1871_v5, %v2432_v27  ;;  %v2954_v43 = vld [vmem:[%s8173_s3 + $0x248] sm:$0xff]  ;;  %v8659_v27 = vld [vmem:[#allocation210_spill] sm:$0xff] }
 0x219   :  { %v1555_v1 = vadd.f32 %v6006_v49, %v8655_v20  ;;  %v2692_v56 = vsel %vm2180_vm12, %v1876_v44, %v2436_v57  ;;  %v3932_v54 = vadd.f32 %v3931_v12, %v3705_v58  ;;  %v4065_v60 = vadd.f32 %v4064_v19, %v3706_v9  ;;  %v6916_v14 = vpop.f32.mrf.mxu0  ;;  %v8658_v44 = vld [vmem:[#allocation43_spill] sm:$0xff]  ;;  %v8662_v58 = vld [vmem:[#allocation216_spill] sm:$0xff] }
 0x21a   :  { %8656 = vst [vmem:[#allocation85_spill] sm:$0xff] %v6916_v14  ;;  %v2438_v11 = vmul.f32 0.01, %v1879_v39  ;;  %v1884_v17 = vadd.f32 %v6024_v22, %v8655_v20  ;;  %v6923_v53 = vpop.f32.mrf.mxu1  ;;  %vm2182_vm0 = vcmp.gt.f32.partialorder %v1879_v39, 0.0  ;;  %v6926_v5 = vsel %vm2181_vm13, %v1550_v6, %v2437_v26  ;;  %v8660_v19 = vld [vmem:[#allocation211_spill] sm:$0xff]  ;;  %v8663_v20 = vld [vmem:[#allocation217_spill] sm:$0xff] }
 0x21b   :  { %8657 = vst [vmem:[#allocation106_spill] sm:$0xff] %v6923_v53  ;;  %v2439_v49 = vmul.f32 0.01, %v6898_v50  ;;  %v1557_v7 = vadd.f32 %v8659_v27, %v8658_v44  ;;  %v3933_v48 = vadd.f32 %v3932_v54, %v3707_v2  ;;  %v4066_v57 = vadd.f32 %v4065_v60, %v3708_v38  ;;  %v8661_v26 = vld [vmem:[#allocation27_spill] sm:$0xff]  ;;  %v8666_v14 = vld [vmem:[#allocation77_spill] sm:$0xff] }
 0x21c   :  { %3386 = vperm.xlu2 %4665, %v2956_v52   ;;  %3381 = vperm.xlu1 %4664, %v2955_v55   ;;  %v2440_v12 = vmul.f32 0.01, %v6902_v0  ;;  %v1886_v22 = vadd.f32 %v8660_v19, %v8658_v44  ;;  %vm2183_vm14 = vcmp.gt.f32.partialorder %v6898_v50, 0.0  ;;  %vm2184_vm15 = vcmp.gt.f32.partialorder %v6902_v0, 0.0 }
 0x21d   :  { %3376 = vperm.xlu0 %4663, %v2954_v43   ;;  %v2441_v6 = vmul.f32 0.01, %v1555_v1  ;;  %v1560_v9 = vadd.f32 %v8662_v58, %v8661_v26  ;;  %v6938_v24 = vpop.permute.xlu2 %3221  ;;  %v3172_v2 = vpop.permute.xlu1 %3171  ;;  %v3934_v38 = vadd.f32 %v3933_v48, %v6777_v30  ;;  %v4067_v52 = vadd.f32 %v4066_v57, %v6779_v23  ;;  %v2959_v58 = vld [vmem:[%s8173_s3 + $0x270] sm:$0xff]  ;;  %v2958_v30 = vld [vmem:[%s8173_s3 + $0x268] sm:$0xff] }
 0x21e   :  { %v2442_v55 = vmul.f32 0.01, %v1884_v17  ;;  %v1889_v54 = vadd.f32 %v8663_v20, %v8661_v26  ;;  %vm2185_vm1 = vcmp.gt.f32.partialorder %v1555_v1, 0.0  ;;  %v3713_v60 = vmul.f32 %v3172_v2, %v2689_v13  ;;  %v3167_v43 = vpop.permute.xlu0 %3166 }
 0x21f   :  { %v2443_v44 = vmul.f32 0.01, %v1557_v7  ;;  %vm2186_vm2 = vcmp.gt.f32.partialorder %v1884_v17, 0.0  ;;  %v3711_v27 = vmul.f32 %v3167_v43, %v2687_v35  ;;  %v3712_v19 = vmul.f32 %v3167_v43, %v2688_v51  ;;  %v2957_v35 = vld [vmem:[%s8173_s3 + $0x260] sm:$0xff]  ;;  %v8664_v43 = vld [vmem:[#allocation49_spill] sm:$0xff] }
 0x220   :  { %v2444_v28 = vmul.f32 0.01, %v1886_v22  ;;  %v2694_v23 = vsel %vm2182_vm0, %v1879_v39, %v2438_v11  ;;  %vm2187_vm3 = vcmp.gt.f32.partialorder %v1557_v7, 0.0  ;;  %vm2188_vm4 = vcmp.gt.f32.partialorder %v1886_v22, 0.0 }
 0x221   :  { %v2445_v48 = vmul.f32 0.01, %v1560_v9  ;;  %v3714_v13 = vmul.f32 %v3172_v2, %v2690_v40  ;;  %v3935_v57 = vadd.f32 %v3934_v38, %v3711_v27  ;;  %v4068_v26 = vadd.f32 %v4067_v52, %v3712_v19  ;;  %v6951_v20 = vpop.f32.mrf.mxu0 }
 0x222   :  { %v2446_v51 = vmul.f32 0.01, %v1889_v54  ;;  %v6958_v53 = vadd.f32 %v8665_v62, %v8664_v43  ;;  %v6962_v39 = vadd.f32 %v8666_v14, %v8664_v43  ;;  %v6964_v11 = vpop.f32.mrf.mxu1  ;;  %vm2189_vm5 = vcmp.gt.f32.partialorder %v1560_v9, 0.0  ;;  %v8672_v43 = vld [vmem:[#allocation54_spill] sm:$0xff] }
 0x223   :  { %v3716_v40 = vmul.f32 %v6819_v16, %v2692_v56  ;;  %v3936_v2 = vadd.f32 %v3935_v57, %v3713_v60  ;;  %v4069_v38 = vadd.f32 %v4068_v26, %v3714_v13  ;;  %vm2190_vm6 = vcmp.gt.f32.partialorder %v1889_v54, 0.0 }
 0x224   :  { %3401 = vperm.xlu2 %4665, %v2959_v58   ;;  %3396 = vperm.xlu1 %4664, %v2958_v30   ;;  %v2697_v52 = vsel %vm2185_vm1, %v1555_v1, %v2441_v6  ;;  %v2698_v27 = vsel %vm2186_vm2, %v1884_v17, %v2442_v55  ;;  %v2695_v62 = vsel %vm2183_vm14, %v6898_v50, %v2439_v49  ;;  %v2447_v17 = vmul.f32 0.01, %v6958_v53  ;;  %v8667_v6 = vld [vmem:[#allocation48_spill] sm:$0xff]  ;;  %v8668_v55 = vld [vmem:[#allocation81_spill] sm:$0xff] }
 0x225   :  { %3391 = vperm.xlu0 %4663, %v2957_v35   ;;  %v2696_v14 = vsel %vm2184_vm15, %v6902_v0, %v2440_v12  ;;  %v6975_v19 = vpop.permute.xlu2 %3236  ;;  %v3187_v16 = vpop.permute.xlu1 %3186  ;;  %v3937_v56 = vadd.f32 %v3936_v2, %v6823_v18  ;;  %v4070_v60 = vadd.f32 %v4069_v38, %v3716_v40  ;;  %v2699_v58 = vsel %vm2187_vm3, %v1557_v7, %v2443_v44  ;;  %v8669_v18 = vld [vmem:[#allocation35_spill] sm:$0xff] }
 0x226   :  { %v2700_v1 = vsel %vm2188_vm4, %v1886_v22, %v2444_v28  ;;  %v6983_v30 = vadd.f32 %v8668_v55, %v8667_v6  ;;  %v3182_v50 = vpop.permute.xlu0 %3181  ;;  %v2701_v49 = vsel %vm2189_vm5, %v1560_v9, %v2445_v48  ;;  %v2702_v0 = vsel %vm2190_vm6, %v1889_v54, %v2446_v51  ;;  %v8670_v22 = vld [vmem:[#allocation32_spill] sm:$0xff]  ;;  %v7015_v51 = vpop.f32.mrf.mxu2  ;;  %v8674_v55 = vld [vmem:[#allocation53_spill] sm:$0xff] }
 0x227   :  { %v2448_v12 = vmul.f32 0.01, %v6962_v39  ;;  %v6990_v13 = vadd.f32 %v8669_v18, %v8667_v6  ;;  %v3717_v7 = vmul.f32 %v3182_v50, %v6926_v5  ;;  %v3718_v28 = vmul.f32 %v3182_v50, %v2694_v23  ;;  %v2962_v9 = vld [vmem:[%s8173_s3 + $0x288] sm:$0xff]  ;;  %v2961_v5 = vld [vmem:[%s8173_s3 + $0x280] sm:$0xff]  ;;  %8671 = vst [vmem:[#allocation25_spill] sm:$0xff] %v7015_v51  ;;  %v7028_v6 = vpop.f32.mrf.mxu3 }
 0x228   :  { %v6995_v44 = vadd.f32 %v6364_v21, %v8670_v22  ;;  %v6999_v57 = vadd.f32 %v6369_v32, %v8670_v22  ;;  %vm2191_vm7 = vcmp.gt.f32.partialorder %v6958_v53, 0.0  ;;  %vm2192_vm8 = vcmp.gt.f32.partialorder %v6962_v39, 0.0  ;;  %v2960_v32 = vld [vmem:[%s8173_s3 + $0x278] sm:$0xff]  ;;  %8673 = vst [vmem:[#allocation87_spill] sm:$0xff] %v7028_v6 }
 0x229   :  { %v3719_v54 = vmul.f32 %v3187_v16, %v2695_v62  ;;  %v3720_v23 = vmul.f32 %v3187_v16, %v2696_v14  ;;  %v3938_v21 = vadd.f32 %v3937_v56, %v3717_v7  ;;  %v4071_v48 = vadd.f32 %v4070_v60, %v3718_v28  ;;  %v7009_v26 = vpop.f32.mrf.mxu0 }
 0x22a   :  { %v2449_v35 = vmul.f32 0.01, %v6983_v30  ;;  %v1570_v40 = vadd.f32 %v6442_v25, %v8672_v43  ;;  %v7021_v2 = vadd.f32 %v6459_v8, %v8672_v43  ;;  %v3721_v38 = vmul.f32 %v6860_v45, %v2697_v52  ;;  %v7024_v62 = vpop.f32.mrf.mxu1 }
 0x22b   :  { %v2450_v14 = vmul.f32 0.01, %v6990_v13  ;;  %v3722_v16 = vmul.f32 %v6860_v45, %v2698_v27  ;;  %v3939_v56 = vadd.f32 %v3938_v21, %v3719_v54  ;;  %v4072_v60 = vadd.f32 %v4071_v48, %v3720_v23  ;;  %v2965_v48 = vld [vmem:[%s8173_s3 + $0x2a0] sm:$0xff] }
 0x22c   :  { %3416 = vperm.xlu2 %4665, %v2962_v9   ;;  %3411 = vperm.xlu1 %4664, %v2961_v5   ;;  %v1572_v25 = vadd.f32 %v6519_v59, %v8674_v55  ;;  %v1901_v8 = vadd.f32 %v6524_v15, %v8674_v55  ;;  %vm2193_vm9 = vcmp.gt.f32.partialorder %v6983_v30, 0.0  ;;  %vm2194_vm10 = vcmp.gt.f32.partialorder %v6990_v13, 0.0 }
 0x22d   :  { %3406 = vperm.xlu0 %4663, %v2960_v32   ;;  %v2451_v52 = vmul.f32 0.01, %v6995_v44  ;;  %v2452_v45 = vmul.f32 0.01, %v6999_v57  ;;  %v7038_v27 = vpop.permute.xlu2 %3251  ;;  %v3202_v50 = vpop.permute.xlu1 %3201  ;;  %v3940_v18 = vadd.f32 %v3939_v56, %v3721_v38  ;;  %v4073_v7 = vadd.f32 %v4072_v60, %v3722_v16  ;;  %v2964_v32 = vld [vmem:[%s8173_s3 + $0x298] sm:$0xff] }
 0x22e   :  { %v2453_v28 = vmul.f32 0.01, %v1570_v40  ;;  %v2454_v59 = vmul.f32 0.01, %v7021_v2  ;;  %v3197_v22 = vpop.permute.xlu0 %3196  ;;  %vm2195_vm11 = vcmp.gt.f32.partialorder %v6995_v44, 0.0  ;;  %vm2196_vm12 = vcmp.gt.f32.partialorder %v6999_v57, 0.0 }
 0x22f   :  { %vm2197_vm13 = vcmp.gt.f32.partialorder %v1570_v40, 0.0  ;;  %vm2198_vm0 = vcmp.gt.f32.partialorder %v7021_v2, 0.0  ;;  %v3723_v15 = vmul.f32 %v3197_v22, %v2699_v58  ;;  %v3724_v9 = vmul.f32 %v3197_v22, %v2700_v1 }
 0x230   :  { %v2455_v5 = vmul.f32 0.01, %v1572_v25  ;;  %v2456_v54 = vmul.f32 0.01, %v1901_v8  ;;  %v2703_v23 = vsel %vm2191_vm7, %v6958_v53, %v2447_v17  ;;  %v2704_v21 = vsel %vm2192_vm8, %v6962_v39, %v2448_v12  ;;  %v2963_v53 = vld [vmem:[%s8173_s3 + $0x290] sm:$0xff] }
 0x231   :  { %v3725_v58 = vmul.f32 %v3202_v50, %v2701_v49  ;;  %v3726_v1 = vmul.f32 %v3202_v50, %v2702_v0  ;;  %v3941_v43 = vadd.f32 %v3940_v18, %v3723_v15  ;;  %v4074_v38 = vadd.f32 %v4073_v7, %v3724_v9  ;;  %v7056_v16 = vpop.f32.mrf.mxu0  ;;  %v8675_v17 = vld [vmem:[#allocation37_spill] sm:$0xff]  ;;  %v7069_v50 = vpop.f32.mrf.mxu2  ;;  %v8677_v18 = vld [vmem:[#allocation59_spill] sm:$0xff] }
 0x232   :  { %v1575_v39 = vadd.f32 %v6583_v47, %v8675_v17  ;;  %v1904_v12 = vadd.f32 %v6602_v3, %v8675_v17  ;;  %v3727_v56 = vmul.f32 %v6892_v46, %v2703_v23  ;;  %v7066_v60 = vpop.f32.mrf.mxu1  ;;  %vm2199_vm14 = vcmp.gt.f32.partialorder %v1572_v25, 0.0  ;;  %8676 = vst [vmem:[#allocation26_spill] sm:$0xff] %v7069_v50 }
 0x233   :  { %v3728_v49 = vmul.f32 %v6892_v46, %v2704_v21  ;;  %v3942_v0 = vadd.f32 %v3941_v43, %v3725_v58  ;;  %v4075_v55 = vadd.f32 %v4074_v38, %v3726_v1  ;;  %vm2200_vm15 = vcmp.gt.f32.partialorder %v1901_v8, 0.0  ;;  %v8679_v58 = vld [vmem:[#allocation58_spill] sm:$0xff] }
 0x234   :  { %3431 = vperm.xlu2 %4665, %v2965_v48   ;;  %3426 = vperm.xlu1 %4664, %v2964_v32   ;;  %v1577_v47 = vadd.f32 %v6656_v31, %v8677_v18  ;;  %v2707_v3 = vsel %vm2195_vm11, %v6995_v44, %v2451_v52  ;;  %v2705_v7 = vsel %vm2193_vm9, %v6983_v30, %v2449_v35  ;;  %v7088_v44 = vpop.f32.mrf.mxu3  ;;  %v2457_v52 = vmul.f32 0.01, %v1575_v39  ;;  %v8680_v38 = vld [vmem:[#allocation42_spill] sm:$0xff] }
 0x235   :  { %3421 = vperm.xlu0 %4663, %v2963_v53   ;;  %v2706_v46 = vsel %vm2194_vm10, %v6990_v13, %v2450_v14  ;;  %v2709_v22 = vsel %vm2197_vm13, %v1570_v40, %v2453_v28  ;;  %v7083_v15 = vpop.permute.xlu2 %3266  ;;  %v3217_v9 = vpop.permute.xlu1 %3216  ;;  %v2708_v31 = vsel %vm2196_vm12, %v6999_v57, %v2452_v45  ;;  %v3943_v23 = vadd.f32 %v3942_v0, %v3727_v56  ;;  %v2968_v45 = vld [vmem:[%s8173_s3 + $0x2b8] sm:$0xff] }
 0x236   :  { %v4076_v21 = vadd.f32 %v4075_v55, %v3728_v49  ;;  %8678 = vst [vmem:[#allocation29_spill] sm:$0xff] %v7088_v44  ;;  %v2710_v30 = vsel %vm2198_vm0, %v7021_v2, %v2454_v59  ;;  %v3212_v35 = vpop.permute.xlu0 %3211  ;;  %v2711_v13 = vsel %vm2199_vm14, %v1572_v25, %v2455_v5  ;;  %v2712_v40 = vsel %vm2200_vm15, %v1901_v8, %v2456_v54  ;;  %v2967_v2 = vld [vmem:[%s8173_s3 + $0x2b0] sm:$0xff] }
 0x237   :  { %v2458_v14 = vmul.f32 0.01, %v1904_v12  ;;  %v3729_v28 = vmul.f32 %v3212_v35, %v2705_v7  ;;  %v3730_v48 = vmul.f32 %v3212_v35, %v2706_v46  ;;  %vm2201_vm1 = vcmp.gt.f32.partialorder %v1575_v39, 0.0 }
 0x238   :  { %v2459_v32 = vmul.f32 0.01, %v1577_v47  ;;  %v1906_v57 = vadd.f32 %v6663_v34, %v8677_v18  ;;  %vm2203_vm2 = vcmp.gt.f32.partialorder %v1577_v47, 0.0  ;;  %vm2202_vm3 = vcmp.gt.f32.partialorder %v1904_v12, 0.0  ;;  %v2966_v34 = vld [vmem:[%s8173_s3 + $0x2a8] sm:$0xff] }
 0x239   :  { %v3731_v25 = vmul.f32 %v3217_v9, %v2707_v3  ;;  %v3732_v8 = vmul.f32 %v3217_v9, %v2708_v31  ;;  %v3944_v59 = vadd.f32 %v3943_v23, %v3729_v28  ;;  %v4077_v5 = vadd.f32 %v4076_v21, %v3730_v48  ;;  %v7103_v54 = vpop.f32.mrf.mxu0  ;;  %v7130_v31 = vpop.f32.mrf.mxu2 }
 0x23a   :  { %v1580_v1 = vadd.f32 %v6734_v10, %v8679_v58  ;;  %v7112_v43 = vadd.f32 %v6755_v4, %v8679_v58  ;;  %v1582_v53 = vadd.f32 %v6801_v63, %v8680_v38  ;;  %v3733_v17 = vmul.f32 %v6938_v24, %v2709_v22  ;;  %v7117_v56 = vpop.f32.mrf.mxu1  ;;  %8681 = vst [vmem:[#allocation147_spill] sm:$0xff] %v7130_v31 }
 0x23b   :  { %v3734_v49 = vmul.f32 %v6938_v24, %v2710_v30  ;;  %v3945_v0 = vadd.f32 %v3944_v59, %v3731_v25  ;;  %v4078_v55 = vadd.f32 %v4077_v5, %v3732_v8  ;;  %v7121_v18 = vmul.f32 0.01, %v6748_v36  ;;  %v8682_v30 = vld [vmem:[#allocation64_spill] sm:$0xff] }
 0x23c   :  { %3446 = vperm.xlu2 %4665, %v2968_v45   ;;  %3441 = vperm.xlu1 %4664, %v2967_v2   ;;  %v2460_v10 = vmul.f32 0.01, %v1906_v57  ;;  %v1911_v4 = vadd.f32 %v6808_v29, %v8680_v38  ;;  %v2713_v63 = vsel %vm2201_vm1, %v1575_v39, %v2457_v52  ;;  %v2714_v3 = vsel %vm2202_vm3, %v1904_v12, %v2458_v14  ;;  %v7137_v14 = vpop.f32.mrf.mxu3 }
 0x23d   :  { %3436 = vperm.xlu0 %4663, %v2966_v34   ;;  %vm2204_vm4 = vcmp.gt.f32.partialorder %v1906_v57, 0.0  ;;  %v2715_v7 = vsel %vm2203_vm2, %v1577_v47, %v2459_v32  ;;  %v7128_v24 = vpop.permute.xlu2 %3281  ;;  %v3232_v46 = vpop.permute.xlu1 %3231  ;;  %v3946_v22 = vadd.f32 %v3945_v0, %v3733_v17  ;;  %v4079_v9 = vadd.f32 %v4078_v55, %v3734_v49  ;;  %8683 = vst [vmem:[#allocation148_spill] sm:$0xff] %v7137_v14  ;;  %v2971_v32 = vld [vmem:[%s8173_s3 + $0x2d0] sm:$0xff]  ;;  %v8684_v17 = vld [vmem:[#allocation63_spill] sm:$0xff] }
 0x23e   :  { %v2461_v23 = vmul.f32 0.01, %v1580_v1  ;;  %v2462_v21 = vmul.f32 0.01, %v7112_v43  ;;  %v1585_v29 = vadd.f32 %v6847_v42, %v8682_v30  ;;  %v3227_v35 = vpop.permute.xlu0 %3226  ;;  %vm2205_vm5 = vcmp.gt.f32.partialorder %v1580_v1, 0.0  ;;  %v2970_v42 = vld [vmem:[%s8173_s3 + $0x2c8] sm:$0xff] }
 0x23f   :  { %v2463_v39 = vmul.f32 0.01, %v1582_v53  ;;  %v1914_v12 = vadd.f32 %v6852_v41, %v8682_v30  ;;  %v3735_v47 = vmul.f32 %v3227_v35, %v2711_v13  ;;  %v3736_v52 = vmul.f32 %v3227_v35, %v2712_v40 }
 0x240   :  { %v2464_v28 = vmul.f32 0.01, %v1911_v4  ;;  %v2716_v48 = vsel %vm2204_vm4, %v1906_v57, %v2460_v10  ;;  %vm2207_vm6 = vcmp.gt.f32.partialorder %v1582_v53, 0.0  ;;  %vm2206_vm7 = vcmp.gt.f32.partialorder %v7112_v43, 0.0  ;;  %v2969_v57 = vld [vmem:[%s8173_s3 + $0x2c0] sm:$0xff] }
 0x241   :  { %v3737_v45 = vmul.f32 %v3232_v46, %v2713_v63  ;;  %v3738_v41 = vmul.f32 %v3232_v46, %v2714_v3  ;;  %v3947_v13 = vadd.f32 %v3946_v22, %v3735_v47  ;;  %v4080_v40 = vadd.f32 %v4079_v9, %v3736_v52  ;;  %v7147_v2 = vpop.f32.mrf.mxu0  ;;  %v8685_v22 = vld [vmem:[#allocation47_spill] sm:$0xff]  ;;  %v8686_v9 = vld [vmem:[#allocation85_spill] sm:$0xff]  ;;  %v8687_v47 = vld [vmem:[#allocation106_spill] sm:$0xff] }
 0x242   :  { %v2465_v25 = vmul.f32 0.01, %v1585_v29  ;;  %v3739_v8 = vmul.f32 %v6975_v19, %v2715_v7  ;;  %vm2209_vm8 = vcmp.gt.f32.partialorder %v1585_v29, 0.0  ;;  %v7153_v59 = vpop.f32.mrf.mxu1  ;;  %vm2208_vm9 = vcmp.gt.f32.partialorder %v1911_v4, 0.0 }
 0x243   :  { %v2466_v5 = vmul.f32 0.01, %v1914_v12  ;;  %v3740_v34 = vmul.f32 %v6975_v19, %v2716_v48  ;;  %v3948_v58 = vadd.f32 %v3947_v13, %v3737_v45  ;;  %v4081_v38 = vadd.f32 %v4080_v40, %v3738_v41 }
 0x244   :  { %3461 = vperm.xlu2 %4665, %v2971_v32   ;;  %3456 = vperm.xlu1 %4664, %v2970_v42   ;;  %v7158_v49 = vadd.f32 %v6877_v33, %v8684_v17  ;;  %vm2210_vm10 = vcmp.gt.f32.partialorder %v1914_v12, 0.0  ;;  %v2717_v0 = vsel %vm2205_vm5, %v1580_v1, %v2461_v23  ;;  %v7162_v55 = vmul.f32 0.01, %v6752_v37 }
 0x245   :  { %3451 = vperm.xlu0 %4663, %v2969_v57   ;;  %v7164_v10 = vpop.permute.xlu2 %3296  ;;  %v3247_v63 = vpop.permute.xlu1 %3246  ;;  %v2719_v19 = vsel %vm2207_vm6, %v1582_v53, %v2463_v39  ;;  %v2718_v3 = vsel %vm2206_vm7, %v7112_v43, %v2462_v21  ;;  %v3949_v7 = vadd.f32 %v3948_v58, %v3739_v8  ;;  %v4082_v46 = vadd.f32 %v4081_v38, %v3740_v34 }
 0x246   :  { %v1916_v33 = vadd.f32 %v6885_v61, %v8684_v17  ;;  %v1590_v1 = vadd.f32 %v8686_v9, %v8685_v22  ;;  %v2721_v23 = vsel %vm2209_vm8, %v1585_v29, %v2465_v25  ;;  %v2720_v30 = vsel %vm2208_vm9, %v1911_v4, %v2464_v28  ;;  %v3242_v35 = vpop.permute.xlu0 %3241  ;;  %v7179_v21 = vpop.f32.mrf.mxu2  ;;  %v8689_v61 = vld [vmem:[#allocation69_spill] sm:$0xff]  ;;  %v2974_v4 = vld [vmem:[%s8173_s3 + $0x2e8] sm:$0xff]  ;;  %v8691_v17 = vld [vmem:[#allocation31_spill] sm:$0xff] }
 0x247   :  { %v1919_v53 = vadd.f32 %v8687_v47, %v8685_v22  ;;  %v2722_v39 = vsel %vm2210_vm10, %v1914_v12, %v2466_v5  ;;  %v3741_v52 = vmul.f32 %v3242_v35, %v2717_v0  ;;  %v3742_v43 = vmul.f32 %v3242_v35, %v2718_v3  ;;  %8688 = vst [vmem:[#allocation34_spill] sm:$0xff] %v7179_v21  ;;  %v2973_v12 = vld [vmem:[%s8173_s3 + $0x2e0] sm:$0xff]  ;;  %v8693_v22 = vld [vmem:[#allocation10_spill] sm:$0xff]  ;;  %v8694_v9 = vld [vmem:[#allocation68_spill] sm:$0xff] }
 0x248   :  { %v2467_v48 = vmul.f32 0.01, %v7158_v49  ;;  %v1592_v32 = vadd.f32 %v6951_v20, %v8689_v61  ;;  %v1921_v29 = vadd.f32 %v6964_v11, %v8689_v61  ;;  %vm2211_vm11 = vcmp.gt.f32.partialorder %v7158_v49, 0.0  ;;  %v2972_v20 = vld [vmem:[%s8173_s3 + $0x2d8] sm:$0xff]  ;;  %v7200_v11 = vpop.f32.mrf.mxu3 }
 0x249   :  { %v3743_v28 = vmul.f32 %v3247_v63, %v2719_v19  ;;  %v3744_v42 = vmul.f32 %v3247_v63, %v2720_v30  ;;  %v3950_v45 = vadd.f32 %v3949_v7, %v3741_v52  ;;  %v4083_v41 = vadd.f32 %v4082_v46, %v3742_v43  ;;  %v7193_v13 = vpop.f32.mrf.mxu0  ;;  %8690 = vst [vmem:[#allocation166_spill] sm:$0xff] %v7200_v11  ;;  %v8692_v19 = vld [vmem:[#allocation104_spill] sm:$0xff] }
 0x24a   :  { %vm2259_vm12 = vcmp.gt.f32.partialorder %v6748_v36, 0.0  ;;  %vm2260_vm13 = vcmp.gt.f32.partialorder %v6752_v37, 0.0  ;;  %v2468_v40 = vmul.f32 0.01, %v1916_v33  ;;  %v2469_v57 = vmul.f32 0.01, %v1590_v1  ;;  %v7203_v8 = vpop.f32.mrf.mxu1 }
 0x24b   :  { %v3745_v25 = vmul.f32 %v7038_v27, %v2721_v23  ;;  %vm2212_vm0 = vcmp.gt.f32.partialorder %v1916_v33, 0.0  ;;  %v2470_v5 = vmul.f32 0.01, %v1919_v53  ;;  %v3746_v34 = vmul.f32 %v7038_v27, %v2722_v39 }
 0x24c   :  { %v3951_v58 = vadd.f32 %v3950_v45, %v3743_v28  ;;  %v4084_v38 = vadd.f32 %v4083_v41, %v3744_v42  ;;  %3476 = vperm.xlu2 %4665, %v2974_v4   ;;  %3471 = vperm.xlu1 %4664, %v2973_v12   ;;  %vm2257_vm14 = vcmp.gt.f32.partialorder %v8691_v17, 0.0  ;;  %v2471_v0 = vmul.f32 0.01, %v1592_v32 }
 0x24d   :  { %v2472_v63 = vmul.f32 0.01, %v1921_v29  ;;  %3466 = vperm.xlu0 %4663, %v2972_v20   ;;  %vm2213_vm15 = vcmp.gt.f32.partialorder %v1590_v1, 0.0  ;;  %vm2214_vm1 = vcmp.gt.f32.partialorder %v1919_v53, 0.0  ;;  %vm2258_vm2 = vcmp.gt.f32.partialorder %v8692_v19, 0.0  ;;  %v7208_v3 = vpop.permute.xlu2 %3311  ;;  %v3262_v7 = vpop.permute.xlu1 %3261 }
 0x24e   :  { %vm2215_vm3 = vcmp.gt.f32.partialorder %v1592_v32, 0.0  ;;  %vm2216_vm4 = vcmp.gt.f32.partialorder %v1921_v29, 0.0  ;;  %v3952_v46 = vadd.f32 %v3951_v58, %v3745_v25  ;;  %v4085_v27 = vadd.f32 %v4084_v38, %v3746_v34  ;;  %v3257_v35 = vpop.permute.xlu0 %3256  ;;  %v8696_v58 = vld [vmem:[#allocation117_spill] sm:$0xff]  ;;  %v8697_v38 = vld [vmem:[#allocation60_spill] sm:$0xff] }
 0x24f   :  { %vm2273_vm5 = vcmp.gt.f32.partialorder %v8693_v22, 0.0  ;;  %v1595_v23 = vadd.f32 %v7009_v26, %v8694_v9  ;;  %v1924_v30 = vadd.f32 %v7024_v62, %v8694_v9  ;;  %v2723_v47 = vsel %vm2211_vm11, %v7158_v49, %v2467_v48  ;;  %v2977_v49 = vld [vmem:[%s8173_s3 + $0x300] sm:$0xff] }
 0x250   :  { %v2724_v39 = vsel %vm2212_vm0, %v1916_v33, %v2468_v40  ;;  %v3747_v52 = vmul.f32 %v3257_v35, %v2723_v47  ;;  %v2513_v61 = vmul.f32 0.01, %v8691_v17  ;;  %v2514_v4 = vmul.f32 0.01, %v8692_v19  ;;  %v2976_v33 = vld [vmem:[%s8173_s3 + $0x2f8] sm:$0xff]  ;;  %v8700_v9 = vld [vmem:[#allocation55_spill] sm:$0xff] }
 0x251   :  { %v3748_v43 = vmul.f32 %v3257_v35, %v2724_v39  ;;  %v2727_v12 = vsel %vm2215_vm3, %v1592_v32, %v2471_v0  ;;  %v2728_v26 = vsel %vm2216_vm4, %v1921_v29, %v2472_v63  ;;  %v2725_v28 = vsel %vm2213_vm15, %v1590_v1, %v2469_v57  ;;  %v7231_v20 = vpop.f32.mrf.mxu0  ;;  %v2975_v1 = vld [vmem:[%s8173_s3 + $0x2f0] sm:$0xff]  ;;  %v7236_v32 = vpop.f32.mrf.mxu2 }
 0x252   :  { %v2726_v62 = vsel %vm2214_vm1, %v1919_v53, %v2470_v5  ;;  %v3749_v48 = vmul.f32 %v3262_v7, %v2725_v28  ;;  %v3953_v45 = vadd.f32 %v3952_v46, %v3747_v52  ;;  %8695 = vst [vmem:[#allocation18_spill] sm:$0xff] %v7236_v32  ;;  %v2473_v53 = vmul.f32 0.01, %v1595_v23  ;;  %v7239_v57 = vpop.f32.mrf.mxu1  ;;  %v7244_v63 = vpop.f32.mrf.mxu3 }
 0x253   :  { %v3750_v42 = vmul.f32 %v3262_v7, %v2726_v62  ;;  %v4086_v41 = vadd.f32 %v4085_v27, %v3748_v43  ;;  %v2474_v29 = vmul.f32 0.01, %v1924_v30  ;;  %v3751_v40 = vmul.f32 %v7083_v15, %v2727_v12  ;;  %8698 = vst [vmem:[#allocation114_spill] sm:$0xff] %v7244_v63  ;;  %v8699_v27 = vld [vmem:[#allocation119_spill] sm:$0xff]  ;;  %v8701_v12 = vld [vmem:[#allocation97_spill] sm:$0xff]  ;;  %v8703_v62 = vld [vmem:[#allocation56_spill] sm:$0xff] }
 0x254   :  { %vm2217_vm6 = vcmp.gt.f32.partialorder %v1595_v23, 0.0  ;;  %v3752_v25 = vmul.f32 %v7083_v15, %v2728_v26  ;;  %v3954_v5 = vadd.f32 %v3953_v45, %v3749_v48  ;;  %3491 = vperm.xlu2 %4665, %v2977_v49   ;;  %3486 = vperm.xlu1 %4664, %v2976_v33   ;;  %vm2218_vm7 = vcmp.gt.f32.partialorder %v1924_v30, 0.0  ;;  %v8704_v45 = vld [vmem:[#allocation116_spill] sm:$0xff] }
 0x255   :  { %v4087_v34 = vadd.f32 %v4086_v41, %v3750_v42  ;;  %v1655_v0 = vadd.f32 %v8697_v38, %v8696_v58  ;;  %3481 = vperm.xlu0 %4663, %v2975_v1   ;;  %v7250_v7 = vsel %vm2259_vm12, %v6748_v36, %v7121_v18  ;;  %v7256_v15 = vsel %vm2260_vm13, %v6752_v37, %v7162_v55  ;;  %v7261_v47 = vpop.permute.xlu2 %3326  ;;  %v8702_v36 = vld [vmem:[#allocation61_spill] sm:$0xff]  ;;  %v8705_v41 = vld [vmem:[#allocation134_spill] sm:$0xff] }
 0x256   :  { %v2529_v46 = vmul.f32 0.01, %v8693_v22  ;;  %v1652_v35 = vadd.f32 %v8700_v9, %v8699_v27  ;;  %v7263_v39 = vpop.permute.xlu1 %3276  ;;  %v3955_v52 = vadd.f32 %v3954_v5, %v3751_v40  ;;  %vm2274_vm8 = vcmp.gt.f32.partialorder %v8701_v12, 0.0  ;;  %v3272_v26 = vpop.permute.xlu0 %3271 }
 0x257   :  { %v4088_v43 = vadd.f32 %v4087_v34, %v3752_v25  ;;  %v1984_v18 = vadd.f32 %v8702_v36, %v8696_v58  ;;  %v2729_v37 = vsel %vm2217_vm6, %v1595_v23, %v2473_v53  ;;  %v2730_v55 = vsel %vm2218_vm7, %v1924_v30, %v2474_v29  ;;  %v2980_v30 = vld [vmem:[%s8173_s3 + $0x318] sm:$0xff]  ;;  %v2978_v25 = vld [vmem:[%s8173_s3 + $0x308] sm:$0xff]  ;;  %v8707_v34 = vld [vmem:[#allocation127_spill] sm:$0xff] }
 0x258   :  { %v7273_v28 = vsel %vm2257_vm14, %v8691_v17, %v2513_v61  ;;  %v1981_v49 = vadd.f32 %v8703_v62, %v8699_v27  ;;  %v3753_v33 = vmul.f32 %v3272_v26, %v2729_v37  ;;  %v3754_v48 = vmul.f32 %v3272_v26, %v2730_v55  ;;  %v2979_v17 = vld [vmem:[%s8173_s3 + $0x310] sm:$0xff]  ;;  %v8708_v58 = vld [vmem:[#allocation124_spill] sm:$0xff]  ;;  %v8713_v55 = vld [vmem:[#allocation70_spill] sm:$0xff] }
 0x259   :  { %v7280_v42 = vsel %vm2258_vm2, %v8692_v19, %v2514_v4  ;;  %v7284_v23 = vadd.f32 %v8705_v41, %v8704_v45  ;;  %vm2265_vm9 = vcmp.gt.f32.partialorder %v1655_v0, 0.0  ;;  %v2521_v61 = vmul.f32 0.01, %v1655_v0  ;;  %v8706_v19 = vld [vmem:[#allocation136_spill] sm:$0xff]  ;;  %v7305_v40 = vpop.f32.mrf.mxu0  ;;  %v8711_v36 = vld [vmem:[#allocation105_spill] sm:$0xff] }
 0x25a   :  { %v7295_v1 = vsel %vm2273_vm5, %v8693_v22, %v2529_v46  ;;  %v7299_v4 = vadd.f32 %v8706_v19, %v8704_v45  ;;  %v7301_v53 = vadd.f32 %v3955_v52, %v3753_v33  ;;  %v7303_v29 = vadd.f32 %v4088_v43, %v3754_v48  ;;  %v8709_v22 = vld [vmem:[#allocation76_spill] sm:$0xff]  ;;  %v8710_v46 = vld [vmem:[#allocation79_spill] sm:$0xff]  ;;  %v7315_v9 = vpop.f32.mrf.mxu1  ;;  %v8712_v37 = vld [vmem:[#allocation125_spill] sm:$0xff]  ;;  %v7322_v33 = vpop.f32.mrf.mxu2 }
 0x25b   :  { %v2519_v5 = vmul.f32 0.01, %v1652_v35  ;;  %vm2279_vm10 = vcmp.gt.f32.partialorder %v8707_v34, 0.0  ;;  %v1662_v38 = vadd.f32 %v8709_v22, %v8708_v58  ;;  %v1991_v27 = vadd.f32 %v8710_v46, %v8708_v58  ;;  %8714 = vst [vmem:[#allocation168_spill] sm:$0xff] %v7322_v33  ;;  %v7338_v46 = vpop.f32.mrf.mxu3 }
 0x25c   :  { %vm2263_vm11 = vcmp.gt.f32.partialorder %v1652_v35, 0.0  ;;  %v2522_v52 = vmul.f32 0.01, %v1984_v18  ;;  %3506 = vperm.xlu2 %4665, %v2980_v30   ;;  %3501 = vperm.xlu1 %4664, %v2979_v17   ;;  %vm2264_vm12 = vcmp.gt.f32.partialorder %v1981_v49, 0.0  ;;  %vm2266_vm13 = vcmp.gt.f32.partialorder %v1984_v18, 0.0  ;;  %v8715_v30 = vld [vmem:[#allocation71_spill] sm:$0xff] }
 0x25d   :  { %v2530_v43 = vmul.f32 0.01, %v8701_v12  ;;  %vm2280_vm0 = vcmp.gt.f32.partialorder %v8711_v36, 0.0  ;;  %v2541_v26 = vmul.f32 0.01, %v7284_v23  ;;  %v1660_v62 = vadd.f32 %v8713_v55, %v8712_v37  ;;  %3496 = vperm.xlu0 %4663, %v2978_v25   ;;  %v7330_v19 = vpop.permute.xlu2 %3341  ;;  %8716 = vst [vmem:[#allocation110_spill] sm:$0xff] %v7338_v46 }
 0x25e   :  { %v2520_v48 = vmul.f32 0.01, %v1981_v49  ;;  %v7325_v45 = vsel %vm2265_vm9, %v1655_v0, %v2521_v61  ;;  %v2542_v41 = vmul.f32 0.01, %v7299_v4  ;;  %v1989_v17 = vadd.f32 %v8715_v30, %v8712_v37  ;;  %v7332_v58 = vpop.permute.xlu1 %3291  ;;  %v7340_v25 = vpop.permute.xlu0 %3286  ;;  %v8717_v30 = vld [vmem:[#allocation52_spill] sm:$0xff] }
 0x25f   :  { %v7335_v22 = vsel %vm2263_vm11, %v1652_v35, %v2519_v5  ;;  %vm2285_vm14 = vcmp.gt.f32.partialorder %v7284_v23, 0.0  ;;  %v7343_v0 = vsel %vm2266_vm13, %v1984_v18, %v2522_v52  ;;  %v2527_v61 = vmul.f32 0.01, %v1662_v38  ;;  %v2983_v5 = vld [vmem:[%s8173_s3 + $0x330] sm:$0xff]  ;;  %v2982_v18 = vld [vmem:[%s8173_s3 + $0x328] sm:$0xff] }
 0x260   :  { %v2528_v55 = vmul.f32 0.01, %v1991_v27  ;;  %v2535_v37 = vmul.f32 0.01, %v8707_v34  ;;  %v1597_v33 = vadd.f32 %v7056_v16, %v8717_v30  ;;  %v1926_v35 = vadd.f32 %v7066_v60, %v8717_v30  ;;  %v8718_v30 = vld [vmem:[#allocation73_spill] sm:$0xff] }
 0x261   :  { %vm2271_vm15 = vcmp.gt.f32.partialorder %v1662_v38, 0.0  ;;  %vm2272_vm1 = vcmp.gt.f32.partialorder %v1991_v27, 0.0  ;;  %v7357_v52 = vsel %vm2264_vm12, %v1981_v49, %v2520_v48  ;;  %v2525_v46 = vmul.f32 0.01, %v1660_v62  ;;  %v7369_v11 = vpop.f32.mrf.mxu0  ;;  %v2981_v49 = vld [vmem:[%s8173_s3 + $0x320] sm:$0xff] }
 0x262   :  { %v7362_v16 = vsel %vm2274_vm8, %v8701_v12, %v2530_v43  ;;  %v2536_v60 = vmul.f32 0.01, %v8711_v36  ;;  %v1600_v63 = vadd.f32 %v7103_v54, %v8718_v30  ;;  %v1929_v32 = vadd.f32 %v7117_v56, %v8718_v30  ;;  %v7374_v21 = vpop.f32.mrf.mxu1  ;;  %v8719_v30 = vld [vmem:[#allocation72_spill] sm:$0xff] }
 0x263   :  { %vm2269_vm2 = vcmp.gt.f32.partialorder %v1660_v62, 0.0  ;;  %v2526_v48 = vmul.f32 0.01, %v1989_v17  ;;  %vm2270_vm3 = vcmp.gt.f32.partialorder %v1989_v17, 0.0  ;;  %v7377_v12 = vsel %vm2271_vm15, %v1662_v38, %v2527_v61 }
 0x264   :  { %v7380_v43 = vsel %vm2272_vm1, %v1991_v27, %v2528_v55  ;;  %vm2286_vm4 = vcmp.gt.f32.partialorder %v7299_v4, 0.0  ;;  %v2475_v54 = vmul.f32 0.01, %v1597_v33  ;;  %v2476_v56 = vmul.f32 0.01, %v1926_v35  ;;  %3521 = vperm.xlu2 %4665, %v2983_v5   ;;  %3516 = vperm.xlu1 %4664, %v2982_v18  }
 0x265   :  { %v1602_v14 = vadd.f32 %v7147_v2, %v8719_v30  ;;  %v1931_v31 = vadd.f32 %v7153_v59, %v8719_v30  ;;  %vm2219_vm5 = vcmp.gt.f32.partialorder %v1597_v33, 0.0  ;;  %vm2220_vm6 = vcmp.gt.f32.partialorder %v1926_v35, 0.0  ;;  %3511 = vperm.xlu0 %4663, %v2981_v49   ;;  %v7423_v49 = vpop.f32.mrf.mxu3  ;;  %v2984_v30 = vld [vmem:[%s8173_s3 + $0x338] sm:$0xff] }
 0x266   :  { %v7388_v38 = vsel %vm2269_vm2, %v1660_v62, %v2525_v46  ;;  %v7393_v27 = vsel %vm2279_vm10, %v8707_v34, %v2535_v37  ;;  %v2477_v61 = vmul.f32 0.01, %v1600_v63  ;;  %v2478_v55 = vmul.f32 0.01, %v1929_v32  ;;  %v7395_v44 = vpop.permute.xlu2 %3356  ;;  %v7397_v2 = vpop.permute.xlu1 %3306  ;;  %8722 = vst [vmem:[#allocation7_spill] sm:$0xff] %v7423_v49 }
 0x267   :  { %v7400_v59 = vsel %vm2270_vm3, %v1989_v17, %v2526_v48  ;;  %v7405_v5 = vsel %vm2280_vm0, %v8711_v36, %v2536_v60  ;;  %vm2221_vm7 = vcmp.gt.f32.partialorder %v1600_v63, 0.0  ;;  %vm2222_vm8 = vcmp.gt.f32.partialorder %v1929_v32, 0.0  ;;  %v7407_v62 = vpop.permute.xlu0 %3301  ;;  %v7419_v17 = vpop.f32.mrf.mxu2 }
 0x268   :  { %v7412_v34 = vsel %vm2285_vm14, %v7284_v23, %v2541_v26  ;;  %v7417_v46 = vsel %vm2286_vm4, %v7299_v4, %v2542_v41  ;;  %8721 = vst [vmem:[#allocation115_spill] sm:$0xff] %v7419_v17  ;;  %v2479_v37 = vmul.f32 0.01, %v1602_v14  ;;  %v2480_v18 = vmul.f32 0.01, %v1931_v31  ;;  %v2986_v4 = vld [vmem:[%s8173_s3 + $0x348] sm:$0xff] }
 0x269   :  { %8720 = vst [vmem:[#allocation109_spill] sm:$0xff] %v7417_v46  ;;  %v2731_v36 = vsel %vm2219_vm5, %v1597_v33, %v2475_v54  ;;  %v2732_v60 = vsel %vm2220_vm6, %v1926_v35, %v2476_v56  ;;  %vm2223_vm9 = vcmp.gt.f32.partialorder %v1602_v14, 0.0  ;;  %vm2224_vm10 = vcmp.gt.f32.partialorder %v1931_v31, 0.0  ;;  %v2985_v26 = vld [vmem:[%s8173_s3 + $0x340] sm:$0xff]  ;;  %v8723_v35 = vld [vmem:[#allocation57_spill] sm:$0xff] }
 0x26a   :  { %v3755_v48 = vmul.f32 %v7263_v39, %v2731_v36  ;;  %v3756_v23 = vmul.f32 %v7263_v39, %v2732_v60  ;;  %v2733_v33 = vsel %vm2221_vm7, %v1600_v63, %v2477_v61  ;;  %v2734_v41 = vsel %vm2222_vm8, %v1929_v32, %v2478_v55  ;;  %v1614_v56 = vpop.f32.mrf.mxu0  ;;  %v8724_v36 = vld [vmem:[#allocation80_spill] sm:$0xff]  ;;  %v8726_v55 = vld [vmem:[#allocation101_spill] sm:$0xff] }
 0x26b   :  { %v1605_v54 = vadd.f32 %v7193_v13, %v8723_v35  ;;  %v1934_v39 = vadd.f32 %v7203_v8, %v8723_v35  ;;  %v1607_v60 = vadd.f32 %v7231_v20, %v8724_v36  ;;  %v1936_v49 = vadd.f32 %v7239_v57, %v8724_v36  ;;  %v1943_v61 = vpop.f32.mrf.mxu1  ;;  %v8725_v13 = vld [vmem:[#allocation131_spill] sm:$0xff]  ;;  %v8729_v36 = vld [vmem:[#allocation132_spill] sm:$0xff] }
 0x26c   :  { %v3957_v63 = vadd.f32 %v7301_v53, %v3755_v48  ;;  %v4090_v32 = vadd.f32 %v7303_v29, %v3756_v23  ;;  %v7450_v17 = vadd.f32 %v8726_v55, %v8725_v13  ;;  %v2735_v8 = vsel %vm2223_vm9, %v1602_v14, %v2479_v37  ;;  %3536 = vperm.xlu2 %4665, %v2986_v4   ;;  %v8730_v55 = vld [vmem:[#allocation93_spill] sm:$0xff] }
 0x26d   :  { %v2736_v35 = vsel %vm2224_vm10, %v1931_v31, %v2480_v18  ;;  %3531 = vperm.xlu1 %4664, %v2985_v26   ;;  %v3757_v20 = vmul.f32 %v7128_v24, %v2733_v33  ;;  %v3758_v50 = vmul.f32 %v7128_v24, %v2734_v41  ;;  %v3759_v57 = vmul.f32 %v7340_v25, %v2735_v8  ;;  %v8727_v24 = vld [vmem:[#allocation78_spill] sm:$0xff]  ;;  %v8728_v41 = vld [vmem:[#allocation103_spill] sm:$0xff] }
 0x26e   :  { %v3760_v53 = vmul.f32 %v7340_v25, %v2736_v35  ;;  %3526 = vperm.xlu0 %4663, %v2984_v30   ;;  %v2481_v29 = vmul.f32 0.01, %v1605_v54  ;;  %v2482_v48 = vmul.f32 0.01, %v1934_v39  ;;  %vm2225_vm11 = vcmp.gt.f32.partialorder %v1605_v54, 0.0  ;;  %v7458_v23 = vpop.permute.xlu2 %3371  ;;  %v7460_v14 = vpop.permute.xlu1 %3321 }
 0x26f   :  { %vm2226_vm12 = vcmp.gt.f32.partialorder %v1934_v39, 0.0  ;;  %v2483_v31 = vmul.f32 0.01, %v1607_v60  ;;  %v2484_v37 = vmul.f32 0.01, %v1936_v49  ;;  %v3958_v18 = vadd.f32 %v3957_v63, %v3757_v20  ;;  %v7462_v26 = vpop.permute.xlu0 %3316 }
 0x270   :  { %v4091_v4 = vadd.f32 %v4090_v32, %v3758_v50  ;;  %vm2227_vm13 = vcmp.gt.f32.partialorder %v1607_v60, 0.0  ;;  %vm2228_vm0 = vcmp.gt.f32.partialorder %v1936_v49, 0.0  ;;  %v1610_v25 = vadd.f32 %v7305_v40, %v8727_v24  ;;  %v2989_v32 = vld [vmem:[%s8173_s3 + $0x360] sm:$0xff]  ;;  %v2988_v40 = vld [vmem:[%s8173_s3 + $0x358] sm:$0xff] }
 0x271   :  { %v1939_v33 = vadd.f32 %v7315_v9, %v8727_v24  ;;  %v7470_v30 = vadd.f32 %v8728_v41, %v8725_v13  ;;  %v7474_v8 = vadd.f32 %v8730_v55, %v8729_v36  ;;  %v3959_v63 = vadd.f32 %v3958_v18, %v3759_v57  ;;  %v8731_v9 = vld [vmem:[#allocation95_spill] sm:$0xff]  ;;  %v7486_v13 = vpop.f32.mrf.mxu2  ;;  %v8733_v57 = vld [vmem:[#allocation62_spill] sm:$0xff]  ;;  %v7495_v41 = vpop.f32.mrf.mxu3 }
 0x272   :  { %v4092_v50 = vadd.f32 %v4091_v4, %v3760_v53  ;;  %v7484_v35 = vadd.f32 %v8731_v9, %v8729_v36  ;;  %8732 = vst [vmem:[#allocation121_spill] sm:$0xff] %v7486_v13  ;;  %v2737_v20 = vsel %vm2225_vm11, %v1605_v54, %v2481_v29  ;;  %v2738_v24 = vsel %vm2226_vm12, %v1934_v39, %v2482_v48  ;;  %v1616_v18 = vpop.f32.mrf.mxu0  ;;  %v2987_v4 = vld [vmem:[%s8173_s3 + $0x350] sm:$0xff] }
 0x273   :  { %v1612_v53 = vadd.f32 %v7369_v11, %v8733_v57  ;;  %8734 = vst [vmem:[#allocation112_spill] sm:$0xff] %v7495_v41  ;;  %v2739_v55 = vsel %vm2227_vm13, %v1607_v60, %v2483_v31  ;;  %v2740_v36 = vsel %vm2228_vm0, %v1936_v49, %v2484_v37  ;;  %v3761_v9 = vmul.f32 %v7332_v58, %v2737_v20  ;;  %v1945_v29 = vpop.f32.mrf.mxu1  ;;  %v8735_v41 = vld [vmem:[#allocation86_spill] sm:$0xff] }
 0x274   :  { %v3762_v54 = vmul.f32 %v7332_v58, %v2738_v24  ;;  %v2485_v39 = vmul.f32 0.01, %v1610_v25  ;;  %v2486_v48 = vmul.f32 0.01, %v1939_v33  ;;  %v1941_v11 = vadd.f32 %v7374_v21, %v8733_v57  ;;  %3551 = vperm.xlu2 %4665, %v2989_v32   ;;  %v8736_v32 = vld [vmem:[#allocation84_spill] sm:$0xff] }
 0x275   :  { %vm2229_vm14 = vcmp.gt.f32.partialorder %v1610_v25, 0.0  ;;  %3546 = vperm.xlu1 %4664, %v2988_v40   ;;  %v3960_v13 = vadd.f32 %v3959_v63, %v3761_v9  ;;  %vm2230_vm15 = vcmp.gt.f32.partialorder %v1939_v33, 0.0  ;;  %v1615_v60 = vadd.f32 %v1614_v56, %v8735_v41 }
 0x276   :  { %v4093_v6 = vadd.f32 %v4092_v50, %v3762_v54  ;;  %3541 = vperm.xlu0 %4663, %v2987_v4   ;;  %v2487_v49 = vmul.f32 0.01, %v1612_v53  ;;  %v1944_v31 = vadd.f32 %v1943_v61, %v8735_v41  ;;  %v7505_v37 = vpop.permute.xlu2 %3386  ;;  %v7507_v58 = vpop.permute.xlu1 %3336  ;;  %vm2277_vm1 = vcmp.gt.f32.partialorder %v7450_v17, 0.0 }
 0x277   :  { %vm2278_vm2 = vcmp.gt.f32.partialorder %v7470_v30, 0.0  ;;  %v2533_v21 = vmul.f32 0.01, %v7450_v17  ;;  %v2534_v63 = vmul.f32 0.01, %v7470_v30  ;;  %v3763_v50 = vmul.f32 %v7164_v10, %v2739_v55  ;;  %v7516_v61 = vpop.permute.xlu0 %3331 }
 0x278   :  { %v3764_v56 = vmul.f32 %v7164_v10, %v2740_v36  ;;  %vm2231_vm3 = vcmp.gt.f32.partialorder %v1612_v53, 0.0  ;;  %v1617_v40 = vadd.f32 %v1616_v18, %v8736_v32  ;;  %v2488_v20 = vmul.f32 0.01, %v1941_v11  ;;  %v2992_v10 = vld [vmem:[%s8173_s3 + $0x378] sm:$0xff]  ;;  %v2991_v18 = vld [vmem:[%s8173_s3 + $0x370] sm:$0xff] }
 0x279   :  { %v2741_v24 = vsel %vm2229_vm14, %v1610_v25, %v2485_v39  ;;  %v2742_v57 = vsel %vm2230_vm15, %v1939_v33, %v2486_v48  ;;  %v1946_v4 = vadd.f32 %v1945_v29, %v8736_v32  ;;  %vm2232_vm4 = vcmp.gt.f32.partialorder %v1941_v11, 0.0  ;;  %v8737_v39 = vld [vmem:[#allocation67_spill] sm:$0xff]  ;;  %v7536_v32 = vpop.f32.mrf.mxu2 }
 0x27a   :  { %v3961_v41 = vadd.f32 %v3960_v13, %v3763_v50  ;;  %v4094_v9 = vadd.f32 %v4093_v6, %v3764_v56  ;;  %v2489_v54 = vmul.f32 0.01, %v1615_v60  ;;  %v2743_v55 = vsel %vm2231_vm3, %v1612_v53, %v2487_v49  ;;  %v1619_v33 = vpop.f32.mrf.mxu0  ;;  %v2990_v13 = vld [vmem:[%s8173_s3 + $0x368] sm:$0xff]  ;;  %8738 = vst [vmem:[#allocation111_spill] sm:$0xff] %v7536_v32 }
 0x27b   :  { %v3765_v36 = vmul.f32 %v7407_v62, %v2741_v24  ;;  %vm2233_vm5 = vcmp.gt.f32.partialorder %v1615_v60, 0.0  ;;  %v2490_v25 = vmul.f32 0.01, %v1944_v31  ;;  %v3766_v6 = vmul.f32 %v7407_v62, %v2742_v57  ;;  %v1948_v50 = vpop.f32.mrf.mxu1  ;;  %v7538_v24 = vpop.f32.mrf.mxu3 }
 0x27c   :  { %vm2234_vm6 = vcmp.gt.f32.partialorder %v1944_v31, 0.0  ;;  %v2491_v29 = vmul.f32 0.01, %v1617_v40  ;;  %v1620_v48 = vadd.f32 %v1619_v33, %v8737_v39  ;;  %vm2275_vm7 = vcmp.gt.f32.partialorder %v7474_v8, 0.0  ;;  %3566 = vperm.xlu2 %4665, %v2992_v10   ;;  %8739 = vst [vmem:[#allocation45_spill] sm:$0xff] %v7538_v24 }
 0x27d   :  { %v2744_v53 = vsel %vm2232_vm4, %v1941_v11, %v2488_v20  ;;  %vm2235_vm8 = vcmp.gt.f32.partialorder %v1617_v40, 0.0  ;;  %v2492_v49 = vmul.f32 0.01, %v1946_v4  ;;  %v1949_v56 = vadd.f32 %v1948_v50, %v8737_v39  ;;  %3561 = vperm.xlu1 %4664, %v2991_v18  }
 0x27e   :  { %v3767_v62 = vmul.f32 %v7397_v2, %v2743_v55  ;;  %v2745_v57 = vsel %vm2233_vm5, %v1615_v60, %v2489_v54  ;;  %vm2236_vm9 = vcmp.gt.f32.partialorder %v1946_v4, 0.0  ;;  %v2493_v33 = vmul.f32 0.01, %v1620_v48  ;;  %3556 = vperm.xlu0 %4663, %v2990_v13   ;;  %v7543_v46 = vpop.permute.xlu2 %3401  ;;  %v7545_v10 = vpop.permute.xlu1 %3351  ;;  %v8741_v13 = vld [vmem:[#allocation126_spill] sm:$0xff] }
 0x27f   :  { %v3962_v51 = vadd.f32 %v3961_v41, %v3765_v36  ;;  %v2746_v11 = vsel %vm2234_vm6, %v1944_v31, %v2490_v25  ;;  %vm2237_vm10 = vcmp.gt.f32.partialorder %v1620_v48, 0.0  ;;  %v2494_v20 = vmul.f32 0.01, %v1949_v56  ;;  %v7549_v55 = vpop.permute.xlu0 %3346 }
 0x280   :  { %v3768_v18 = vmul.f32 %v7397_v2, %v2744_v53  ;;  %v4095_v39 = vadd.f32 %v4094_v9, %v3766_v6  ;;  %v2747_v50 = vsel %vm2235_vm8, %v1617_v40, %v2491_v29  ;;  %vm2238_vm11 = vcmp.gt.f32.partialorder %v1949_v56, 0.0  ;;  %v2995_v2 = vld [vmem:[%s8173_s3 + $0x390] sm:$0xff]  ;;  %v2994_v40 = vld [vmem:[%s8173_s3 + $0x388] sm:$0xff] }
 0x281   :  { %v3769_v60 = vmul.f32 %v7208_v3, %v2745_v57  ;;  %v2748_v54 = vsel %vm2236_vm9, %v1946_v4, %v2492_v49  ;;  %v2531_v41 = vmul.f32 0.01, %v7474_v8  ;;  %v2532_v31 = vmul.f32 0.01, %v7484_v35  ;;  %v2993_v57 = vld [vmem:[%s8173_s3 + $0x380] sm:$0xff] }
 0x282   :  { %v3770_v36 = vmul.f32 %v7208_v3, %v2746_v11  ;;  %v2749_v25 = vsel %vm2237_vm10, %v1620_v48, %v2493_v33  ;;  %v7564_v9 = vsel %vm2277_vm1, %v7450_v17, %v2533_v21  ;;  %v7569_v4 = vsel %vm2278_vm2, %v7470_v30, %v2534_v63  ;;  %v8740_v3 = vld [vmem:[#allocation138_spill] sm:$0xff]  ;;  %v1621_v49 = vpop.f32.mrf.mxu0  ;;  %v8742_v17 = vld [vmem:[#allocation128_spill] sm:$0xff] }
 0x283   :  { %v7573_v6 = vadd.f32 %v8741_v13, %v8740_v3  ;;  %v3963_v29 = vadd.f32 %v3962_v51, %v3767_v62  ;;  %v3771_v48 = vmul.f32 %v7462_v26, %v2747_v50  ;;  %v2750_v53 = vsel %vm2238_vm11, %v1949_v56, %v2494_v20  ;;  %v8743_v63 = vld [vmem:[#allocation92_spill] sm:$0xff]  ;;  %v1950_v13 = vpop.f32.mrf.mxu1 }
 0x284   :  { %v7581_v21 = vadd.f32 %v8742_v17, %v8740_v3  ;;  %v4096_v33 = vadd.f32 %v4095_v39, %v3768_v18  ;;  %v3772_v30 = vmul.f32 %v7462_v26, %v2748_v54  ;;  %v1622_v11 = vadd.f32 %v1621_v49, %v8743_v63  ;;  %3581 = vperm.xlu2 %4665, %v2995_v2   ;;  %v8745_v2 = vld [vmem:[#allocation118_spill] sm:$0xff] }
 0x285   :  { %v3964_v24 = vadd.f32 %v3963_v29, %v3769_v60  ;;  %v3773_v51 = vmul.f32 %v7460_v14, %v2749_v25  ;;  %v1951_v56 = vadd.f32 %v1950_v13, %v8743_v63  ;;  %3576 = vperm.xlu1 %4664, %v2994_v40   ;;  %vm2276_vm12 = vcmp.gt.f32.partialorder %v7484_v35, 0.0  ;;  %v8744_v25 = vld [vmem:[#allocation139_spill] sm:$0xff]  ;;  %v7600_v40 = vpop.f32.mrf.mxu2  ;;  %v8751_v13 = vld [vmem:[#allocation6_spill] sm:$0xff] }
 0x286   :  { %v4097_v62 = vadd.f32 %v4096_v33, %v3770_v36  ;;  %v3774_v20 = vmul.f32 %v7460_v14, %v2750_v53  ;;  %vm2239_vm13 = vcmp.gt.f32.partialorder %v1622_v11, 0.0  ;;  %v2495_v50 = vmul.f32 0.01, %v1622_v11  ;;  %3571 = vperm.xlu0 %4663, %v2993_v57   ;;  %v7589_v39 = vpop.permute.xlu2 %3416  ;;  %v7596_v54 = vpop.permute.xlu1 %3366  ;;  %8746 = vst [vmem:[#allocation46_spill] sm:$0xff] %v7600_v40  ;;  %v8750_v63 = vld [vmem:[#allocation159_spill] sm:$0xff] }
 0x287   :  { %v3965_v18 = vadd.f32 %v3964_v24, %v3771_v48  ;;  %vm2240_vm0 = vcmp.gt.f32.partialorder %v1951_v56, 0.0  ;;  %v2496_v26 = vmul.f32 0.01, %v1951_v56  ;;  %v7594_v60 = vsel %vm2275_vm7, %v7474_v8, %v2531_v41  ;;  %v7607_v29 = vpop.permute.xlu0 %3361  ;;  %v8747_v48 = vld [vmem:[#allocation120_spill] sm:$0xff]  ;;  %v7611_v41 = vpop.f32.mrf.mxu3 }
 0x288   :  { %v1675_v36 = vadd.f32 %v8745_v2, %v8744_v25  ;;  %v4098_v14 = vadd.f32 %v4097_v62, %v3772_v30  ;;  %v2751_v3 = vsel %vm2239_vm13, %v1622_v11, %v2495_v50  ;;  %v7605_v24 = vsel %vm2276_vm12, %v7484_v35, %v2532_v31  ;;  %8748 = vst [vmem:[#allocation122_spill] sm:$0xff] %v7611_v41  ;;  %v2998_v30 = vld [vmem:[%s8173_s3 + $0x3a8] sm:$0xff]  ;;  %v2997_v35 = vld [vmem:[%s8173_s3 + $0x3a0] sm:$0xff] }
 0x289   :  { %v2004_v8 = vadd.f32 %v8747_v48, %v8744_v25  ;;  %v3966_v53 = vadd.f32 %v3965_v18, %v3773_v51  ;;  %v3775_v49 = vmul.f32 %v7261_v47, %v2751_v3  ;;  %v2752_v57 = vsel %vm2240_vm0, %v1951_v56, %v2496_v26  ;;  %v8749_v31 = vld [vmem:[#allocation123_spill] sm:$0xff]  ;;  %v8754_v48 = vld [vmem:[#allocation161_spill] sm:$0xff] }
 0x28a   :  { %v4099_v17 = vadd.f32 %v4098_v14, %v3774_v20  ;;  %v3776_v33 = vmul.f32 %v7261_v47, %v2752_v57  ;;  %vm2283_vm14 = vcmp.gt.f32.partialorder %v7573_v6, 0.0  ;;  %vm2284_vm15 = vcmp.gt.f32.partialorder %v7581_v21, 0.0  ;;  %v2996_v47 = vld [vmem:[%s8173_s3 + $0x398] sm:$0xff]  ;;  %v8753_v2 = vld [vmem:[#allocation3_spill] sm:$0xff] }
 0x28b   :  { %v1687_v11 = vadd.f32 %v8750_v63, %v8749_v31  ;;  %v3777_v51 = vmul.f32 %v7516_v61, %v8751_v13  ;;  %v3967_v56 = vadd.f32 %v3966_v53, %v3775_v49  ;;  %v2539_v62 = vmul.f32 0.01, %v7573_v6  ;;  %v8752_v20 = vld [vmem:[#allocation90_spill] sm:$0xff]  ;;  %v8756_v63 = vld [vmem:[#allocation16_spill] sm:$0xff] }
 0x28c   :  { %v3778_v50 = vmul.f32 %v7516_v61, %v8752_v20  ;;  %v4100_v18 = vadd.f32 %v4099_v17, %v3776_v33  ;;  %v2537_v26 = vmul.f32 0.01, %v1675_v36  ;;  %v2540_v25 = vmul.f32 0.01, %v7581_v21  ;;  %3596 = vperm.xlu2 %4665, %v2998_v30   ;;  %v8755_v49 = vld [vmem:[#allocation82_spill] sm:$0xff] }
 0x28d   :  { %v3779_v14 = vmul.f32 %v7507_v58, %v8753_v2  ;;  %v3968_v3 = vadd.f32 %v3967_v56, %v3777_v51  ;;  %3591 = vperm.xlu1 %4664, %v2997_v35   ;;  %vm2281_vm1 = vcmp.gt.f32.partialorder %v1675_v36, 0.0  ;;  %vm2282_vm2 = vcmp.gt.f32.partialorder %v2004_v8, 0.0  ;;  %v8757_v35 = vld [vmem:[#allocation99_spill] sm:$0xff]  ;;  %v8758_v2 = vld [vmem:[#allocation144_spill] sm:$0xff] }
 0x28e   :  { %v7638_v53 = vadd.f32 %v8754_v48, %v8749_v31  ;;  %v3780_v57 = vmul.f32 %v7507_v58, %v8755_v49  ;;  %v4101_v61 = vadd.f32 %v4100_v18, %v3778_v50  ;;  %3586 = vperm.xlu0 %4663, %v2996_v47   ;;  %v2538_v17 = vmul.f32 0.01, %v2004_v8  ;;  %v7644_v51 = vpop.permute.xlu1 %3381  ;;  %v7653_v58 = vpop.permute.xlu2 %3431  ;;  %v8763_v49 = vld [vmem:[#allocation142_spill] sm:$0xff] }
 0x28f   :  { %v2547_v33 = vmul.f32 0.01, %v1687_v11  ;;  %v3781_v13 = vmul.f32 %v7330_v19, %v8756_v63  ;;  %v3969_v20 = vadd.f32 %v3968_v3, %v3779_v14  ;;  %v7649_v30 = vsel %vm2283_vm14, %v7573_v6, %v2539_v62  ;;  %v7657_v50 = vpop.permute.xlu0 %3376  ;;  %v8759_v14 = vld [vmem:[#allocation151_spill] sm:$0xff]  ;;  %v8760_v6 = vld [vmem:[#allocation153_spill] sm:$0xff] }
 0x290   :  { %v3782_v31 = vmul.f32 %v7330_v19, %v8757_v35  ;;  %v4102_v56 = vadd.f32 %v4101_v61, %v3780_v57  ;;  %v7655_v47 = vsel %vm2281_vm1, %v1675_v36, %v2537_v26  ;;  %v7662_v18 = vsel %vm2284_vm15, %v7581_v21, %v2540_v25  ;;  %v8761_v19 = vld [vmem:[#allocation98_spill] sm:$0xff]  ;;  %v7676_v61 = vpop.f32.mrf.mxu2  ;;  %v8765_v63 = vld [vmem:[#allocation15_spill] sm:$0xff] }
 0x291   :  { %v7666_v3 = vadd.f32 %v8759_v14, %v8758_v2  ;;  %v7670_v62 = vadd.f32 %v8760_v6, %v8758_v2  ;;  %v3783_v48 = vmul.f32 %v7549_v55, %v8761_v19  ;;  %v3970_v36 = vadd.f32 %v3969_v20, %v3781_v13  ;;  %v8762_v26 = vld [vmem:[#allocation146_spill] sm:$0xff]  ;;  %8764 = vst [vmem:[#allocation39_spill] sm:$0xff] %v7676_v61  ;;  %v3001_v35 = vld [vmem:[%s8173_s3 + $0x3c0] sm:$0xff]  ;;  %v8766_v20 = vld [vmem:[#allocation145_spill] sm:$0xff]  ;;  %v7689_v6 = vpop.f32.mrf.mxu3 }
 0x292   :  { %v1682_v57 = vadd.f32 %v8763_v49, %v8762_v26  ;;  %v3784_v21 = vmul.f32 %v7549_v55, %v8765_v63  ;;  %v4103_v25 = vadd.f32 %v4102_v56, %v3782_v31  ;;  %v3000_v2 = vld [vmem:[%s8173_s3 + $0x3b8] sm:$0xff]  ;;  %vm2291_vm3 = vcmp.gt.f32.partialorder %v1687_v11, 0.0  ;;  %8767 = vst [vmem:[#allocation187_spill] sm:$0xff] %v7689_v6  ;;  %v8768_v19 = vld [vmem:[#allocation36_spill] sm:$0xff]  ;;  %v2999_v56 = vld [vmem:[%s8173_s3 + $0x3b0] sm:$0xff] }
 0x293   :  { %v2548_v13 = vmul.f32 0.01, %v7638_v53  ;;  %v2011_v14 = vadd.f32 %v8766_v20, %v8762_v26  ;;  %v3785_v55 = vmul.f32 %v7545_v10, %v8768_v19  ;;  %v3971_v31 = vadd.f32 %v3970_v36, %v3783_v48  ;;  %v8769_v49 = vld [vmem:[#allocation14_spill] sm:$0xff]  ;;  %v8770_v26 = vld [vmem:[#allocation107_spill] sm:$0xff]  ;;  %v8771_v36 = vld [vmem:[#allocation100_spill] sm:$0xff] }
 0x294   :  { %v3786_v63 = vmul.f32 %v7545_v10, %v8769_v49  ;;  %v4104_v61 = vadd.f32 %v4103_v25, %v3784_v21  ;;  %v7699_v41 = vsel %vm2282_vm2, %v2004_v8, %v2538_v17  ;;  %vm2292_vm4 = vcmp.gt.f32.partialorder %v7638_v53, 0.0  ;;  %3611 = vperm.xlu2 %4665, %v3001_v35   ;;  %v8772_v8 = vld [vmem:[#allocation66_spill] sm:$0xff] }
 0x295   :  { %v3787_v20 = vmul.f32 %v7395_v44, %v8770_v26  ;;  %v3972_v6 = vadd.f32 %v3971_v31, %v3785_v55  ;;  %3606 = vperm.xlu1 %4664, %v3000_v2   ;;  %v7704_v48 = vsel %vm2291_vm3, %v1687_v11, %v2547_v33  ;;  %vm2289_vm5 = vcmp.gt.f32.partialorder %v7666_v3, 0.0  ;;  %v8773_v11 = vld [vmem:[#allocation108_spill] sm:$0xff] }
 0x296   :  { %v3788_v19 = vmul.f32 %v7395_v44, %v8771_v36  ;;  %v4105_v10 = vadd.f32 %v4104_v61, %v3786_v63  ;;  %3601 = vperm.xlu0 %4663, %v2999_v56   ;;  %v2543_v21 = vmul.f32 0.01, %v1682_v57  ;;  %vm2290_vm6 = vcmp.gt.f32.partialorder %v7670_v62, 0.0  ;;  %v7712_v35 = vpop.permute.xlu1 %3396  ;;  %v8774_v61 = vld [vmem:[#allocation152_spill] sm:$0xff]  ;;  %v8775_v56 = vld [vmem:[#allocation167_spill] sm:$0xff]  ;;  %v8776_v63 = vld [vmem:[#allocation89_spill] sm:$0xff]  ;;  %v7724_v32 = vpop.permute.xlu2 %3446 }
 0x297   :  { %v3789_v17 = vmul.f32 %v7607_v29, %v8772_v8  ;;  %v3973_v25 = vadd.f32 %v3972_v6, %v3787_v20  ;;  %vm2287_vm7 = vcmp.gt.f32.partialorder %v1682_v57, 0.0  ;;  %v2544_v55 = vmul.f32 0.01, %v2011_v14  ;;  %v3392_v31 = vpop.permute.xlu0 %3391  ;;  %v8777_v20 = vld [vmem:[#allocation91_spill] sm:$0xff] }
 0x298   :  { %v3790_v33 = vmul.f32 %v7607_v29, %v8773_v11  ;;  %v4106_v2 = vadd.f32 %v4105_v10, %v3788_v19  ;;  %vm2288_vm8 = vcmp.gt.f32.partialorder %v2011_v14, 0.0  ;;  %v2545_v44 = vmul.f32 0.01, %v7666_v3  ;;  %v3004_v19 = vld [vmem:[%s8173_s3 + $0x3d8] sm:$0xff]  ;;  %v3003_v10 = vld [vmem:[%s8173_s3 + $0x3d0] sm:$0xff] }
 0x299   :  { %v1690_v49 = vadd.f32 %v8775_v56, %v8774_v61  ;;  %v3791_v26 = vmul.f32 %v7596_v54, %v8776_v63  ;;  %v3974_v36 = vadd.f32 %v3973_v25, %v3789_v17  ;;  %v2546_v6 = vmul.f32 0.01, %v7670_v62  ;;  %v8780_v56 = vld [vmem:[#allocation175_spill] sm:$0xff] }
 0x29a   :  { %v3792_v8 = vmul.f32 %v7596_v54, %v8777_v20  ;;  %v4107_v40 = vadd.f32 %v4106_v2, %v3790_v33  ;;  %v7726_v29 = vsel %vm2287_vm7, %v1682_v57, %v2543_v21  ;;  %v7737_v17 = vsel %vm2292_vm4, %v7638_v53, %v2548_v13  ;;  %v8778_v54 = vld [vmem:[#allocation169_spill] sm:$0xff]  ;;  %v3002_v33 = vld [vmem:[%s8173_s3 + $0x3c8] sm:$0xff]  ;;  %v8779_v2 = vld [vmem:[#allocation150_spill] sm:$0xff]  ;;  %v7753_v53 = vpop.f32.mrf.mxu2 }
 0x29b   :  { %v2019_v25 = vadd.f32 %v8778_v54, %v8774_v61  ;;  %v3793_v57 = vmul.f32 %v7458_v23, %v7273_v28  ;;  %v3975_v21 = vadd.f32 %v3974_v36, %v3791_v26  ;;  %v7744_v11 = vsel %vm2288_vm8, %v2011_v14, %v2544_v55  ;;  %v7762_v14 = vpop.f32.mrf.mxu3  ;;  %v8784_v54 = vld [vmem:[#allocation184_spill] sm:$0xff] }
 0x29c   :  { %v7751_v63 = vadd.f32 %v8780_v56, %v8779_v2  ;;  %v3794_v13 = vmul.f32 %v7458_v23, %v7280_v42  ;;  %v4108_v61 = vadd.f32 %v4107_v40, %v3792_v8  ;;  %v7760_v28 = vsel %vm2289_vm5, %v7666_v3, %v2545_v44  ;;  %3626 = vperm.xlu2 %4665, %v3004_v19   ;;  %v8781_v42 = vld [vmem:[#allocation178_spill] sm:$0xff]  ;;  %v8782_v44 = vld [vmem:[#allocation51_spill] sm:$0xff] }
 0x29d   :  { %v3795_v55 = vmul.f32 %v7657_v50, %v7250_v7  ;;  %v3976_v26 = vadd.f32 %v3975_v21, %v3793_v57  ;;  %3621 = vperm.xlu1 %4664, %v3003_v10   ;;  %v2549_v36 = vmul.f32 0.01, %v1690_v49  ;;  %v7769_v20 = vsel %vm2290_vm6, %v7670_v62, %v2546_v6  ;;  %v8783_v6 = vld [vmem:[#allocation130_spill] sm:$0xff]  ;;  %v8785_v21 = vld [vmem:[#allocation13_spill] sm:$0xff] }
 0x29e   :  { %v2021_v23 = vadd.f32 %v8781_v42, %v8779_v2  ;;  %v3796_v40 = vmul.f32 %v7657_v50, %v7256_v15  ;;  %v4109_v3 = vadd.f32 %v4108_v61, %v3794_v13  ;;  %3616 = vperm.xlu0 %4663, %v3002_v33   ;;  %vm2293_vm9 = vcmp.gt.f32.partialorder %v1690_v49, 0.0  ;;  %v7777_v10 = vpop.permute.xlu1 %3411  ;;  %v8786_v33 = vld [vmem:[#allocation186_spill] sm:$0xff] }
 0x29f   :  { %v3797_v7 = vmul.f32 %v7644_v51, %v8782_v44  ;;  %v3977_v8 = vadd.f32 %v3976_v26, %v3795_v55  ;;  %vm2294_vm10 = vcmp.gt.f32.partialorder %v2019_v25, 0.0  ;;  %v2550_v19 = vmul.f32 0.01, %v2019_v25  ;;  %v3407_v50 = vpop.permute.xlu0 %3406 }
 0x2a0   :  { %v2551_v62 = vmul.f32 0.01, %v7751_v63  ;;  %v1695_v57 = vadd.f32 %v8784_v54, %v8783_v6  ;;  %v3798_v2 = vmul.f32 %v7644_v51, %v8785_v21  ;;  %v4110_v15 = vadd.f32 %v4109_v3, %v3796_v40  ;;  %v3007_v51 = vld [vmem:[%s8173_s3 + $0x3f0] sm:$0xff]  ;;  %v3006_v40 = vld [vmem:[%s8173_s3 + $0x3e8] sm:$0xff]  ;;  %v8787_v54 = vld [vmem:[#allocation158_spill] sm:$0xff] }
 0x2a1   :  { %v2024_v56 = vadd.f32 %v8786_v33, %v8783_v6  ;;  %v3799_v13 = vmul.f32 %v7505_v37, %v7335_v22  ;;  %v3978_v61 = vadd.f32 %v3977_v8, %v3797_v7  ;;  %v7788_v55 = vsel %vm2293_vm9, %v1690_v49, %v2549_v36  ;;  %v7807_v8 = vpop.permute.xlu2 %3461  ;;  %v8788_v21 = vld [vmem:[#allocation192_spill] sm:$0xff] }
 0x2a2   :  { %v2552_v26 = vmul.f32 0.01, %v2021_v23  ;;  %v3800_v42 = vmul.f32 %v7505_v37, %v7357_v52  ;;  %v4111_v44 = vadd.f32 %v4110_v15, %v3798_v2  ;;  %vm2295_vm11 = vcmp.gt.f32.partialorder %v7751_v63, 0.0  ;;  %v3005_v52 = vld [vmem:[%s8173_s3 + $0x3e0] sm:$0xff]  ;;  %v8789_v2 = vld [vmem:[#allocation102_spill] sm:$0xff] }
 0x2a3   :  { %v3801_v22 = vmul.f32 %v3392_v31, %v7325_v45  ;;  %v3979_v3 = vadd.f32 %v3978_v61, %v3799_v13  ;;  %v7801_v49 = vsel %vm2294_vm10, %v2019_v25, %v2550_v19  ;;  %vm2296_vm12 = vcmp.gt.f32.partialorder %v2021_v23, 0.0  ;;  %v8790_v15 = vld [vmem:[#allocation194_spill] sm:$0xff]  ;;  %v7815_v13 = vpop.f32.mrf.mxu2 }
 0x2a4   :  { %v2553_v37 = vmul.f32 0.01, %v1695_v57  ;;  %v3802_v36 = vmul.f32 %v3392_v31, %v7343_v0  ;;  %v4112_v7 = vadd.f32 %v4111_v44, %v3800_v42  ;;  %vm2297_vm13 = vcmp.gt.f32.partialorder %v1695_v57, 0.0  ;;  %3641 = vperm.xlu2 %4665, %v3007_v51   ;;  %v8791_v0 = vld [vmem:[#allocation24_spill] sm:$0xff]  ;;  %v7819_v42 = vpop.f32.mrf.mxu3 }
 0x2a5   :  { %v2554_v6 = vmul.f32 0.01, %v2024_v56  ;;  %v1697_v45 = vadd.f32 %v8788_v21, %v8787_v54  ;;  %v3803_v25 = vmul.f32 %v7712_v35, %v8789_v2  ;;  %v3980_v19 = vadd.f32 %v3979_v3, %v3801_v22  ;;  %3636 = vperm.xlu1 %4664, %v3006_v40   ;;  %v8792_v3 = vld [vmem:[#allocation157_spill] sm:$0xff] }
 0x2a6   :  { %v2026_v33 = vadd.f32 %v8790_v15, %v8787_v54  ;;  %v3804_v31 = vmul.f32 %v7712_v35, %v8791_v0  ;;  %v4113_v61 = vadd.f32 %v4112_v7, %v3802_v36  ;;  %3631 = vperm.xlu0 %4663, %v3005_v52   ;;  %vm2298_vm0 = vcmp.gt.f32.partialorder %v2024_v56, 0.0  ;;  %v3427_v22 = vpop.permute.xlu1 %3426  ;;  %v8793_v35 = vld [vmem:[#allocation200_spill] sm:$0xff]  ;;  %v8794_v15 = vld [vmem:[#allocation202_spill] sm:$0xff] }
 0x2a7   :  { %v3805_v44 = vmul.f32 %v7543_v46, %v7388_v38  ;;  %v3981_v21 = vadd.f32 %v3980_v19, %v3803_v25  ;;  %v7826_v51 = vsel %vm2295_vm11, %v7751_v63, %v2551_v62  ;;  %v7829_v40 = vsel %vm2296_vm12, %v2021_v23, %v2552_v26  ;;  %v3422_v54 = vpop.permute.xlu0 %3421 }
 0x2a8   :  { %v1700_v36 = vadd.f32 %v8793_v35, %v8792_v3  ;;  %v3806_v52 = vmul.f32 %v7543_v46, %v7400_v59  ;;  %v4114_v7 = vadd.f32 %v4113_v61, %v3804_v31  ;;  %v7836_v38 = vsel %vm2297_vm13, %v1695_v57, %v2553_v37  ;;  %v8796_v37 = vld [vmem:[#allocation206_spill] sm:$0xff]  ;;  %v8797_v31 = vld [vmem:[#allocation208_spill] sm:$0xff] }
 0x2a9   :  { %v2555_v2 = vmul.f32 0.01, %v1697_v45  ;;  %v3807_v25 = vmul.f32 %v3407_v50, %v7377_v12  ;;  %v3982_v19 = vadd.f32 %v3981_v21, %v3805_v44  ;;  %v7839_v63 = vsel %vm2298_vm0, %v2024_v56, %v2554_v6  ;;  %v3008_v12 = vld [vmem:[%s8173_s3 + $0x3f8] sm:$0xff]  ;;  %v8795_v56 = vld [vmem:[#allocation137_spill] sm:$0xff]  ;;  %v7859_v35 = vpop.permute.xlu2 %3476 }
 0x2aa   :  { %v2556_v62 = vmul.f32 0.01, %v2026_v33  ;;  %v3808_v23 = vmul.f32 %v3407_v50, %v7380_v43  ;;  %v4115_v26 = vadd.f32 %v4114_v7, %v3806_v52  ;;  %vm2299_vm14 = vcmp.gt.f32.partialorder %v1697_v45, 0.0 }
 0x2ab   :  { %v2029_v0 = vadd.f32 %v8794_v15, %v8792_v3  ;;  %v3809_v59 = vmul.f32 %v7777_v10, %v7295_v1  ;;  %v3983_v46 = vadd.f32 %v3982_v19, %v3807_v25  ;;  %vm2300_vm15 = vcmp.gt.f32.partialorder %v2026_v33, 0.0 }
 0x2ac   :  { %v2557_v57 = vmul.f32 0.01, %v1700_v36  ;;  %v1702_v6 = vadd.f32 %v8796_v37, %v8795_v56  ;;  %v3810_v43 = vmul.f32 %v7777_v10, %v7362_v16  ;;  %v4116_v50 = vadd.f32 %v4115_v26, %v3808_v23  ;;  %v7867_v23 = vpop.f32.mrf.mxu2 }
 0x2ad   :  { %v2031_v61 = vadd.f32 %v8797_v31, %v8795_v56  ;;  %v3811_v1 = vmul.f32 %v7589_v39, %v7594_v60  ;;  %v3984_v44 = vadd.f32 %v3983_v46, %v3809_v59  ;;  %vm2301_vm1 = vcmp.gt.f32.partialorder %v1700_v36, 0.0  ;;  %v8799_v59 = vld [vmem:[#allocation213_spill] sm:$0xff] }
 0x2ae   :  { %v3812_v21 = vmul.f32 %v7589_v39, %v7605_v24  ;;  %v4117_v3 = vadd.f32 %v4116_v50, %v3810_v43  ;;  %v7862_v52 = vsel %vm2299_vm14, %v1697_v45, %v2555_v2  ;;  %v7864_v7 = vsel %vm2300_vm15, %v2026_v33, %v2556_v62  ;;  %3646 = vperm.xlu0 %4663, %v3008_v12   ;;  %v3442_v19 = vpop.permute.xlu1 %3441  ;;  %v7873_v33 = vpop.f32.mrf.mxu3  ;;  %v8802_v43 = vld [vmem:[#allocation9_spill] sm:$0xff] }
 0x2af   :  { %v2558_v16 = vmul.f32 0.01, %v2029_v0  ;;  %v3813_v10 = vmul.f32 %v3422_v54, %v7564_v9  ;;  %v3985_v25 = vadd.f32 %v3984_v44, %v3811_v1  ;;  %vm2302_vm2 = vcmp.gt.f32.partialorder %v2029_v0, 0.0  ;;  %v3437_v26 = vpop.permute.xlu0 %3436  ;;  %v8798_v9 = vld [vmem:[#allocation165_spill] sm:$0xff] }
 0x2b0   :  { %v2559_v60 = vmul.f32 0.01, %v1702_v6  ;;  %v3814_v39 = vmul.f32 %v3422_v54, %v7569_v4  ;;  %v4118_v24 = vadd.f32 %v4117_v3, %v3812_v21  ;;  %v7871_v15 = vsel %vm2301_vm1, %v1700_v36, %v2557_v57  ;;  %v8800_v4 = vld [vmem:[#allocation215_spill] sm:$0xff] }
 0x2b1   :  { %v2560_v45 = vmul.f32 0.01, %v2031_v61  ;;  %v3815_v2 = vmul.f32 %v3427_v22, %v7393_v27  ;;  %v3986_v62 = vadd.f32 %v3985_v25, %v3813_v10  ;;  %vm2303_vm3 = vcmp.gt.f32.partialorder %v1702_v6, 0.0  ;;  %v8801_v27 = vld [vmem:[#allocation164_spill] sm:$0xff] }
 0x2b2   :  { %v1705_v46 = vadd.f32 %v8799_v59, %v8798_v9  ;;  %v3816_v12 = vmul.f32 %v3427_v22, %v7405_v5  ;;  %v4119_v56 = vadd.f32 %v4118_v24, %v3814_v39  ;;  %vm2304_vm4 = vcmp.gt.f32.partialorder %v2031_v61, 0.0  ;;  %v8803_v22 = vld [vmem:[#allocation75_spill] sm:$0xff] }
 0x2b3   :  { %v2034_v54 = vadd.f32 %v8800_v4, %v8798_v9  ;;  %v3817_v36 = vmul.f32 %v7653_v58, %v7655_v47  ;;  %v3987_v57 = vadd.f32 %v3986_v62, %v3815_v2  ;;  %v7884_v37 = vsel %vm2302_vm2, %v2029_v0, %v2558_v16  ;;  %v8804_v39 = vld [vmem:[#allocation143_spill] sm:$0xff]  ;;  %v7901_v62 = vpop.permute.xlu2 %3491 }
 0x2b4   :  { %v1707_v50 = vadd.f32 %v8802_v43, %v8801_v27  ;;  %v3818_v31 = vmul.f32 %v7653_v58, %v7699_v41  ;;  %v4120_v1 = vadd.f32 %v4119_v56, %v3816_v12  ;;  %v7890_v5 = vsel %vm2303_vm3, %v1702_v6, %v2559_v60  ;;  %v8805_v24 = vld [vmem:[#allocation83_spill] sm:$0xff]  ;;  %v7910_v56 = vpop.f32.mrf.mxu2 }
 0x2b5   :  { %v2036_v44 = vadd.f32 %v8803_v22, %v8801_v27  ;;  %v3819_v21 = vmul.f32 %v3437_v26, %v7649_v30  ;;  %v3988_v3 = vadd.f32 %v3987_v57, %v3817_v36  ;;  %v7895_v47 = vsel %vm2304_vm4, %v2031_v61, %v2560_v45  ;;  %v8806_v30 = vld [vmem:[#allocation109_spill] sm:$0xff] }
 0x2b6   :  { %v2561_v10 = vmul.f32 0.01, %v1705_v46  ;;  %vm2305_vm5 = vcmp.gt.f32.partialorder %v1705_v46, 0.0  ;;  %v3820_v0 = vmul.f32 %v3437_v26, %v7662_v18  ;;  %v4121_v16 = vadd.f32 %v4120_v1, %v3818_v31  ;;  %v3457_v6 = vpop.permute.xlu1 %3456 }
 0x2b7   :  { %v2562_v25 = vmul.f32 0.01, %v2034_v54  ;;  %vm2306_vm6 = vcmp.gt.f32.partialorder %v2034_v54, 0.0  ;;  %v3821_v41 = vmul.f32 %v3442_v19, %v7412_v34  ;;  %v3989_v58 = vadd.f32 %v3988_v3, %v3819_v21  ;;  %v3452_v9 = vpop.permute.xlu0 %3451  ;;  %v8807_v34 = vld [vmem:[#allocation88_spill] sm:$0xff] }
 0x2b8   :  { %v2563_v60 = vmul.f32 0.01, %v1707_v50  ;;  %v1710_v2 = vadd.f32 %v8805_v24, %v8804_v39  ;;  %v3822_v61 = vmul.f32 %v3442_v19, %v8806_v30  ;;  %v4122_v45 = vadd.f32 %v4121_v16, %v3820_v0  ;;  %v7914_v19 = vpop.f32.mrf.mxu3 }
 0x2b9   :  { %v2564_v59 = vmul.f32 0.01, %v2036_v44  ;;  %v3823_v18 = vmul.f32 %v7724_v32, %v7726_v29  ;;  %v3990_v26 = vadd.f32 %v3989_v58, %v3821_v41  ;;  %vm2307_vm7 = vcmp.gt.f32.partialorder %v1707_v50, 0.0  ;;  %v8812_v58 = vld [vmem:[#allocation94_spill] sm:$0xff] }
 0x2ba   :  { %v7908_v12 = vadd.f32 %v8807_v34, %v8804_v39  ;;  %v3824_v4 = vmul.f32 %v7724_v32, %v7744_v11  ;;  %v4123_v36 = vadd.f32 %v4122_v45, %v3822_v61  ;;  %vm2308_vm8 = vcmp.gt.f32.partialorder %v2036_v44, 0.0 }
 0x2bb   :  { %v7917_v57 = vsel %vm2305_vm5, %v1705_v46, %v2561_v10  ;;  %v7920_v29 = vsel %vm2306_vm6, %v2034_v54, %v2562_v25  ;;  %v3825_v27 = vmul.f32 %v3452_v9, %v7760_v28  ;;  %v3991_v43 = vadd.f32 %v3990_v26, %v3823_v18  ;;  %v8808_v10 = vld [vmem:[#allocation172_spill] sm:$0xff]  ;;  %v8809_v54 = vld [vmem:[#allocation5_spill] sm:$0xff]  ;;  %v8810_v25 = vld [vmem:[#allocation50_spill] sm:$0xff] }
 0x2bc   :  { %v2565_v31 = vmul.f32 0.01, %v1710_v2  ;;  %v3826_v1 = vmul.f32 %v3452_v9, %v7769_v20  ;;  %v4124_v22 = vadd.f32 %v4123_v36, %v3824_v4  ;;  %v7924_v21 = vsel %vm2307_vm7, %v1707_v50, %v2563_v60  ;;  %v8814_v18 = vld [vmem:[#allocation149_spill] sm:$0xff]  ;;  %v8815_v26 = vld [vmem:[#allocation11_spill] sm:$0xff] }
 0x2bd   :  { %v3827_v32 = vmul.f32 %v3457_v6, %v7704_v48  ;;  %v3992_v11 = vadd.f32 %v3991_v43, %v3825_v27  ;;  %vm2309_vm9 = vcmp.gt.f32.partialorder %v1710_v2, 0.0  ;;  %v7927_v3 = vsel %vm2308_vm8, %v2036_v44, %v2564_v59  ;;  %v8811_v44 = vld [vmem:[#allocation171_spill] sm:$0xff]  ;;  %v8816_v4 = vld [vmem:[#allocation65_spill] sm:$0xff] }
 0x2be   :  { %v2566_v46 = vmul.f32 0.01, %v7908_v12  ;;  %v1712_v0 = vadd.f32 %v8809_v54, %v8808_v10  ;;  %v3828_v28 = vmul.f32 %v3457_v6, %v7737_v17  ;;  %v4125_v16 = vadd.f32 %v4124_v22, %v3826_v1  ;;  %v3472_v48 = vpop.permute.xlu1 %3471  ;;  %v8813_v6 = vld [vmem:[#allocation96_spill] sm:$0xff] }
 0x2bf   :  { %v2041_v20 = vadd.f32 %v8810_v25, %v8808_v10  ;;  %v3829_v50 = vmul.f32 %v7807_v8, %v7788_v55  ;;  %v3993_v41 = vadd.f32 %v3992_v11, %v3827_v32  ;;  %vm2310_vm10 = vcmp.gt.f32.partialorder %v7908_v12, 0.0  ;;  %v3467_v30 = vpop.permute.xlu0 %3466 }
 0x2c0   :  { %v1715_v60 = vadd.f32 %v8812_v58, %v8811_v44  ;;  %v3830_v39 = vmul.f32 %v7807_v8, %v7801_v49  ;;  %v4126_v24 = vadd.f32 %v4125_v16, %v3828_v28  ;;  %v7942_v17 = vsel %vm2309_vm9, %v1710_v2, %v2565_v31  ;;  %v7952_v49 = vpop.permute.xlu2 %3506  ;;  %v7958_v32 = vpop.f32.mrf.mxu3 }
 0x2c1   :  { %v2044_v61 = vadd.f32 %v8813_v6, %v8811_v44  ;;  %v3831_v45 = vmul.f32 %v3467_v30, %v7826_v51  ;;  %v3832_v55 = vmul.f32 %v3467_v30, %v7829_v40  ;;  %v3994_v9 = vadd.f32 %v3993_v41, %v3829_v50  ;;  %v7955_v51 = vpop.f32.mrf.mxu2  ;;  %v8818_v30 = vld [vmem:[#allocation19_spill] sm:$0xff] }
 0x2c2   :  { %v2567_v59 = vmul.f32 0.01, %v1712_v0  ;;  %v1717_v34 = vadd.f32 %v8815_v26, %v8814_v18  ;;  %v2046_v36 = vadd.f32 %v8816_v4, %v8814_v18  ;;  %v4127_v8 = vadd.f32 %v4126_v24, %v3830_v39  ;;  %v8817_v24 = vld [vmem:[#allocation179_spill] sm:$0xff]  ;;  %v8823_v26 = vld [vmem:[#allocation156_spill] sm:$0xff]  ;;  %v8824_v4 = vld [vmem:[#allocation25_spill] sm:$0xff] }
 0x2c3   :  { %v2568_v2 = vmul.f32 0.01, %v2041_v20  ;;  %vm2311_vm11 = vcmp.gt.f32.partialorder %v1712_v0, 0.0  ;;  %v3833_v27 = vmul.f32 %v3472_v48, %v7836_v38  ;;  %v3995_v43 = vadd.f32 %v3994_v9, %v3831_v45  ;;  %v8821_v9 = vld [vmem:[#allocation30_spill] sm:$0xff] }
 0x2c4   :  { %v2569_v31 = vmul.f32 0.01, %v1715_v60  ;;  %vm2312_vm12 = vcmp.gt.f32.partialorder %v2041_v20, 0.0  ;;  %v3834_v40 = vmul.f32 %v3472_v48, %v7839_v63  ;;  %v4128_v1 = vadd.f32 %v4127_v8, %v3832_v55 }
 0x2c5   :  { %v2570_v22 = vmul.f32 0.01, %v2044_v61  ;;  %v3835_v11 = vmul.f32 %v7859_v35, %v7862_v52  ;;  %v3996_v10 = vadd.f32 %v3995_v43, %v3833_v27  ;;  %vm2313_vm13 = vcmp.gt.f32.partialorder %v1715_v60, 0.0 }
 0x2c6   :  { %v2571_v54 = vmul.f32 0.01, %v1717_v34  ;;  %v2572_v28 = vmul.f32 0.01, %v2046_v36  ;;  %v4129_v16 = vadd.f32 %v4128_v1, %v3834_v40  ;;  %vm2314_vm0 = vcmp.gt.f32.partialorder %v2044_v61, 0.0  ;;  %v3487_v25 = vpop.permute.xlu1 %3486  ;;  %v8826_v40 = vld [vmem:[#allocation185_spill] sm:$0xff] }
 0x2c7   :  { %v3836_v38 = vmul.f32 %v7859_v35, %v7864_v7  ;;  %v3997_v50 = vadd.f32 %v3996_v10, %v3835_v11  ;;  %vm2315_vm14 = vcmp.gt.f32.partialorder %v1717_v34, 0.0  ;;  %vm2316_vm15 = vcmp.gt.f32.partialorder %v2046_v36, 0.0  ;;  %v3482_v48 = vpop.permute.xlu0 %3481  ;;  %v8827_v1 = vld [vmem:[#allocation26_spill] sm:$0xff]  ;;  %v8828_v11 = vld [vmem:[#allocation29_spill] sm:$0xff] }
 0x2c8   :  { %v2823_v63 = vsel %vm2311_vm11, %v1712_v0, %v2567_v59  ;;  %v2824_v41 = vsel %vm2312_vm12, %v2041_v20, %v2568_v2  ;;  %v2822_v52 = vsel %vm2310_vm10, %v7908_v12, %v2566_v46  ;;  %v7969_v44 = vsel %vm2313_vm13, %v1715_v60, %v2569_v31  ;;  %v8819_v0 = vld [vmem:[#allocation4_spill] sm:$0xff]  ;;  %v8822_v59 = vld [vmem:[#allocation129_spill] sm:$0xff] }
 0x2c9   :  { %v3837_v58 = vmul.f32 %v3482_v48, %v7871_v15  ;;  %v3838_v39 = vmul.f32 %v3482_v48, %v7884_v37  ;;  %v4130_v35 = vadd.f32 %v4129_v16, %v3836_v38  ;;  %v7973_v7 = vsel %vm2314_vm0, %v2044_v61, %v2570_v22  ;;  %v8820_v37 = vld [vmem:[#allocation177_spill] sm:$0xff]  ;;  %v8005_v16 = vpop.f32.mrf.mxu3 }
 0x2ca   :  { %v1720_v6 = vadd.f32 %v8818_v30, %v8817_v24  ;;  %v2049_v20 = vadd.f32 %v8819_v0, %v8817_v24  ;;  %v7979_v45 = vsel %vm2315_vm14, %v1717_v34, %v2571_v54  ;;  %v7981_v55 = vsel %vm2316_vm15, %v2046_v36, %v2572_v28  ;;  %v8825_v34 = vld [vmem:[#allocation87_spill] sm:$0xff]  ;;  %v7993_v36 = vpop.permute.xlu2 %3521  ;;  %v8003_v54 = vpop.f32.mrf.mxu2 }
 0x2cb   :  { %v3839_v12 = vmul.f32 %v3487_v25, %v7890_v5  ;;  %v3840_v46 = vmul.f32 %v3487_v25, %v7895_v47  ;;  %v3998_v15 = vadd.f32 %v3997_v50, %v3837_v58  ;;  %v4131_v60 = vadd.f32 %v4130_v35, %v3838_v39 }
 0x2cc   :  { %v1722_v61 = vadd.f32 %v8821_v9, %v8820_v37  ;;  %v2051_v18 = vadd.f32 %v8822_v59, %v8820_v37  ;;  %v1725_v8 = vadd.f32 %v8824_v4, %v8823_v26  ;;  %v2054_v2 = vadd.f32 %v8825_v34, %v8823_v26  ;;  %v8830_v37 = vld [vmem:[#allocation147_spill] sm:$0xff]  ;;  %v8831_v59 = vld [vmem:[#allocation148_spill] sm:$0xff] }
 0x2cd   :  { %v3841_v5 = vmul.f32 %v7901_v62, %v7917_v57  ;;  %v3842_v47 = vmul.f32 %v7901_v62, %v7920_v29  ;;  %v3999_v27 = vadd.f32 %v3998_v15, %v3839_v12  ;;  %v4132_v43 = vadd.f32 %v4131_v60, %v3840_v46  ;;  %v8829_v60 = vld [vmem:[#allocation183_spill] sm:$0xff] }
 0x2ce   :  { %v2573_v31 = vmul.f32 0.01, %v1720_v6  ;;  %v1727_v22 = vadd.f32 %v8827_v1, %v8826_v40  ;;  %v2056_v10 = vadd.f32 %v8828_v11, %v8826_v40  ;;  %vm2317_vm1 = vcmp.gt.f32.partialorder %v1720_v6, 0.0  ;;  %v3502_v57 = vpop.permute.xlu1 %3501 }
 0x2cf   :  { %v2574_v28 = vmul.f32 0.01, %v2049_v20  ;;  %vm2318_vm2 = vcmp.gt.f32.partialorder %v2049_v20, 0.0  ;;  %v4000_v38 = vadd.f32 %v3999_v27, %v3841_v5  ;;  %v4133_v25 = vadd.f32 %v4132_v43, %v3842_v47  ;;  %v3497_v50 = vpop.permute.xlu0 %3496  ;;  %v8832_v5 = vld [vmem:[#allocation163_spill] sm:$0xff]  ;;  %v8833_v47 = vld [vmem:[#allocation34_spill] sm:$0xff] }
 0x2d0   :  { %v2575_v62 = vmul.f32 0.01, %v1722_v61  ;;  %v2576_v29 = vmul.f32 0.01, %v2051_v18  ;;  %vm2319_vm3 = vcmp.gt.f32.partialorder %v1722_v61, 0.0  ;;  %vm2320_vm4 = vcmp.gt.f32.partialorder %v2051_v18, 0.0 }
 0x2d1   :  { %v2577_v48 = vmul.f32 0.01, %v1725_v8  ;;  %v2578_v58 = vmul.f32 0.01, %v2054_v2  ;;  %v3843_v39 = vmul.f32 %v3497_v50, %v7924_v21  ;;  %v3844_v35 = vmul.f32 %v3497_v50, %v7927_v3 }
 0x2d2   :  { %v2579_v24 = vmul.f32 0.01, %v1727_v22  ;;  %v2580_v30 = vmul.f32 0.01, %v2056_v10  ;;  %vm2321_vm5 = vcmp.gt.f32.partialorder %v1725_v8, 0.0  ;;  %vm2322_vm6 = vcmp.gt.f32.partialorder %v2054_v2, 0.0  ;;  %v8022_v1 = vpop.permute.xlu2 %3536 }
 0x2d3   :  { %v3845_v0 = vmul.f32 %v3502_v57, %v7942_v17  ;;  %v3846_v12 = vmul.f32 %v3502_v57, %v2822_v52  ;;  %v4001_v46 = vadd.f32 %v4000_v38, %v3843_v39  ;;  %v4134_v15 = vadd.f32 %v4133_v25, %v3844_v35  ;;  %v8834_v52 = vld [vmem:[#allocation166_spill] sm:$0xff]  ;;  %v8032_v35 = vpop.f32.mrf.mxu3 }
 0x2d4   :  { %v1730_v9 = vadd.f32 %v8830_v37, %v8829_v60  ;;  %v2059_v26 = vadd.f32 %v8831_v59, %v8829_v60  ;;  %vm2323_vm7 = vcmp.gt.f32.partialorder %v1727_v22, 0.0  ;;  %vm2324_vm8 = vcmp.gt.f32.partialorder %v2056_v10, 0.0 }
 0x2d5   :  { %v3847_v21 = vmul.f32 %v7952_v49, %v2823_v63  ;;  %v3848_v3 = vmul.f32 %v7952_v49, %v2824_v41  ;;  %v4002_v4 = vadd.f32 %v4001_v46, %v3845_v0  ;;  %v4135_v34 = vadd.f32 %v4134_v15, %v3846_v12  ;;  %v8026_v41 = vpop.f32.mrf.mxu2  ;;  %v8838_v15 = vld [vmem:[#allocation190_spill] sm:$0xff] }
 0x2d6   :  { %v1732_v17 = vadd.f32 %v8833_v47, %v8832_v5  ;;  %v2061_v27 = vadd.f32 %v8834_v52, %v8832_v5  ;;  %v2829_v43 = vsel %vm2317_vm1, %v1720_v6, %v2573_v31  ;;  %v2830_v40 = vsel %vm2318_vm2, %v2049_v20, %v2574_v28  ;;  %v3517_v11 = vpop.permute.xlu1 %3516 }
 0x2d7   :  { %v4003_v57 = vadd.f32 %v4002_v4, %v3847_v21  ;;  %v4136_v38 = vadd.f32 %v4135_v34, %v3848_v3  ;;  %v2831_v63 = vsel %vm2319_vm3, %v1722_v61, %v2575_v62  ;;  %v2832_v49 = vsel %vm2320_vm4, %v2051_v18, %v2576_v29  ;;  %v3512_v39 = vpop.permute.xlu0 %3511 }
 0x2d8   :  { %v2835_v25 = vsel %vm2323_vm7, %v1727_v22, %v2579_v24  ;;  %v2836_v50 = vsel %vm2324_vm8, %v2056_v10, %v2580_v30  ;;  %v2833_v6 = vsel %vm2321_vm5, %v1725_v8, %v2577_v48  ;;  %v2834_v20 = vsel %vm2322_vm6, %v2054_v2, %v2578_v58  ;;  %v8835_v48 = vld [vmem:[#allocation191_spill] sm:$0xff]  ;;  %v8836_v2 = vld [vmem:[#allocation18_spill] sm:$0xff] }
 0x2d9   :  { %v2581_v31 = vmul.f32 0.01, %v1730_v9  ;;  %v2582_v28 = vmul.f32 0.01, %v2059_v26  ;;  %v3849_v0 = vmul.f32 %v3512_v39, %v7969_v44  ;;  %v3850_v61 = vmul.f32 %v3512_v39, %v7973_v7  ;;  %v8837_v24 = vld [vmem:[#allocation114_spill] sm:$0xff] }
 0x2da   :  { %v2583_v18 = vmul.f32 0.01, %v1732_v17  ;;  %v2584_v62 = vmul.f32 0.01, %v2061_v27  ;;  %vm2325_vm9 = vcmp.gt.f32.partialorder %v1730_v9, 0.0  ;;  %vm2326_vm10 = vcmp.gt.f32.partialorder %v2059_v26, 0.0  ;;  %v3552_v39 = vpop.permute.xlu2 %3551 }
 0x2db   :  { %v3851_v22 = vmul.f32 %v3517_v11, %v7979_v45  ;;  %v3852_v10 = vmul.f32 %v3517_v11, %v7981_v55  ;;  %v4004_v29 = vadd.f32 %v4003_v57, %v3849_v0  ;;  %v4137_v8 = vadd.f32 %v4136_v38, %v3850_v61  ;;  %v8839_v45 = vld [vmem:[#allocation168_spill] sm:$0xff]  ;;  %v8840_v55 = vld [vmem:[#allocation110_spill] sm:$0xff]  ;;  %v8843_v57 = vld [vmem:[#allocation7_spill] sm:$0xff] }
 0x2dc   :  { %v1735_v58 = vadd.f32 %v8836_v2, %v8835_v48  ;;  %v2064_v30 = vadd.f32 %v8837_v24, %v8835_v48  ;;  %vm2327_vm11 = vcmp.gt.f32.partialorder %v1732_v17, 0.0  ;;  %vm2328_vm12 = vcmp.gt.f32.partialorder %v2061_v27, 0.0  ;;  %v8844_v61 = vld [vmem:[#allocation198_spill] sm:$0xff] }
 0x2dd   :  { %v3853_v44 = vmul.f32 %v7993_v36, %v2829_v43  ;;  %v3854_v7 = vmul.f32 %v7993_v36, %v2830_v40  ;;  %v4005_v12 = vadd.f32 %v4004_v29, %v3851_v22  ;;  %v4138_v46 = vadd.f32 %v4137_v8, %v3852_v10  ;;  %v8841_v36 = vld [vmem:[#allocation170_spill] sm:$0xff]  ;;  %v8842_v40 = vld [vmem:[#allocation115_spill] sm:$0xff]  ;;  %v8845_v22 = vld [vmem:[#allocation121_spill] sm:$0xff]  ;;  %v8060_v10 = vpop.f32.mrf.mxu3 }
 0x2de   :  { %v1737_v60 = vadd.f32 %v8839_v45, %v8838_v15  ;;  %v2066_v37 = vadd.f32 %v8840_v55, %v8838_v15  ;;  %v2837_v59 = vsel %vm2325_vm9, %v1730_v9, %v2581_v31  ;;  %v2838_v21 = vsel %vm2326_vm10, %v2059_v26, %v2582_v28 }
 0x2df   :  { %v3532_v3 = vpop.permute.xlu1 %3531  ;;  %v4006_v4 = vadd.f32 %v4005_v12, %v3853_v44  ;;  %v4139_v34 = vadd.f32 %v4138_v46, %v3854_v7  ;;  %v2839_v5 = vsel %vm2327_vm11, %v1732_v17, %v2583_v18  ;;  %v2840_v47 = vsel %vm2328_vm12, %v2061_v27, %v2584_v62  ;;  %v8846_v27 = vld [vmem:[#allocation112_spill] sm:$0xff]  ;;  %v8058_v62 = vpop.f32.mrf.mxu2 }
 0x2e0   :  { %v2585_v52 = vmul.f32 0.01, %v1735_v58  ;;  %v2586_v43 = vmul.f32 0.01, %v2064_v30  ;;  %v1740_v11 = vadd.f32 %v8842_v40, %v8841_v36  ;;  %v2069_v38 = vadd.f32 %v8843_v57, %v8841_v36  ;;  %v3527_v0 = vpop.permute.xlu0 %3526  ;;  %v8847_v57 = vld [vmem:[#allocation197_spill] sm:$0xff] }
 0x2e1   :  { %vm2329_vm13 = vcmp.gt.f32.partialorder %v1735_v58, 0.0  ;;  %vm2330_vm0 = vcmp.gt.f32.partialorder %v2064_v30, 0.0  ;;  %v3855_v9 = vmul.f32 %v3527_v0, %v2831_v63  ;;  %v3856_v31 = vmul.f32 %v3527_v0, %v2832_v49  ;;  %v8848_v0 = vld [vmem:[#allocation111_spill] sm:$0xff] }
 0x2e2   :  { %v2587_v26 = vmul.f32 0.01, %v1737_v60  ;;  %v2588_v28 = vmul.f32 0.01, %v2066_v37  ;;  %v1742_v17 = vadd.f32 %v8845_v22, %v8844_v61  ;;  %v2071_v18 = vadd.f32 %v8846_v27, %v8844_v61  ;;  %v3567_v22 = vpop.permute.xlu2 %3566  ;;  %v8854_v27 = vld [vmem:[#allocation39_spill] sm:$0xff] }
 0x2e3   :  { %v3857_v29 = vmul.f32 %v3532_v3, %v2833_v6  ;;  %v3858_v8 = vmul.f32 %v3532_v3, %v2834_v20  ;;  %v4007_v48 = vadd.f32 %v4006_v4, %v3855_v9  ;;  %v4140_v2 = vadd.f32 %v4139_v34, %v3856_v31  ;;  %v8849_v31 = vld [vmem:[#allocation45_spill] sm:$0xff] }
 0x2e4   :  { %v2589_v24 = vmul.f32 0.01, %v1740_v11  ;;  %v2590_v44 = vmul.f32 0.01, %v2069_v38  ;;  %vm2331_vm14 = vcmp.gt.f32.partialorder %v1737_v60, 0.0  ;;  %vm2332_vm15 = vcmp.gt.f32.partialorder %v2066_v37, 0.0 }
 0x2e5   :  { %v3859_v63 = vmul.f32 %v8022_v1, %v2835_v25  ;;  %v3860_v49 = vmul.f32 %v8022_v1, %v2836_v50  ;;  %v4008_v7 = vadd.f32 %v4007_v48, %v3857_v29  ;;  %v4141_v12 = vadd.f32 %v4140_v2, %v3858_v8  ;;  %v8855_v8 = vld [vmem:[#allocation187_spill] sm:$0xff] }
 0x2e6   :  { %v2591_v46 = vmul.f32 0.01, %v1742_v17  ;;  %v2592_v15 = vmul.f32 0.01, %v2071_v18  ;;  %vm2333_vm1 = vcmp.gt.f32.partialorder %v1740_v11, 0.0  ;;  %vm2334_vm2 = vcmp.gt.f32.partialorder %v2069_v38, 0.0 }
 0x2e7   :  { %vm2335_vm3 = vcmp.gt.f32.partialorder %v1742_v17, 0.0  ;;  %vm2336_vm4 = vcmp.gt.f32.partialorder %v2071_v18, 0.0  ;;  %v3547_v6 = vpop.permute.xlu1 %3546  ;;  %v4009_v20 = vadd.f32 %v4008_v7, %v3859_v63  ;;  %v4142_v45 = vadd.f32 %v4141_v12, %v3860_v49  ;;  %v8082_v2 = vpop.f32.mrf.mxu2  ;;  %v8856_v49 = vld [vmem:[#allocation204_spill] sm:$0xff] }
 0x2e8   :  { %v2841_v55 = vsel %vm2329_vm13, %v1735_v58, %v2585_v52  ;;  %v2842_v3 = vsel %vm2330_vm0, %v2064_v30, %v2586_v43  ;;  %v3542_v4 = vpop.permute.xlu0 %3541  ;;  %v2843_v25 = vsel %vm2331_vm14, %v1737_v60, %v2587_v26  ;;  %v2844_v1 = vsel %vm2332_vm15, %v2066_v37, %v2588_v28  ;;  %v8850_v37 = vld [vmem:[#allocation176_spill] sm:$0xff]  ;;  %v8853_v28 = vld [vmem:[#allocation205_spill] sm:$0xff] }
 0x2e9   :  { %v3861_v50 = vmul.f32 %v3542_v4, %v2837_v59  ;;  %v3862_v34 = vmul.f32 %v3542_v4, %v2838_v21  ;;  %v2845_v36 = vsel %vm2333_vm1, %v1740_v11, %v2589_v24  ;;  %v2846_v40 = vsel %vm2334_vm2, %v2069_v38, %v2590_v44  ;;  %v8851_v59 = vld [vmem:[#allocation46_spill] sm:$0xff] }
 0x2ea   :  { %v1745_v9 = vadd.f32 %v8848_v0, %v8847_v57  ;;  %v2074_v61 = vadd.f32 %v8849_v31, %v8847_v57  ;;  %v2847_v58 = vsel %vm2335_vm3, %v1742_v17, %v2591_v46  ;;  %v2848_v30 = vsel %vm2336_vm4, %v2071_v18, %v2592_v15  ;;  %v8852_v11 = vld [vmem:[#allocation122_spill] sm:$0xff]  ;;  %v8084_v17 = vpop.f32.mrf.mxu3 }
 0x2eb   :  { %v3863_v52 = vmul.f32 %v3547_v6, %v2839_v5  ;;  %v3864_v43 = vmul.f32 %v3547_v6, %v2840_v47  ;;  %v4010_v60 = vadd.f32 %v4009_v20, %v3861_v50  ;;  %v4143_v26 = vadd.f32 %v4142_v45, %v3862_v34 }
 0x2ec   :  { %v1747_v21 = vadd.f32 %v8851_v59, %v8850_v37  ;;  %v2076_v38 = vadd.f32 %v8852_v11, %v8850_v37  ;;  %v1750_v29 = vadd.f32 %v8854_v27, %v8853_v28  ;;  %v2079_v48 = vadd.f32 %v8855_v8, %v8853_v28 }
 0x2ed   :  { %v3865_v5 = vmul.f32 %v3552_v39, %v2841_v55  ;;  %v3866_v47 = vmul.f32 %v3552_v39, %v2842_v3  ;;  %v4011_v18 = vadd.f32 %v4010_v60, %v3863_v52  ;;  %v4144_v24 = vadd.f32 %v4143_v26, %v3864_v43  ;;  %v8857_v52 = vld [vmem:[#allocation182_spill] sm:$0xff]  ;;  %v3582_v26 = vpop.permute.xlu2 %3581 }
 0x2ee   :  { %v2593_v44 = vmul.f32 0.01, %v1745_v9  ;;  %v2594_v63 = vmul.f32 0.01, %v2074_v61  ;;  %v1752_v7 = vadd.f32 %v7753_v53, %v8856_v49  ;;  %v2081_v12 = vadd.f32 %v7762_v14, %v8856_v49 }
 0x2ef   :  { %v3562_v46 = vpop.permute.xlu1 %3561  ;;  %v4012_v15 = vadd.f32 %v4011_v18, %v3865_v5  ;;  %v4145_v6 = vadd.f32 %v4144_v24, %v3866_v47  ;;  %vm2337_vm5 = vcmp.gt.f32.partialorder %v1745_v9, 0.0  ;;  %vm2338_vm6 = vcmp.gt.f32.partialorder %v2074_v61, 0.0  ;;  %v8094_v11 = vpop.f32.mrf.mxu2 }
 0x2f0   :  { %v2595_v20 = vmul.f32 0.01, %v1747_v21  ;;  %v2596_v45 = vmul.f32 0.01, %v2076_v38  ;;  %v3557_v4 = vpop.permute.xlu0 %3556  ;;  %vm2339_vm7 = vcmp.gt.f32.partialorder %v1747_v21, 0.0  ;;  %vm2340_vm8 = vcmp.gt.f32.partialorder %v2076_v38, 0.0 }
 0x2f1   :  { %v2597_v39 = vmul.f32 0.01, %v1750_v29  ;;  %v2598_v55 = vmul.f32 0.01, %v2079_v48  ;;  %v3867_v3 = vmul.f32 %v3557_v4, %v2843_v25  ;;  %v3868_v50 = vmul.f32 %v3557_v4, %v2844_v1 }
 0x2f2   :  { %v2599_v34 = vmul.f32 0.01, %v1752_v7  ;;  %v2600_v57 = vmul.f32 0.01, %v2081_v12  ;;  %vm2341_vm9 = vcmp.gt.f32.partialorder %v1750_v29, 0.0  ;;  %vm2342_vm10 = vcmp.gt.f32.partialorder %v2079_v48, 0.0  ;;  %v8098_v28 = vpop.f32.mrf.mxu3 }
 0x2f3   :  { %v3869_v53 = vmul.f32 %v3562_v46, %v2845_v36  ;;  %v3870_v14 = vmul.f32 %v3562_v46, %v2846_v40  ;;  %v4013_v0 = vadd.f32 %v4012_v15, %v3867_v3  ;;  %v4146_v31 = vadd.f32 %v4145_v6, %v3868_v50  ;;  %v8859_v15 = vld [vmem:[#allocation207_spill] sm:$0xff]  ;;  %v8860_v6 = vld [vmem:[#allocation189_spill] sm:$0xff] }
 0x2f4   :  { %v1755_v43 = vadd.f32 %v7815_v13, %v8857_v52  ;;  %v2084_v60 = vadd.f32 %v7819_v42, %v8857_v52  ;;  %vm2343_vm11 = vcmp.gt.f32.partialorder %v1752_v7, 0.0  ;;  %vm2344_vm12 = vcmp.gt.f32.partialorder %v2081_v12, 0.0 }
 0x2f5   :  { %v3871_v37 = vmul.f32 %v3567_v22, %v2847_v58  ;;  %v3872_v25 = vmul.f32 %v3567_v22, %v2848_v30  ;;  %v4014_v1 = vadd.f32 %v4013_v0, %v3869_v53  ;;  %v4147_v59 = vadd.f32 %v4146_v31, %v3870_v14  ;;  %v3597_v50 = vpop.permute.xlu2 %3596 }
 0x2f6   :  { %v2849_v36 = vsel %vm2337_vm5, %v1745_v9, %v2593_v44  ;;  %v2850_v40 = vsel %vm2338_vm6, %v2074_v61, %v2594_v63  ;;  %v2851_v13 = vsel %vm2339_vm7, %v1747_v21, %v2595_v20  ;;  %v2852_v42 = vsel %vm2340_vm8, %v2076_v38, %v2596_v45  ;;  %v8858_v63 = vld [vmem:[#allocation209_spill] sm:$0xff] }
 0x2f7   :  { %v3577_v27 = vpop.permute.xlu1 %3576  ;;  %v4015_v8 = vadd.f32 %v4014_v1, %v3871_v37  ;;  %v4148_v5 = vadd.f32 %v4147_v59, %v3872_v25  ;;  %v2853_v58 = vsel %vm2341_vm9, %v1750_v29, %v2597_v39  ;;  %v2854_v22 = vsel %vm2342_vm10, %v2079_v48, %v2598_v55  ;;  %v8120_v52 = vpop.f32.mrf.mxu2  ;;  %v8861_v25 = vld [vmem:[#allocation214_spill] sm:$0xff] }
 0x2f8   :  { %v3572_v30 = vpop.permute.xlu0 %3571  ;;  %v2855_v47 = vsel %vm2343_vm11, %v1752_v7, %v2599_v34  ;;  %v2856_v9 = vsel %vm2344_vm12, %v2081_v12, %v2600_v57  ;;  %v2601_v18 = vmul.f32 0.01, %v1755_v43  ;;  %v2602_v61 = vmul.f32 0.01, %v2084_v60 }
 0x2f9   :  { %v3873_v24 = vmul.f32 %v3572_v30, %v2849_v36  ;;  %v3874_v44 = vmul.f32 %v3572_v30, %v2850_v40  ;;  %v1757_v21 = vadd.f32 %v7867_v23, %v8858_v63  ;;  %v2086_v38 = vadd.f32 %v7873_v33, %v8858_v63 }
 0x2fa   :  { %vm2345_vm13 = vcmp.gt.f32.partialorder %v1755_v43, 0.0  ;;  %vm2346_vm0 = vcmp.gt.f32.partialorder %v2084_v60, 0.0  ;;  %v3875_v29 = vmul.f32 %v3577_v27, %v2851_v13  ;;  %v3876_v49 = vmul.f32 %v3577_v27, %v2852_v42  ;;  %v8862_v13 = vld [vmem:[#allocation212_spill] sm:$0xff] }
 0x2fb   :  { %v4016_v48 = vadd.f32 %v4015_v8, %v3873_v24  ;;  %v4149_v46 = vadd.f32 %v4148_v5, %v3874_v44  ;;  %v1760_v7 = vadd.f32 %v7910_v56, %v8859_v15  ;;  %v2089_v12 = vadd.f32 %v7914_v19, %v8859_v15 }
 0x2fc   :  { %v1762_v20 = vadd.f32 %v7955_v51, %v8860_v6  ;;  %v2091_v23 = vadd.f32 %v7958_v32, %v8860_v6  ;;  %v3877_v45 = vmul.f32 %v3582_v26, %v2853_v58  ;;  %v3878_v33 = vmul.f32 %v3582_v26, %v2854_v22  ;;  %v8122_v26 = vpop.f32.mrf.mxu3 }
 0x2fd   :  { %v4017_v4 = vadd.f32 %v4016_v48, %v3875_v29  ;;  %v4150_v39 = vadd.f32 %v4149_v46, %v3876_v49  ;;  %v2603_v55 = vmul.f32 0.01, %v1757_v21  ;;  %v2604_v3 = vmul.f32 0.01, %v2086_v38  ;;  %v3612_v49 = vpop.permute.xlu2 %3611 }
 0x2fe   :  { %v2857_v34 = vsel %vm2345_vm13, %v1755_v43, %v2601_v18  ;;  %v2858_v56 = vsel %vm2346_vm0, %v2084_v60, %v2602_v61  ;;  %vm2347_vm14 = vcmp.gt.f32.partialorder %v1757_v21, 0.0  ;;  %vm2348_vm15 = vcmp.gt.f32.partialorder %v2086_v38, 0.0 }
 0x2ff   :  { %v3592_v19 = vpop.permute.xlu1 %3591  ;;  %v4018_v57 = vadd.f32 %v4017_v4, %v3877_v45  ;;  %v4151_v53 = vadd.f32 %v4150_v39, %v3878_v33  ;;  %v2605_v51 = vmul.f32 0.01, %v1760_v7  ;;  %v2606_v14 = vmul.f32 0.01, %v2089_v12  ;;  %v1779_v6 = vpop.f32.mrf.mxu2  ;;  %v8864_v39 = vld [vmem:[#allocation219_spill] sm:$0xff] }
 0x300   :  { %v3587_v0 = vpop.permute.xlu0 %3586  ;;  %vm2349_vm1 = vcmp.gt.f32.partialorder %v1760_v7, 0.0  ;;  %vm2350_vm2 = vcmp.gt.f32.partialorder %v2089_v12, 0.0  ;;  %v2607_v32 = vmul.f32 0.01, %v1762_v20  ;;  %v2608_v31 = vmul.f32 0.01, %v2091_v23 }
 0x301   :  { %v3879_v37 = vmul.f32 %v3587_v0, %v2855_v47  ;;  %v3880_v43 = vmul.f32 %v3587_v0, %v2856_v9  ;;  %v1765_v60 = vadd.f32 %v8003_v54, %v8861_v25  ;;  %v2094_v1 = vadd.f32 %v8005_v16, %v8861_v25  ;;  %v8863_v47 = vld [vmem:[#allocation196_spill] sm:$0xff] }
 0x302   :  { %vm2351_vm3 = vcmp.gt.f32.partialorder %v1762_v20, 0.0  ;;  %vm2352_vm4 = vcmp.gt.f32.partialorder %v2091_v23, 0.0  ;;  %v3881_v59 = vmul.f32 %v3592_v19, %v2857_v34  ;;  %v3882_v36 = vmul.f32 %v3592_v19, %v2858_v56 }
 0x303   :  { %v4019_v40 = vadd.f32 %v4018_v57, %v3879_v37  ;;  %v4152_v27 = vadd.f32 %v4151_v53, %v3880_v43  ;;  %v1767_v42 = vadd.f32 %v8026_v41, %v8862_v13  ;;  %v2096_v8 = vadd.f32 %v8032_v35, %v8862_v13  ;;  %v8865_v57 = vld [vmem:[#allocation218_spill] sm:$0xff] }
 0x304   :  { %v2859_v5 = vsel %vm2347_vm14, %v1757_v21, %v2603_v55  ;;  %v2860_v58 = vsel %vm2348_vm15, %v2086_v38, %v2604_v3  ;;  %v2861_v16 = vsel %vm2349_vm1, %v1760_v7, %v2605_v51  ;;  %v2862_v30 = vsel %vm2350_vm2, %v2089_v12, %v2606_v14 }
 0x305   :  { %v4020_v54 = vadd.f32 %v4019_v40, %v3881_v59  ;;  %v4153_v22 = vadd.f32 %v4152_v27, %v3882_v36  ;;  %v1770_v9 = vadd.f32 %v8058_v62, %v8863_v47  ;;  %v2099_v18 = vadd.f32 %v8060_v10, %v8863_v47 }
 0x306   :  { %v2863_v41 = vsel %vm2351_vm3, %v1762_v20, %v2607_v32  ;;  %v2864_v35 = vsel %vm2352_vm4, %v2091_v23, %v2608_v31  ;;  %v2609_v61 = vmul.f32 0.01, %v1765_v60  ;;  %v2610_v24 = vmul.f32 0.01, %v2094_v1  ;;  %v2108_v20 = vpop.f32.mrf.mxu3 }
 0x307   :  { %v3883_v44 = vmul.f32 %v3597_v50, %v2859_v5  ;;  %v3884_v63 = vmul.f32 %v3597_v50, %v2860_v58  ;;  %v3607_v21 = vpop.permute.xlu1 %3606  ;;  %v2611_v38 = vmul.f32 0.01, %v1767_v42  ;;  %v2612_v29 = vmul.f32 0.01, %v2096_v8 }
 0x308   :  { %vm2353_vm5 = vcmp.gt.f32.partialorder %v1765_v60, 0.0  ;;  %vm2354_vm6 = vcmp.gt.f32.partialorder %v2094_v1, 0.0  ;;  %v3602_v48 = vpop.permute.xlu0 %3601  ;;  %v2613_v10 = vmul.f32 0.01, %v1770_v9  ;;  %v2614_v12 = vmul.f32 0.01, %v2099_v18 }
 0x309   :  { %v3885_v46 = vmul.f32 %v3602_v48, %v2861_v16  ;;  %v3886_v62 = vmul.f32 %v3602_v48, %v2862_v30  ;;  %v4021_v15 = vadd.f32 %v4020_v54, %v3883_v44  ;;  %v4154_v7 = vadd.f32 %v4153_v22, %v3884_v63 }
 0x30a   :  { %vm2355_vm7 = vcmp.gt.f32.partialorder %v1767_v42, 0.0  ;;  %vm2356_vm8 = vcmp.gt.f32.partialorder %v2096_v8, 0.0  ;;  %v3887_v23 = vmul.f32 %v3607_v21, %v2863_v41  ;;  %v3888_v45 = vmul.f32 %v3607_v21, %v2864_v35 }
 0x30b   :  { %v4022_v33 = vadd.f32 %v4021_v15, %v3885_v46  ;;  %v4155_v4 = vadd.f32 %v4154_v7, %v3886_v62  ;;  %v1772_v55 = vadd.f32 %v8082_v2, %v8864_v39  ;;  %v2101_v3 = vadd.f32 %v8084_v17, %v8864_v39 }
 0x30c   :  { %vm2357_vm9 = vcmp.gt.f32.partialorder %v1770_v9, 0.0  ;;  %vm2358_vm10 = vcmp.gt.f32.partialorder %v2099_v18, 0.0  ;;  %v2865_v50 = vsel %vm2353_vm5, %v1765_v60, %v2609_v61  ;;  %v2866_v34 = vsel %vm2354_vm6, %v2094_v1, %v2610_v24  ;;  %v8866_v60 = vld [vmem:[#allocation203_spill] sm:$0xff] }
 0x30d   :  { %v4023_v56 = vadd.f32 %v4022_v33, %v3887_v23  ;;  %v4156_v19 = vadd.f32 %v4155_v4, %v3888_v45  ;;  %v1775_v53 = vadd.f32 %v8094_v11, %v8865_v57  ;;  %v2104_v51 = vadd.f32 %v8098_v28, %v8865_v57 }
 0x30e   :  { %v2867_v14 = vsel %vm2355_vm7, %v1767_v42, %v2611_v38  ;;  %v2868_v2 = vsel %vm2356_vm8, %v2096_v8, %v2612_v29  ;;  %v3889_v0 = vmul.f32 %v3612_v49, %v2865_v50  ;;  %v3890_v17 = vmul.f32 %v3612_v49, %v2866_v34  ;;  %v3627_v8 = vpop.permute.xlu2 %3626  ;;  %v8868_v29 = vld [vmem:[#allocation20_spill] sm:$0xff] }
 0x30f   :  { %v3622_v32 = vpop.permute.xlu1 %3621  ;;  %v2869_v31 = vsel %vm2357_vm9, %v1770_v9, %v2613_v10  ;;  %v2870_v37 = vsel %vm2358_vm10, %v2099_v18, %v2614_v12  ;;  %v2615_v43 = vmul.f32 0.01, %v1772_v55  ;;  %v2616_v25 = vmul.f32 0.01, %v2101_v3  ;;  %v8867_v18 = vld [vmem:[#allocation21_spill] sm:$0xff] }
 0x310   :  { %v1777_v1 = vadd.f32 %v8120_v52, %v8866_v60  ;;  %v2106_v11 = vadd.f32 %v8122_v26, %v8866_v60  ;;  %v3617_v59 = vpop.permute.xlu0 %3616  ;;  %v4024_v40 = vadd.f32 %v4023_v56, %v3889_v0  ;;  %v4157_v27 = vadd.f32 %v4156_v19, %v3890_v17  ;;  %v1781_v52 = vpop.f32.mrf.mxu2 }
 0x311   :  { %v3891_v36 = vmul.f32 %v3617_v59, %v2867_v14  ;;  %v3892_v28 = vmul.f32 %v3617_v59, %v2868_v2  ;;  %v2617_v13 = vmul.f32 0.01, %v1775_v53  ;;  %v2618_v42 = vmul.f32 0.01, %v2104_v51  ;;  %v2110_v26 = vpop.f32.mrf.mxu3 }
 0x312   :  { %vm2359_vm11 = vcmp.gt.f32.partialorder %v1772_v55, 0.0  ;;  %vm2360_vm12 = vcmp.gt.f32.partialorder %v2101_v3, 0.0  ;;  %v3893_v5 = vmul.f32 %v3622_v32, %v2869_v31  ;;  %v3894_v58 = vmul.f32 %v3622_v32, %v2870_v37 }
 0x313   :  { %v4025_v54 = vadd.f32 %v4024_v40, %v3891_v36  ;;  %v4158_v22 = vadd.f32 %v4157_v27, %v3892_v28  ;;  %v2619_v16 = vmul.f32 0.01, %v1777_v1  ;;  %v2620_v30 = vmul.f32 0.01, %v2106_v11 }
 0x314   :  { %vm2361_vm13 = vcmp.gt.f32.partialorder %v1775_v53, 0.0  ;;  %vm2362_vm0 = vcmp.gt.f32.partialorder %v2104_v51, 0.0  ;;  %vm2363_vm14 = vcmp.gt.f32.partialorder %v1777_v1, 0.0  ;;  %vm2364_vm15 = vcmp.gt.f32.partialorder %v2106_v11, 0.0 }
 0x315   :  { %v4026_v47 = vadd.f32 %v4025_v54, %v3893_v5  ;;  %v4159_v9 = vadd.f32 %v4158_v22, %v3894_v58  ;;  %v1780_v41 = vadd.f32 %v1779_v6, %v8867_v18  ;;  %v2109_v35 = vadd.f32 %v2108_v20, %v8867_v18 }
 0x316   :  { %v2871_v61 = vsel %vm2359_vm11, %v1772_v55, %v2615_v43  ;;  %v2872_v24 = vsel %vm2360_vm12, %v2101_v3, %v2616_v25  ;;  %v2873_v21 = vsel %vm2361_vm13, %v1775_v53, %v2617_v13  ;;  %v2874_v38 = vsel %vm2362_vm0, %v2104_v51, %v2618_v42  ;;  %v3642_v34 = vpop.permute.xlu2 %3641 }
 0x317   :  { %v3895_v44 = vmul.f32 %v3627_v8, %v2871_v61  ;;  %v3896_v63 = vmul.f32 %v3627_v8, %v2872_v24  ;;  %v1782_v49 = vadd.f32 %v1781_v52, %v8868_v29  ;;  %v2111_v48 = vadd.f32 %v2110_v26, %v8868_v29  ;;  %v3637_v46 = vpop.permute.xlu1 %3636 }
 0x318   :  { %v2875_v62 = vsel %vm2363_vm14, %v1777_v1, %v2619_v16  ;;  %v2876_v15 = vsel %vm2364_vm15, %v2106_v11, %v2620_v30  ;;  %v3632_v7 = vpop.permute.xlu0 %3631  ;;  %v2621_v23 = vmul.f32 0.01, %v1780_v41  ;;  %v2622_v45 = vmul.f32 0.01, %v2109_v35 }
 0x319   :  { %v3897_v10 = vmul.f32 %v3632_v7, %v2873_v21  ;;  %v3898_v12 = vmul.f32 %v3632_v7, %v2874_v38  ;;  %v4027_v6 = vadd.f32 %v4026_v47, %v3895_v44  ;;  %v4160_v20 = vadd.f32 %v4159_v9, %v3896_v63 }
 0x31a   :  { %vm2365_vm1 = vcmp.gt.f32.partialorder %v1780_v41, 0.0  ;;  %vm2366_vm2 = vcmp.gt.f32.partialorder %v2109_v35, 0.0  ;;  %v3899_v33 = vmul.f32 %v3637_v46, %v2875_v62  ;;  %v3900_v4 = vmul.f32 %v3637_v46, %v2876_v15 }
 0x31b   :  { %v4028_v39 = vadd.f32 %v4027_v6, %v3897_v10  ;;  %v4161_v55 = vadd.f32 %v4160_v20, %v3898_v12  ;;  %v2623_v3 = vmul.f32 0.01, %v1782_v49  ;;  %v2624_v50 = vmul.f32 0.01, %v2111_v48 }
 0x31c   :  { %vm2367_vm3 = vcmp.gt.f32.partialorder %v1782_v49, 0.0  ;;  %vm2368_vm4 = vcmp.gt.f32.partialorder %v2111_v48, 0.0  ;;  %v2877_v57 = vsel %vm2365_vm1, %v1780_v41, %v2621_v23  ;;  %v2878_v53 = vsel %vm2366_vm2, %v2109_v35, %v2622_v45 }
 0x31d   :  { %v4029_v56 = vadd.f32 %v4028_v39, %v3899_v33  ;;  %v4162_v19 = vadd.f32 %v4161_v55, %v3900_v4  ;;  %v3901_v51 = vmul.f32 %v3642_v34, %v2877_v57  ;;  %v3902_v14 = vmul.f32 %v3642_v34, %v2878_v53 }
 0x31e   :  { %v2879_v0 = vsel %vm2367_vm3, %v1782_v49, %v2623_v3  ;;  %v2880_v17 = vsel %vm2368_vm4, %v2111_v48, %v2624_v50  ;;  %v4172_v5 = vstv %s8174_s4  ;;  %v4181_v58 = vlaneseq }
 0x31f   :  { %v4030_v37 = vadd.f32 %v4029_v56, %v3901_v51  ;;  %v4163_v43 = vadd.f32 %v4162_v19, %v3902_v14  ;;  %vm4178_vm5 = vcmask 1040384  }
 0x320   :  { %v3647_v2 = vpop.permute.xlu0 %3646  ;;  %vm4183_vm6 = vcmp.lt.s32.totalorder %v4181_v58, 256 }
 0x321   :  { %v3903_v32 = vmul.f32 %v3647_v2, %v2879_v0  ;;  %v3904_v31 = vmul.f32 %v3647_v2, %v2880_v17 }
 0x323   :  { %v4031_v25 = vadd.f32 %v4030_v37, %v3903_v32  ;;  %v4164_v60 = vadd.f32 %v4163_v43, %v3904_v31 }
 0x325   :  { %v4032_v1 = vrot.slane %v4031_v25, 4  ;;  %v4165_v11 = vrot.slane %v4164_v60, 4 }
 0x327   :  { %v4033_v59 = vadd.f32 %v4032_v1, %v4031_v25  ;;  %v4166_v36 = vadd.f32 %v4165_v11, %v4164_v60 }
 0x329   :  { %v4034_v28 = vrot.slane %v4033_v59, 2  ;;  %v4167_v40 = vrot.slane %v4166_v36, 2 }
 0x32b   :  { %v4035_v27 = vadd.f32 %v4034_v28, %v4033_v59  ;;  %v4168_v13 = vadd.f32 %v4167_v40, %v4166_v36 }
 0x32d   :  { %v4036_v42 = vrot.slane %v4035_v27, 1  ;;  %v4169_v8 = vrot.slane %v4168_v13, 1 }
 0x32f   :  { %v4037_v54 = vadd.f32 %v4036_v42, %v4035_v27  ;;  %v4170_v22 = vadd.f32 %v4169_v8, %v4168_v13 }
 0x331   :  { %v4174_v16 = vadd.f32 %v4172_v5, %v4170_v22  ;;  %v4173_v30 = vadd.f32 %v4172_v5, %v4037_v54 }
 0x333   :  { %v4177_v52 = vrot.slane %v4174_v16, 7 }
 0x335   :  { %v4179_v26 = vsel %vm4178_vm5, %v4173_v30, %v4177_v52 }
 0x336   :  { %4185 = vst.msk [vmem:[%s8175_s5] sm:$0x3] %vm4183_vm6, %v4179_v26 }

</bundles_post_ra>
